<compile_context>
chip_gen: v7x
topology: tpu7x:2x2x1
jax: 0.10.0
libtpu: 0.0.40
codegen_flags: <defaults>
</compile_context>

<pallas_src>
import functools

import jax
import jax.numpy as jnp
from jax import lax
from jax.experimental import pallas as pl
from jax.experimental.pallas import tpu as pltpu


# ----------------------------- Pallas kernel -------------------------------

def _make_bottleneck_kernel(H, W, Cin, P, Cout, pad, dilation):
    """Fused bottleneck kernel over one (H, W, Cin) image tile."""
    HWo = H * W

    def kernel(x_ref, w1_ref, w2_ref, w3_ref,
               s1_ref, b1_ref, s2_ref, b2_ref, s3_ref, b3_ref,
               o_ref, y1p_ref):
        # x_ref: (H, W, Cin) bf16 tile (also the residual source).
        x2d = x_ref[...].reshape(HWo, Cin)

        # -------- stage 1: 1x1 conv (MXU, bf16 in / f32 acc) + BN + ReLU ----
        y1 = jnp.dot(x2d, w1_ref[...], preferred_element_type=jnp.float32)
        y1 = jnp.maximum(y1 * s1_ref[...] + b1_ref[...], 0.0)

        # Zero-padded y1 lives entirely in VMEM scratch (no HBM im2col).
        y1p_ref[...] = jnp.zeros_like(y1p_ref)
        y1p_ref[pad:pad + H, pad:pad + W, :] = y1.reshape(H, W, P)

        # -------- stage 2: 3x3 conv as 9 shifted matmuls, f32 accumulate ----
        acc = jnp.zeros((HWo, P), jnp.float32)
        for kh in range(3):
            for kw in range(3):
                tap = y1p_ref[kh * dilation: kh * dilation + H,
                              kw * dilation: kw * dilation + W, :]
                acc = acc + jnp.dot(
                    tap.reshape(HWo, P).astype(jnp.bfloat16),
                    w2_ref[kh * 3 + kw],
                    preferred_element_type=jnp.float32)
        y2 = jnp.maximum(acc * s2_ref[...] + b2_ref[...], 0.0)

        # -------- stage 3: 1x1 conv + BN + residual add + ReLU --------------
        y3 = jnp.dot(y2.astype(jnp.bfloat16), w3_ref[...],
                     preferred_element_type=jnp.float32)
        y3 = y3 * s3_ref[...] + b3_ref[...] + x2d.astype(jnp.float32)
        o_ref[...] = jnp.maximum(y3, 0.0).reshape(H, W, Cout).astype(o_ref.dtype)

    return kernel


# ------------------------------ JAX wrapper ---------------------------------

def _fold_bn(gamma, beta, mean, var, eps=1e-5):
    scale = gamma / jnp.sqrt(var + eps)
    shift = beta - mean * scale
    return scale, shift


def bottleneck_forward(x_nchw, params, dilation=1):
    """Pallas-backed Bottleneck forward (identity residual, stride=1)."""
    w1, w2, w3, bn1, bn2, bn3 = params
    N, Cin, H, W = x_nchw.shape
    P = w1.shape[0]
    Cout = w3.shape[0]
    assert Cin == Cout == 4 * P, "identity residual requires inplanes == 4*planes"
    assert dilation in (1, 2), "padding formula matches PyTorch only for d=1,2"
    pad = (3 * dilation - 1) // 2

    # NCHW -> NHWC (layout plumbing outside the kernel); bf16 halves x DMA.
    x = jnp.transpose(x_nchw, (0, 2, 3, 1)).astype(jnp.bfloat16)

    s1, b1 = _fold_bn(*bn1)
    s2, b2 = _fold_bn(*bn2)
    s3, b3 = _fold_bn(*bn3)

    # Weights as matmul operands (bf16 MXU inputs).
    w1_mm = jnp.transpose(w1[:, :, 0, 0]).astype(jnp.bfloat16)            # (Cin, P)
    w2_mm = jnp.transpose(w2, (2, 3, 1, 0)).reshape(9, P, P).astype(jnp.bfloat16)
    w3_mm = jnp.transpose(w3[:, :, 0, 0]).astype(jnp.bfloat16)            # (P, Cout)

    def row(v):
        return v.reshape(1, -1).astype(jnp.float32)

    kernel = _make_bottleneck_kernel(H, W, Cin, P, Cout, pad, dilation)
    HWo = H * W

    # Scheduler hints.
    flops = 2 * N * HWo * (Cin * P + 9 * P * P + P * Cout)
    bytes_accessed = (x.size * 2 + w1_mm.size * 2 + w2_mm.size * 2
                      + w3_mm.size * 2 + N * HWo * Cout * 4)

    # Rough per-step VMEM budget (double-buffered inputs/outputs + scratch).
    vmem_bytes = (2 * HWo * Cin * 2
                  + 2 * (Cin * P + 9 * P * P + P * Cout) * 2
                  + 2 * HWo * Cout * 4
                  + (H + 2 * pad) * (W + 2 * pad) * P * 4
                  + 6 * 4 * max(P, Cout))
    vmem_limit = int(min(max(4 * vmem_bytes, 16 * 2 ** 20), 64 * 2 ** 20))

    def full_spec(shape):
        nd = len(shape)
        return pl.BlockSpec(shape, lambda b, _nd=nd: (0,) * _nd)

    grid_spec = pltpu.PrefetchScalarGridSpec(
        num_scalar_prefetch=0,
        grid=(N,),
        in_specs=[
            pl.BlockSpec((None, H, W, Cin), lambda b: (b, 0, 0, 0)),  # x tile
            full_spec((Cin, P)),                                       # w1
            full_spec((9, P, P)),                                      # w2
            full_spec((P, Cout)),                                      # w3
            full_spec((1, P)), full_spec((1, P)),                      # bn1
            full_spec((1, P)), full_spec((1, P)),                      # bn2
            full_spec((1, Cout)), full_spec((1, Cout)),                # bn3
        ],
        out_specs=pl.BlockSpec((None, H, W, Cout), lambda b: (b, 0, 0, 0)),
        scratch_shapes=[
            pltpu.VMEM((H + 2 * pad, W + 2 * pad, P), jnp.float32),    # padded y1
        ],
    )

    out_nhwc = pl.pallas_call(
        kernel,
        out_shape=jax.ShapeDtypeStruct((N, H, W, Cout), jnp.float32),
        grid_spec=grid_spec,
        compiler_params=pltpu.CompilerParams(
            dimension_semantics=("parallel",),
            vmem_limit_bytes=vmem_limit),
        cost_estimate=pl.CostEstimate(
            flops=int(flops), transcendentals=0,
            bytes_accessed=int(bytes_accessed)),
    )(x, w1_mm, w2_mm, w3_mm,
      row(s1), row(b1), row(s2), row(b2), row(s3), row(b3))

    return jnp.transpose(out_nhwc, (0, 3, 1, 2))                       # NHWC -> NCHW


# --------------------------- pure-JAX reference -----------------------------

def bottleneck_ref(x_nchw, params, dilation=1):
    w1, w2, w3, bn1, bn2, bn3 = params

    def conv(x, w, s=1, d=1, pad=0):
        return lax.conv_general_dilated(
            x, w, window_strides=(s, s), padding=[(pad, pad), (pad, pad)],
            rhs_dilation=(d, d), dimension_numbers=("NCHW", "OIHW", "NCHW"))

    def bn(x, p, eps=1e-5):
        gamma, beta, mean, var = p
        s = gamma / jnp.sqrt(var + eps)
        return x * s[None, :, None, None] + (beta - mean * s)[None, :, None, None]

    out = jax.nn.relu(bn(conv(x_nchw, w1), bn1))
    out = jax.nn.relu(bn(conv(out, w2, 1, dilation, (3 * dilation - 1) // 2), bn2))
    out = bn(conv(out, w3), bn3)
    return jax.nn.relu(out + x_nchw)


# ------------------------------ parameters ----------------------------------

def init_bottleneck_params(key, inplanes, planes):
    ks = jax.random.split(key, 15)

    def bn_params(kg, kb, km, kv, c):
        gamma = jax.random.uniform(kg, (c,), jnp.float32, 0.5, 1.5)
        beta = 0.1 * jax.random.normal(kb, (c,), jnp.float32)
        mean = 0.1 * jax.random.normal(km, (c,), jnp.float32)
        var = jax.random.uniform(kv, (c,), jnp.float32, 0.5, 1.5)
        return gamma, beta, mean, var

    w1 = 0.1 * jax.random.normal(ks[0], (planes, inplanes, 1, 1), jnp.float32)
    w2 = 0.1 * jax.random.normal(ks[1], (planes, planes, 3, 3), jnp.float32)
    w3 = 0.1 * jax.random.normal(ks[2], (planes * 4, planes, 1, 1), jnp.float32)
    bn1 = bn_params(*ks[3:7], planes)
    bn2 = bn_params(*ks[7:11], planes)
    bn3 = bn_params(*ks[11:15], planes * 4)
    return (w1, w2, w3, bn1, bn2, bn3)


# --------------------------------- main --------------------------------------

if __name__ == "__main__":
    key = jax.random.PRNGKey(0)
    k_x, k_p = jax.random.split(key)

    # Small but ResNet-like shapes; identity residual needs inplanes = 4*planes.
    inplanes, planes = 256, 64
    n, h, w = 2, 16, 16
    x = jax.random.normal(k_x, (n, inplanes, h, w), jnp.float32)   # NCHW input
    params = init_bottleneck_params(k_p, inplanes, planes)

    fwd = jax.jit(functools.partial(bottleneck_forward, dilation=1))
    out = jax.block_until_ready(fwd(x, params))

    ref = jax.block_until_ready(bottleneck_ref(x, params, dilation=1))
    assert out.shape == ref.shape == (n, inplanes, h, w)

    # bf16 MXU inputs with f32 accumulation -> loosened tolerance vs f32 ref.
    max_err = float(jnp.max(jnp.abs(out - ref)))
    mean_err = float(jnp.mean(jnp.abs(out - ref)))
    ref_scale = float(jnp.max(jnp.abs(ref)))
    assert max_err <= 5e-2 * ref_scale + 1e-1, (max_err, ref_scale)
    assert mean_err <= 5e-2, mean_err

    print("KERNEL_OK")
</pallas_src>

<mosaic_0001>
module attributes {stable_mosaic.version = 11 : i64} {
  func.func @kernel(%arg0: i32, %arg1: memref<1x16x16x256xbf16, #tpu.memory_space<vmem>>, %arg2: memref<256x64xbf16, #tpu.memory_space<vmem>>, %arg3: memref<9x64x64xbf16, #tpu.memory_space<vmem>>, %arg4: memref<64x256xbf16, #tpu.memory_space<vmem>>, %arg5: memref<1x64xf32, #tpu.memory_space<vmem>>, %arg6: memref<1x64xf32, #tpu.memory_space<vmem>>, %arg7: memref<1x64xf32, #tpu.memory_space<vmem>>, %arg8: memref<1x64xf32, #tpu.memory_space<vmem>>, %arg9: memref<1x256xf32, #tpu.memory_space<vmem>>, %arg10: memref<1x256xf32, #tpu.memory_space<vmem>>, %arg11: memref<1x16x16x256xf32, #tpu.memory_space<vmem>>, %arg12: memref<18x18x64xf32, #tpu.memory_space<vmem>>) attributes {dimension_semantics = [#tpu.dimension_semantics<parallel>], iteration_bounds = array<i64: 2>, scalar_prefetch = 0 : i64, scratch_operands = 1 : i64, tpu.core_type = #tpu.core_type<tc>, window_params = [{transform_indices = @transform_0, window_bounds = array<i64: 1, 16, 16, 256>}, {pipeline_mode = #tpu.pipeline_mode<synchronous>, transform_indices = @transform_1, window_bounds = array<i64: 256, 64>}, {pipeline_mode = #tpu.pipeline_mode<synchronous>, transform_indices = @transform_2, window_bounds = array<i64: 9, 64, 64>}, {pipeline_mode = #tpu.pipeline_mode<synchronous>, transform_indices = @transform_3, window_bounds = array<i64: 64, 256>}, {pipeline_mode = #tpu.pipeline_mode<synchronous>, transform_indices = @transform_4, window_bounds = array<i64: 1, 64>}, {pipeline_mode = #tpu.pipeline_mode<synchronous>, transform_indices = @transform_5, window_bounds = array<i64: 1, 64>}, {pipeline_mode = #tpu.pipeline_mode<synchronous>, transform_indices = @transform_6, window_bounds = array<i64: 1, 64>}, {pipeline_mode = #tpu.pipeline_mode<synchronous>, transform_indices = @transform_7, window_bounds = array<i64: 1, 64>}, {pipeline_mode = #tpu.pipeline_mode<synchronous>, transform_indices = @transform_8, window_bounds = array<i64: 1, 256>}, {pipeline_mode = #tpu.pipeline_mode<synchronous>, transform_indices = @transform_9, window_bounds = array<i64: 1, 256>}, {transform_indices = @transform_10, window_bounds = array<i64: 1, 16, 16, 256>}]} {
    %c0 = arith.constant 0 : index
    %c0_0 = arith.constant 0 : index
    %c0_1 = arith.constant 0 : index
    %c0_2 = arith.constant 0 : index
    %0 = vector.load %arg1[%c0, %c0_0, %c0_1, %c0_2] : memref<1x16x16x256xbf16, #tpu.memory_space<vmem>>, vector<1x16x16x256xbf16>
    %1 = vector.shape_cast %0 : vector<1x16x16x256xbf16> to vector<16x16x256xbf16>
    %2 = vector.shape_cast %1 : vector<16x16x256xbf16> to vector<256x256xbf16>
    %c0_3 = arith.constant 0 : index
    %c0_4 = arith.constant 0 : index
    %3 = vector.load %arg2[%c0_3, %c0_4] : memref<256x64xbf16, #tpu.memory_space<vmem>>, vector<256x64xbf16>
    %cst = arith.constant dense<0.000000e+00> : vector<256x64xf32>
    %4 = tpu.matmul %2, %3, %cst {dimension_numbers = #tpu.dot_dimension_numbers<[1], [0], [0], [1], [0, 0, 1, 1], [], []>} : vector<256x256xbf16>, vector<256x64xbf16>, vector<256x64xf32> -> vector<256x64xf32>
    %c0_5 = arith.constant 0 : index
    %c0_6 = arith.constant 0 : index
    %5 = vector.load %arg5[%c0_5, %c0_6] : memref<1x64xf32, #tpu.memory_space<vmem>>, vector<1x64xf32>
    %6 = vector.broadcast %5 : vector<1x64xf32> to vector<256x64xf32>
    %7 = arith.mulf %4, %6 : vector<256x64xf32>
    %c0_7 = arith.constant 0 : index
    %c0_8 = arith.constant 0 : index
    %8 = vector.load %arg6[%c0_7, %c0_8] : memref<1x64xf32, #tpu.memory_space<vmem>>, vector<1x64xf32>
    %9 = vector.broadcast %8 : vector<1x64xf32> to vector<256x64xf32>
    %10 = arith.addf %7, %9 : vector<256x64xf32>
    %cst_9 = arith.constant 0.000000e+00 : f32
    %11 = vector.broadcast %cst_9 : f32 to vector<256x64xf32>
    %12 = arith.maximumf %10, %11 : vector<256x64xf32>
    %cst_10 = arith.constant 0.000000e+00 : f32
    %13 = vector.broadcast %cst_10 : f32 to vector<18x18x64xf32>
    %c0_11 = arith.constant 0 : index
    %c0_12 = arith.constant 0 : index
    %c0_13 = arith.constant 0 : index
    %14 = vector.load %arg12[%c0_11, %c0_12, %c0_13] : memref<18x18x64xf32, #tpu.memory_space<vmem>>, vector<18x18x64xf32>
    tpu.vector_store %arg12[%c0_11, %c0_12, %c0_13], %13 {strides = array<i32>} : memref<18x18x64xf32, #tpu.memory_space<vmem>>, vector<18x18x64xf32>,
    %15 = vector.shape_cast %12 : vector<256x64xf32> to vector<16x16x64xf32>
    %c1 = arith.constant 1 : index
    %c1_14 = arith.constant 1 : index
    %c0_15 = arith.constant 0 : index
    %16 = vector.load %arg12[%c1, %c1_14, %c0_15] : memref<18x18x64xf32, #tpu.memory_space<vmem>>, vector<16x16x64xf32>
    tpu.vector_store %arg12[%c1, %c1_14, %c0_15], %15 {strides = array<i32>} : memref<18x18x64xf32, #tpu.memory_space<vmem>>, vector<16x16x64xf32>,
    %cst_16 = arith.constant 0.000000e+00 : f32
    %17 = vector.broadcast %cst_16 : f32 to vector<256x64xf32>
    %c0_17 = arith.constant 0 : index
    %c0_18 = arith.constant 0 : index
    %c0_19 = arith.constant 0 : index
    %18 = vector.load %arg12[%c0_17, %c0_18, %c0_19] : memref<18x18x64xf32, #tpu.memory_space<vmem>>, vector<16x16x64xf32>
    %19 = vector.shape_cast %18 : vector<16x16x64xf32> to vector<256x64xf32>
    %20 = arith.truncf %19 : vector<256x64xf32> to vector<256x64xbf16>
    %c0_20 = arith.constant 0 : index
    %c0_21 = arith.constant 0 : index
    %c0_22 = arith.constant 0 : index
    %21 = vector.load %arg3[%c0_20, %c0_21, %c0_22] : memref<9x64x64xbf16, #tpu.memory_space<vmem>>, vector<1x64x64xbf16>
    %22 = vector.shape_cast %21 : vector<1x64x64xbf16> to vector<64x64xbf16>
    %cst_23 = arith.constant dense<0.000000e+00> : vector<256x64xf32>
    %23 = tpu.matmul %20, %22, %cst_23 {dimension_numbers = #tpu.dot_dimension_numbers<[1], [0], [0], [1], [0, 0, 1, 1], [], []>} : vector<256x64xbf16>, vector<64x64xbf16>, vector<256x64xf32> -> vector<256x64xf32>
    %24 = arith.addf %17, %23 : vector<256x64xf32>
    %c0_24 = arith.constant 0 : index
    %c1_25 = arith.constant 1 : index
    %c0_26 = arith.constant 0 : index
    %25 = vector.load %arg12[%c0_24, %c1_25, %c0_26] : memref<18x18x64xf32, #tpu.memory_space<vmem>>, vector<16x16x64xf32>
    %26 = vector.shape_cast %25 : vector<16x16x64xf32> to vector<256x64xf32>
    %27 = arith.truncf %26 : vector<256x64xf32> to vector<256x64xbf16>
    %c1_27 = arith.constant 1 : index
    %c0_28 = arith.constant 0 : index
    %c0_29 = arith.constant 0 : index
    %28 = vector.load %arg3[%c1_27, %c0_28, %c0_29] : memref<9x64x64xbf16, #tpu.memory_space<vmem>>, vector<1x64x64xbf16>
    %29 = vector.shape_cast %28 : vector<1x64x64xbf16> to vector<64x64xbf16>
    %cst_30 = arith.constant dense<0.000000e+00> : vector<256x64xf32>
    %30 = tpu.matmul %27, %29, %cst_30 {dimension_numbers = #tpu.dot_dimension_numbers<[1], [0], [0], [1], [0, 0, 1, 1], [], []>} : vector<256x64xbf16>, vector<64x64xbf16>, vector<256x64xf32> -> vector<256x64xf32>
    %31 = arith.addf %24, %30 : vector<256x64xf32>
    %c0_31 = arith.constant 0 : index
    %c2 = arith.constant 2 : index
    %c0_32 = arith.constant 0 : index
    %32 = vector.load %arg12[%c0_31, %c2, %c0_32] : memref<18x18x64xf32, #tpu.memory_space<vmem>>, vector<16x16x64xf32>
    %33 = vector.shape_cast %32 : vector<16x16x64xf32> to vector<256x64xf32>
    %34 = arith.truncf %33 : vector<256x64xf32> to vector<256x64xbf16>
    %c2_33 = arith.constant 2 : index
    %c0_34 = arith.constant 0 : index
    %c0_35 = arith.constant 0 : index
    %35 = vector.load %arg3[%c2_33, %c0_34, %c0_35] : memref<9x64x64xbf16, #tpu.memory_space<vmem>>, vector<1x64x64xbf16>
    %36 = vector.shape_cast %35 : vector<1x64x64xbf16> to vector<64x64xbf16>
    %cst_36 = arith.constant dense<0.000000e+00> : vector<256x64xf32>
    %37 = tpu.matmul %34, %36, %cst_36 {dimension_numbers = #tpu.dot_dimension_numbers<[1], [0], [0], [1], [0, 0, 1, 1], [], []>} : vector<256x64xbf16>, vector<64x64xbf16>, vector<256x64xf32> -> vector<256x64xf32>
    %38 = arith.addf %31, %37 : vector<256x64xf32>
    %c1_37 = arith.constant 1 : index
    %c0_38 = arith.constant 0 : index
    %c0_39 = arith.constant 0 : index
    %39 = vector.load %arg12[%c1_37, %c0_38, %c0_39] : memref<18x18x64xf32, #tpu.memory_space<vmem>>, vector<16x16x64xf32>
    %40 = vector.shape_cast %39 : vector<16x16x64xf32> to vector<256x64xf32>
    %41 = arith.truncf %40 : vector<256x64xf32> to vector<256x64xbf16>
    %c3 = arith.constant 3 : index
    %c0_40 = arith.constant 0 : index
    %c0_41 = arith.constant 0 : index
    %42 = vector.load %arg3[%c3, %c0_40, %c0_41] : memref<9x64x64xbf16, #tpu.memory_space<vmem>>, vector<1x64x64xbf16>
    %43 = vector.shape_cast %42 : vector<1x64x64xbf16> to vector<64x64xbf16>
    %cst_42 = arith.constant dense<0.000000e+00> : vector<256x64xf32>
    %44 = tpu.matmul %41, %43, %cst_42 {dimension_numbers = #tpu.dot_dimension_numbers<[1], [0], [0], [1], [0, 0, 1, 1], [], []>} : vector<256x64xbf16>, vector<64x64xbf16>, vector<256x64xf32> -> vector<256x64xf32>
    %45 = arith.addf %38, %44 : vector<256x64xf32>
    %c1_43 = arith.constant 1 : index
    %c1_44 = arith.constant 1 : index
    %c0_45 = arith.constant 0 : index
    %46 = vector.load %arg12[%c1_43, %c1_44, %c0_45] : memref<18x18x64xf32, #tpu.memory_space<vmem>>, vector<16x16x64xf32>
    %47 = vector.shape_cast %46 : vector<16x16x64xf32> to vector<256x64xf32>
    %48 = arith.truncf %47 : vector<256x64xf32> to vector<256x64xbf16>
    %c4 = arith.constant 4 : index
    %c0_46 = arith.constant 0 : index
    %c0_47 = arith.constant 0 : index
    %49 = vector.load %arg3[%c4, %c0_46, %c0_47] : memref<9x64x64xbf16, #tpu.memory_space<vmem>>, vector<1x64x64xbf16>
    %50 = vector.shape_cast %49 : vector<1x64x64xbf16> to vector<64x64xbf16>
    %cst_48 = arith.constant dense<0.000000e+00> : vector<256x64xf32>
    %51 = tpu.matmul %48, %50, %cst_48 {dimension_numbers = #tpu.dot_dimension_numbers<[1], [0], [0], [1], [0, 0, 1, 1], [], []>} : vector<256x64xbf16>, vector<64x64xbf16>, vector<256x64xf32> -> vector<256x64xf32>
    %52 = arith.addf %45, %51 : vector<256x64xf32>
    %c1_49 = arith.constant 1 : index
    %c2_50 = arith.constant 2 : index
    %c0_51 = arith.constant 0 : index
    %53 = vector.load %arg12[%c1_49, %c2_50, %c0_51] : memref<18x18x64xf32, #tpu.memory_space<vmem>>, vector<16x16x64xf32>
    %54 = vector.shape_cast %53 : vector<16x16x64xf32> to vector<256x64xf32>
    %55 = arith.truncf %54 : vector<256x64xf32> to vector<256x64xbf16>
    %c5 = arith.constant 5 : index
    %c0_52 = arith.constant 0 : index
    %c0_53 = arith.constant 0 : index
    %56 = vector.load %arg3[%c5, %c0_52, %c0_53] : memref<9x64x64xbf16, #tpu.memory_space<vmem>>, vector<1x64x64xbf16>
    %57 = vector.shape_cast %56 : vector<1x64x64xbf16> to vector<64x64xbf16>
    %cst_54 = arith.constant dense<0.000000e+00> : vector<256x64xf32>
    %58 = tpu.matmul %55, %57, %cst_54 {dimension_numbers = #tpu.dot_dimension_numbers<[1], [0], [0], [1], [0, 0, 1, 1], [], []>} : vector<256x64xbf16>, vector<64x64xbf16>, vector<256x64xf32> -> vector<256x64xf32>
    %59 = arith.addf %52, %58 : vector<256x64xf32>
    %c2_55 = arith.constant 2 : index
    %c0_56 = arith.constant 0 : index
    %c0_57 = arith.constant 0 : index
    %60 = vector.load %arg12[%c2_55, %c0_56, %c0_57] : memref<18x18x64xf32, #tpu.memory_space<vmem>>, vector<16x16x64xf32>
    %61 = vector.shape_cast %60 : vector<16x16x64xf32> to vector<256x64xf32>
    %62 = arith.truncf %61 : vector<256x64xf32> to vector<256x64xbf16>
    %c6 = arith.constant 6 : index
    %c0_58 = arith.constant 0 : index
    %c0_59 = arith.constant 0 : index
    %63 = vector.load %arg3[%c6, %c0_58, %c0_59] : memref<9x64x64xbf16, #tpu.memory_space<vmem>>, vector<1x64x64xbf16>
    %64 = vector.shape_cast %63 : vector<1x64x64xbf16> to vector<64x64xbf16>
    %cst_60 = arith.constant dense<0.000000e+00> : vector<256x64xf32>
    %65 = tpu.matmul %62, %64, %cst_60 {dimension_numbers = #tpu.dot_dimension_numbers<[1], [0], [0], [1], [0, 0, 1, 1], [], []>} : vector<256x64xbf16>, vector<64x64xbf16>, vector<256x64xf32> -> vector<256x64xf32>
    %66 = arith.addf %59, %65 : vector<256x64xf32>
    %c2_61 = arith.constant 2 : index
    %c1_62 = arith.constant 1 : index
    %c0_63 = arith.constant 0 : index
    %67 = vector.load %arg12[%c2_61, %c1_62, %c0_63] : memref<18x18x64xf32, #tpu.memory_space<vmem>>, vector<16x16x64xf32>
    %68 = vector.shape_cast %67 : vector<16x16x64xf32> to vector<256x64xf32>
    %69 = arith.truncf %68 : vector<256x64xf32> to vector<256x64xbf16>
    %c7 = arith.constant 7 : index
    %c0_64 = arith.constant 0 : index
    %c0_65 = arith.constant 0 : index
    %70 = vector.load %arg3[%c7, %c0_64, %c0_65] : memref<9x64x64xbf16, #tpu.memory_space<vmem>>, vector<1x64x64xbf16>
    %71 = vector.shape_cast %70 : vector<1x64x64xbf16> to vector<64x64xbf16>
    %cst_66 = arith.constant dense<0.000000e+00> : vector<256x64xf32>
    %72 = tpu.matmul %69, %71, %cst_66 {dimension_numbers = #tpu.dot_dimension_numbers<[1], [0], [0], [1], [0, 0, 1, 1], [], []>} : vector<256x64xbf16>, vector<64x64xbf16>, vector<256x64xf32> -> vector<256x64xf32>
    %73 = arith.addf %66, %72 : vector<256x64xf32>
    %c2_67 = arith.constant 2 : index
    %c2_68 = arith.constant 2 : index
    %c0_69 = arith.constant 0 : index
    %74 = vector.load %arg12[%c2_67, %c2_68, %c0_69] : memref<18x18x64xf32, #tpu.memory_space<vmem>>, vector<16x16x64xf32>
    %75 = vector.shape_cast %74 : vector<16x16x64xf32> to vector<256x64xf32>
    %76 = arith.truncf %75 : vector<256x64xf32> to vector<256x64xbf16>
    %c8 = arith.constant 8 : index
    %c0_70 = arith.constant 0 : index
    %c0_71 = arith.constant 0 : index
    %77 = vector.load %arg3[%c8, %c0_70, %c0_71] : memref<9x64x64xbf16, #tpu.memory_space<vmem>>, vector<1x64x64xbf16>
    %78 = vector.shape_cast %77 : vector<1x64x64xbf16> to vector<64x64xbf16>
    %cst_72 = arith.constant dense<0.000000e+00> : vector<256x64xf32>
    %79 = tpu.matmul %76, %78, %cst_72 {dimension_numbers = #tpu.dot_dimension_numbers<[1], [0], [0], [1], [0, 0, 1, 1], [], []>} : vector<256x64xbf16>, vector<64x64xbf16>, vector<256x64xf32> -> vector<256x64xf32>
    %80 = arith.addf %73, %79 : vector<256x64xf32>
    %c0_73 = arith.constant 0 : index
    %c0_74 = arith.constant 0 : index
    %81 = vector.load %arg7[%c0_73, %c0_74] : memref<1x64xf32, #tpu.memory_space<vmem>>, vector<1x64xf32>
    %82 = vector.broadcast %81 : vector<1x64xf32> to vector<256x64xf32>
    %83 = arith.mulf %80, %82 : vector<256x64xf32>
    %c0_75 = arith.constant 0 : index
    %c0_76 = arith.constant 0 : index
    %84 = vector.load %arg8[%c0_75, %c0_76] : memref<1x64xf32, #tpu.memory_space<vmem>>, vector<1x64xf32>
    %85 = vector.broadcast %84 : vector<1x64xf32> to vector<256x64xf32>
    %86 = arith.addf %83, %85 : vector<256x64xf32>
    %cst_77 = arith.constant 0.000000e+00 : f32
    %87 = vector.broadcast %cst_77 : f32 to vector<256x64xf32>
    %88 = arith.maximumf %86, %87 : vector<256x64xf32>
    %89 = arith.truncf %88 : vector<256x64xf32> to vector<256x64xbf16>
    %c0_78 = arith.constant 0 : index
    %c0_79 = arith.constant 0 : index
    %90 = vector.load %arg4[%c0_78, %c0_79] : memref<64x256xbf16, #tpu.memory_space<vmem>>, vector<64x256xbf16>
    %cst_80 = arith.constant dense<0.000000e+00> : vector<256x256xf32>
    %91 = tpu.matmul %89, %90, %cst_80 {dimension_numbers = #tpu.dot_dimension_numbers<[1], [0], [0], [1], [0, 0, 1, 1], [], []>} : vector<256x64xbf16>, vector<64x256xbf16>, vector<256x256xf32> -> vector<256x256xf32>
    %c0_81 = arith.constant 0 : index
    %c0_82 = arith.constant 0 : index
    %92 = vector.load %arg9[%c0_81, %c0_82] : memref<1x256xf32, #tpu.memory_space<vmem>>, vector<1x256xf32>
    %93 = vector.broadcast %92 : vector<1x256xf32> to vector<256x256xf32>
    %94 = arith.mulf %91, %93 : vector<256x256xf32>
    %c0_83 = arith.constant 0 : index
    %c0_84 = arith.constant 0 : index
    %95 = vector.load %arg10[%c0_83, %c0_84] : memref<1x256xf32, #tpu.memory_space<vmem>>, vector<1x256xf32>
    %96 = vector.broadcast %95 : vector<1x256xf32> to vector<256x256xf32>
    %97 = arith.addf %94, %96 : vector<256x256xf32>
    %98 = arith.extf %2 : vector<256x256xbf16> to vector<256x256xf32>
    %99 = arith.addf %97, %98 : vector<256x256xf32>
    %cst_85 = arith.constant 0.000000e+00 : f32
    %100 = vector.broadcast %cst_85 : f32 to vector<256x256xf32>
    %101 = arith.maximumf %99, %100 : vector<256x256xf32>
    %102 = vector.shape_cast %101 : vector<256x256xf32> to vector<16x16x256xf32>
    %c0_86 = arith.constant 0 : index
    %c0_87 = arith.constant 0 : index
    %c0_88 = arith.constant 0 : index
    %c0_89 = arith.constant 0 : index
    %103 = vector.load %arg11[%c0_86, %c0_87, %c0_88, %c0_89] : memref<1x16x16x256xf32, #tpu.memory_space<vmem>>, vector<1x16x16x256xf32>
    %104 = vector.shape_cast %103 : vector<1x16x16x256xf32> to vector<16x16x256xf32>
    %105 = vector.shape_cast %102 : vector<16x16x256xf32> to vector<1x16x16x256xf32>
    tpu.vector_store %arg11[%c0_86, %c0_87, %c0_88, %c0_89], %105 {strides = array<i32>} : memref<1x16x16x256xf32, #tpu.memory_space<vmem>>, vector<1x16x16x256xf32>,
    return
  }
  func.func @transform_0(%arg0: i32) -> (i32, i32, i32, i32) {
    %c0_i32 = arith.constant 0 : i32
    %c0_i32_0 = arith.constant 0 : i32
    %c0_i32_1 = arith.constant 0 : i32
    %c0_i32_2 = arith.constant 0 : i32
    return %arg0, %c0_i32, %c0_i32_0, %c0_i32_1 : i32, i32, i32, i32
  }
  func.func @transform_1(%arg0: i32) -> (i32, i32) {
    %c0_i32 = arith.constant 0 : i32
    %c0_i32_0 = arith.constant 0 : i32
    %c0_i32_1 = arith.constant 0 : i32
    return %c0_i32, %c0_i32_0 : i32, i32
  }
  func.func @transform_2(%arg0: i32) -> (i32, i32, i32) {
    %c0_i32 = arith.constant 0 : i32
    %c0_i32_0 = arith.constant 0 : i32
    %c0_i32_1 = arith.constant 0 : i32
    %c0_i32_2 = arith.constant 0 : i32
    return %c0_i32, %c0_i32_0, %c0_i32_1 : i32, i32, i32
  }
  func.func @transform_3(%arg0: i32) -> (i32, i32) {
    %c0_i32 = arith.constant 0 : i32
    %c0_i32_0 = arith.constant 0 : i32
    %c0_i32_1 = arith.constant 0 : i32
    return %c0_i32, %c0_i32_0 : i32, i32
  }
  func.func @transform_4(%arg0: i32) -> (i32, i32) {
    %c0_i32 = arith.constant 0 : i32
    %c0_i32_0 = arith.constant 0 : i32
    %c0_i32_1 = arith.constant 0 : i32
    return %c0_i32, %c0_i32_0 : i32, i32
  }
  func.func @transform_5(%arg0: i32) -> (i32, i32) {
    %c0_i32 = arith.constant 0 : i32
    %c0_i32_0 = arith.constant 0 : i32
    %c0_i32_1 = arith.constant 0 : i32
    return %c0_i32, %c0_i32_0 : i32, i32
  }
  func.func @transform_6(%arg0: i32) -> (i32, i32) {
    %c0_i32 = arith.constant 0 : i32
    %c0_i32_0 = arith.constant 0 : i32
    %c0_i32_1 = arith.constant 0 : i32
    return %c0_i32, %c0_i32_0 : i32, i32
  }
  func.func @transform_7(%arg0: i32) -> (i32, i32) {
    %c0_i32 = arith.constant 0 : i32
    %c0_i32_0 = arith.constant 0 : i32
    %c0_i32_1 = arith.constant 0 : i32
    return %c0_i32, %c0_i32_0 : i32, i32
  }
  func.func @transform_8(%arg0: i32) -> (i32, i32) {
    %c0_i32 = arith.constant 0 : i32
    %c0_i32_0 = arith.constant 0 : i32
    %c0_i32_1 = arith.constant 0 : i32
    return %c0_i32, %c0_i32_0 : i32, i32
  }
  func.func @transform_9(%arg0: i32) -> (i32, i32) {
    %c0_i32 = arith.constant 0 : i32
    %c0_i32_0 = arith.constant 0 : i32
    %c0_i32_1 = arith.constant 0 : i32
    return %c0_i32, %c0_i32_0 : i32, i32
  }
  func.func @transform_10(%arg0: i32) -> (i32, i32, i32, i32) {
    %c0_i32 = arith.constant 0 : i32
    %c0_i32_0 = arith.constant 0 : i32
    %c0_i32_1 = arith.constant 0 : i32
    %c0_i32_2 = arith.constant 0 : i32
    return %arg0, %c0_i32, %c0_i32_0, %c0_i32_1 : i32, i32, i32, i32
  }
}

</mosaic_0001>

<bundles_post_ra>
// kernel: bottleneck_forward.1
= control target key start
LH: loop header
LB: loop body
LE: loop exit
PB: predicated region body
PF: predicated region fallthrough
CT: control target
= control target key end

     0   :  { %15 = vsyncpa [#allocation4], 0  ;;  %s7654_s0 = inlined_call_operand.vmem [shape: bf16[2,16,16,256], index: 0, kind: input, shape index: {}]   ;;  %s7655_s1 = inlined_call_operand.vmem [shape: bf16[256,64], index: 1, kind: input, shape index: {}]   ;;  %s7656_s2 = inlined_call_operand.vmem [shape: bf16[9,64,64], index: 2, kind: input, shape index: {}]   ;;  %s7657_s3 = inlined_call_operand.vmem [shape: bf16[64,256], index: 3, kind: input, shape index: {}]   ;;  %s7658_s4 = inlined_call_operand.vmem [shape: f32[1,64], index: 4, kind: input, shape index: {}]   ;;  %s7659_s5 = inlined_call_operand.vmem [shape: f32[1,64], index: 5, kind: input, shape index: {}]   ;;  %s7660_s6 = inlined_call_operand.vmem [shape: f32[1,64], index: 6, kind: input, shape index: {}]   ;;  %s7661_s7 = inlined_call_operand.vmem [shape: f32[1,64], index: 7, kind: input, shape index: {}]   ;;  %s7662_s8 = inlined_call_operand.vmem [shape: f32[1,256], index: 8, kind: input, shape index: {}]   ;;  %s7663_s9 = inlined_call_operand.vmem [shape: f32[1,256], index: 9, kind: input, shape index: {}]   ;;  %s7664_s10 = inlined_call_operand.hbm [shape: f32[2,16,16,256], index: 10, kind: output, shape index: {}]  }
   0x1   :  { %17 = vsyncpa [#allocation4 + $0x1], 0  ;;  %s6317_s13 = smov 0   ;;  %s6319_s14 = smov 0  }
   0x2   :  { %s6321_s15 = smov 0   ;;  %s6323_s16 = smov 0  }
   0x3 LB: > { %s6338_s17 = sadd.s32 4294967295, %s6255_s16   ;;  %s4772_s18 = sadd.s32 4294967294, %s6255_s16   ;;  %s6255_s16 = sphi %s6323_s16, %s7672_s16   ;;  %s6251_s15 = sphi %s6321_s15, %s7671_s15   ;;  %s6247_s14 = sphi %s6319_s14, %s7670_s14   ;;  %s6243_s13 = sphi %s6317_s13, %s7669_s13  }
   0x4   : > { %s6342_s19 = sadd.s32 1, %s6255_s16   ;;  %s245_s20 = sadd.s32 1, %s6251_s15 }
   0x5   : > { %s242_s21 = ssub.s32 %s6255_s16, %s6342_s19  ;;  %p255_p0 = scmp.ne.s32.totalorder %s6251_s15, %s6247_s14 }
   0x6   : > { %p243_p1 = scmp.eq.s32.totalorder %s242_s21, 0  ;;  %p256_p2 = scmp.eq.s32.totalorder %s6338_s17, 1 }
   0x7   : > { %p261_p3 = scmp.ne.s32.totalorder %s6247_s14, %s6243_s13  ;;  %p262_p4 = scmp.eq.s32.totalorder %s4772_s18, 1 }
   0x8   : > { %s6353_s22 = scalar_select %p243_p1, %s6251_s15, %s245_s20  }
   0x9   : > { %p6355_p5 = por %p256_p2, %p255_p0  ;;  %p6359_p6 = por %p262_p4, %p261_p3 }
   0xa   : > { %7665 = sst [smem:[#allocation6_spill]] %s6353_s22  ;;  %p4775_p7 = scmp.ge.s32.totalorder %s6255_s16, 1 }
   0xb   : > { %p315_p8 = scmp.lt.s32.totalorder %s6255_s16, 3 }
   0xd   : > { %p316_p9 = pnand %p4775_p7, %p315_p8 }
   0xe   : > { %v6065_v0 = vld [vmem:[%s7655_s1 + $0x40] sm:$0xff] (!%p316_p9)   ;;  %v6067_v2 = vld [vmem:[%s7655_s1 + $0x48] sm:$0xff] (!%p316_p9)   ;;  %p353_p10 = scmp.lt.s32.totalorder (!%p316_p9), %s6338_s17, 1  ;;  %v6069_v4 = vld [vmem:[%s7655_s1 + $0x50] sm:$0xff] (!%p316_p9)   ;;  %vm950_vm0 = vcmask (!%p316_p9), 523264   ;;  %vm953_vm1 = vcmask (!%p316_p9), 517120  }
   0xf   : > { %319 = sbr.rel (%p316_p9) target bundleno = 1304 (0x518), region = 60  ;;  %v6066_v1 = vld [vmem:[%s7655_s1] sm:$0xff] (!%p316_p9)   ;;  %5106 = vmatprep.subr.bf16.mxu0 (!%p316_p9), %v6065_v0  ;;  %v6068_v3 = vld [vmem:[%s7655_s1 + $0x8] sm:$0xff] (!%p316_p9)   ;;  %v6070_v5 = vld [vmem:[%s7655_s1 + $0x10] sm:$0xff] (!%p316_p9)   ;;  %s350_s22 = sand.u32 (!%p316_p9), 1, %s6247_s14  }
  0x10   : > { %5107 = vmatpush3.bf16.msra.mxu0 (!%p316_p9), %v6066_v1  ;;  %v6071_v6 = vld [vmem:[%s7655_s1 + $0x58] sm:$0xff] (!%p316_p9)   ;;  %v6073_v8 = vld [vmem:[%s7655_s1 + $0x60] sm:$0xff] (!%p316_p9)   ;;  %v6075_v10 = vld [vmem:[%s7655_s1 + $0x68] sm:$0xff] (!%p316_p9)  }
  0x11   : > { %5108 = vmatprep.subr.bf16.mxu0 (!%p316_p9), %v6067_v2  ;;  %v6072_v7 = vld [vmem:[%s7655_s1 + $0x18] sm:$0xff] (!%p316_p9)   ;;  %v6074_v9 = vld [vmem:[%s7655_s1 + $0x20] sm:$0xff] (!%p316_p9)   ;;  %v6076_v14 = vld [vmem:[%s7655_s1 + $0x28] sm:$0xff] (!%p316_p9)  }
  0x12   : > { %v6077_v15 = vld [vmem:[%s7655_s1 + $0x70] sm:$0xff] (!%p316_p9)   ;;  %v6079_v17 = vld [vmem:[%s7655_s1 + $0x78] sm:$0xff] (!%p316_p9)  }
  0x13   : > { %v6078_v16 = vld [vmem:[%s7655_s1 + $0x30] sm:$0xff] (!%p316_p9)   ;;  %v6080_v18 = vld [vmem:[%s7655_s1 + $0x38] sm:$0xff] (!%p316_p9)  }
  0x14   : > { %5109 = vmatpush3.bf16.msra.mxu0 (!%p316_p9), %v6068_v3  ;;  %v6113_v3 = vld [vmem:[%s7656_s2 + $0x20] sm:$0xff] (!%p316_p9)  }
  0x15   : > { %5110 = vmatprep.subr.bf16.mxu0 (!%p316_p9), %v6069_v4 }
  0x16   : > { %s354_s21 = scalar_select %p353_p10, %s6338_s17, 1 }
  0x18   : > { %s5104_s29 = sshll.u32 %s354_s21, 8  ;;  %5111 = vmatpush3.bf16.msra.mxu0 %v6070_v5  ;;  %s6259_s21 = smov [#allocation3]  }
  0x19   : > { %5112 = vmatprep.subr.bf16.mxu0 %v6071_v6  ;;  %s6397_s25 = scalar_lea.vmem %s7654_s0, %s5104_s29  ;;  %v6114_v6 = vld [vmem:[%s7656_s2 + $0x28] sm:$0xff]   ;;  %s4776_s29 = sshll.u32 %s350_s22, 9 }
  0x1a   : > { %v359_v11 = vld [vmem:[%s6397_s25] sm:$0xff]  ;;  %v360_v12 = vld [vmem:[%s6397_s25 + $0x8] sm:$0xff]  ;;  %v361_v19 = vld [vmem:[%s6397_s25 + $0x10] sm:$0xff]  ;;  %s7386_s30 = scalar_lea.vmem [#allocation3], %s4776_s29  ;;  %s6197_s27 = sshll.u32 %s6259_s21, 4  ;;  %s6198_s27 = int_to_ptr.vmem [resolvable:$false] %s6197_s27 }
  0x1b   : > { %v4780_v13 = vcombine.high %v359_v11, %v360_v12  ;;  %v362_v20 = vld [vmem:[%s6397_s25 + $0x18] sm:$0xff]  ;;  %v4779_v21 = vcombine.low %v359_v11, %v360_v12  ;;  %v363_v23 = vld [vmem:[%s6397_s25 + $0x20] sm:$0xff]  ;;  %v364_v24 = vld [vmem:[%s6397_s25 + $0x28] sm:$0xff]  ;;  %s4710_s11 = sshll.u32 %s7386_s30, 4  ;;  %s6199_s28 = scalar_lea.vmem %s6198_s27, 16384  ;;  %s7606_s11 = int_to_ptr.vmem [resolvable:$true] %s4710_s11 }
  0x1c   : > { %5113 = vmatpush3.bf16.msra.mxu0 %v6072_v7  ;;  %v4782_v22 = vcombine.high %v361_v19, %v362_v20  ;;  %v4781_v25 = vcombine.low %v361_v19, %v362_v20  ;;  %v4784_v26 = vcombine.high %v363_v23, %v364_v24  ;;  %v365_v27 = vld [vmem:[%s6397_s25 + $0x30] sm:$0xff]  ;;  %v366_v28 = vld [vmem:[%s6397_s25 + $0x38] sm:$0xff]  ;;  %v4783_v29 = vcombine.low %v363_v23, %v364_v24  ;;  %v367_v31 = vld [vmem:[%s6397_s25 + $0x40] sm:$0xff]  ;;  %s6193_s26 = scalar_lea.vmem %s7606_s11, 8192  ;;  %p6200_p0 = scmp.lt.s32.totalorder %s7606_s11, %s6198_s27 }
  0x1d   : > { %5114 = vmatprep.subr.bf16.mxu0 %v6073_v8  ;;  %711 = vmatprep.mubr.bf16.mxu0 %v4780_v13  ;;  %v4786_v30 = vcombine.high %v365_v27, %v366_v28  ;;  %v368_v32 = vld [vmem:[%s6397_s25 + $0x48] sm:$0xff]  ;;  %v4785_v33 = vcombine.low %v365_v27, %v366_v28  ;;  %v369_v35 = vld [vmem:[%s6397_s25 + $0x50] sm:$0xff]  ;;  %v370_v36 = vld [vmem:[%s6397_s25 + $0x58] sm:$0xff]  ;;  %v6257_v8 = vmov 0.0   ;;  %p6194_p11 = scmp.ne.s32.totalorder %s7606_s11, %s6193_s26  ;;  %p6201_p1 = scmp.lt.s32.totalorder %s6199_s28, %s6193_s26 }
  0x1e   : > { %v4788_v34 = vcombine.high %v367_v31, %v368_v32  ;;  %v4787_v37 = vcombine.low %v367_v31, %v368_v32  ;;  %v4790_v38 = vcombine.high %v369_v35, %v370_v36  ;;  %v371_v39 = vld [vmem:[%s6397_s25 + $0x60] sm:$0xff]  ;;  %v372_v40 = vld [vmem:[%s6397_s25 + $0x68] sm:$0xff]  ;;  %v4789_v41 = vcombine.low %v369_v35, %v370_v36  ;;  %v373_v43 = vld [vmem:[%s6397_s25 + $0x70] sm:$0xff]  ;;  %955 = vst.msk [vmem:[#allocation2 + $0x18] sm:$0xff] %vm950_vm0, %v6257_v8 }
  0x1f   : > { %v4792_v42 = vcombine.high %v371_v39, %v372_v40  ;;  %v374_v44 = vld [vmem:[%s6397_s25 + $0x78] sm:$0xff]  ;;  %v4791_v45 = vcombine.low %v371_v39, %v372_v40  ;;  %v375_v47 = vld [vmem:[%s6397_s25 + $0x80] sm:$0xff]  ;;  %v376_v48 = vld [vmem:[%s6397_s25 + $0x88] sm:$0xff]  ;;  %956 = vst.msk [vmem:[#allocation2 + $0x20] sm:$0xff] %vm950_vm0, %v6257_v8  ;;  %p6195_p12 = pnand %p6194_p11, %p6355_p5  ;;  %p6202_p2 = por %p6201_p1, %p6200_p0 }
  0x20   : > { %5115 = vmatpush3.bf16.msra.mxu0 %v6074_v9  ;;  %v4794_v46 = vcombine.high %v373_v43, %v374_v44  ;;  %v4793_v49 = vcombine.low %v373_v43, %v374_v44  ;;  %v4796_v50 = vcombine.high %v375_v47, %v376_v48  ;;  %v377_v51 = vld [vmem:[%s6397_s25 + $0x90] sm:$0xff]  ;;  %v378_v52 = vld [vmem:[%s6397_s25 + $0x98] sm:$0xff]  ;;  %v4795_v53 = vcombine.low %v375_v47, %v376_v48  ;;  %v379_v55 = vld [vmem:[%s6397_s25 + $0xa0] sm:$0xff] }
  0x21   : > { %5116 = vmatprep.subr.bf16.mxu0 %v6075_v10  ;;  %v4798_v54 = vcombine.high %v377_v51, %v378_v52  ;;  %v380_v56 = vld [vmem:[%s6397_s25 + $0xa8] sm:$0xff]  ;;  %v4797_v57 = vcombine.low %v377_v51, %v378_v52  ;;  %v381_v59 = vld [vmem:[%s6397_s25 + $0xb0] sm:$0xff]  ;;  %v382_v60 = vld [vmem:[%s6397_s25 + $0xb8] sm:$0xff]  ;;  %951 = vst.msk [vmem:[#allocation2] sm:$0xff] %vm950_vm0, %v6257_v8  ;;  %p6196_p13 = pneg %p6195_p12 }
  0x22   : > { %v4800_v58 = vcombine.high %v379_v55, %v380_v56  ;;  %v4799_v61 = vcombine.low %v379_v55, %v380_v56  ;;  %v4802_v62 = vcombine.high %v381_v59, %v382_v60  ;;  %v6445_v63 = vld [vmem:[%s6397_s25 + $0xc0] sm:$0xff]  ;;  %v6448_v0 = vld [vmem:[%s6397_s25 + $0xc8] sm:$0xff]  ;;  %v4801_v1 = vcombine.low %v381_v59, %v382_v60  ;;  %v6456_v4 = vld [vmem:[%s6397_s25 + $0xd0] sm:$0xff]  ;;  %952 = vst.msk [vmem:[#allocation2 + $0x8] sm:$0xff] %vm950_vm0, %v6257_v8 }
  0x23   : > { %v4804_v2 = vcombine.high %v6445_v63, %v6448_v0  ;;  %v6459_v5 = vld [vmem:[%s6397_s25 + $0xd8] sm:$0xff]  ;;  %v4803_v7 = vcombine.low %v6445_v63, %v6448_v0  ;;  %958 = vst.msk [vmem:[#allocation2 + $0x30] sm:$0xff] %vm950_vm0, %v6257_v8  ;;  %959 = vst.msk [vmem:[#allocation2 + $0x38] sm:$0xff] %vm950_vm0, %v6257_v8  ;;  %v6115_v10 = vld [vmem:[%s7656_s2 + $0x30] sm:$0xff]   ;;  %p6203_p3 = pnand %p6202_p2, %p6196_p13 }
  0x24   : > { %5117 = vmatpush3.bf16.msra.mxu0 %v6076_v14  ;;  %961 = vst.msk [vmem:[#allocation2 + $0x48] sm:$0xff] %vm950_vm0, %v6257_v8  ;;  %962 = vst.msk [vmem:[#allocation2 + $0x50] sm:$0xff] %vm950_vm0, %v6257_v8  ;;  %v4806_v9 = vcombine.high %v6456_v4, %v6459_v5  ;;  %v387_v11 = vld [vmem:[%s6397_s25 + $0xe0] sm:$0xff]  ;;  %v388_v12 = vld [vmem:[%s6397_s25 + $0xe8] sm:$0xff]  ;;  %v4805_v14 = vcombine.low %v6456_v4, %v6459_v5 }
  0x25   : > { %5118 = vmatprep.subr.bf16.mxu0 %v6077_v15  ;;  %964 = vst.msk [vmem:[#allocation2 + $0x60] sm:$0xff] %vm950_vm0, %v6257_v8  ;;  %965 = vst.msk [vmem:[#allocation2 + $0x68] sm:$0xff] %vm950_vm0, %v6257_v8  ;;  %v6116_v13 = vld [vmem:[%s7656_s2 + $0x38] sm:$0xff]   ;;  %v4808_v15 = vcombine.high %v387_v11, %v388_v12  ;;  %v6538_v24 = vld [vmem:[%s7656_s2 + $0x40] sm:$0xff]  }
  0x26   : > { %967 = vst.msk [vmem:[#allocation2 + $0x78] sm:$0xff] %vm950_vm0, %v6257_v8  ;;  %968 = vst.msk [vmem:[#allocation2 + $0x80] sm:$0xff] %vm950_vm0, %v6257_v8  ;;  %5758 = vmatprep.subr.bf16.mxu1 %v6538_v24  ;;  %v6559_v27 = vld [vmem:[%s7656_s2 + $0x58] sm:$0xff]   ;;  %v6566_v28 = vld [vmem:[%s7656_s2 + $0x60] sm:$0xff]  }
  0x27   : > { %970 = vst.msk [vmem:[#allocation2 + $0x90] sm:$0xff] %vm950_vm0, %v6257_v8  ;;  %971 = vst.msk [vmem:[#allocation2 + $0x98] sm:$0xff] %vm950_vm0, %v6257_v8  ;;  %5762 = vmatpush3.bf16.msra.mxu1 %v6538_v24  ;;  %v6575_v32 = vld [vmem:[%s7658_s4] ss:$0 sm:$0xff] }
  0x28   : > { %5119 = vmatpush3.bf16.msra.mxu0 %v6078_v16  ;;  %973 = vst.msk [vmem:[#allocation2 + $0xa8] sm:$0xff] %vm950_vm0, %v6257_v8  ;;  %974 = vst.msk [vmem:[#allocation2 + $0xb0] sm:$0xff] %vm950_vm0, %v6257_v8  ;;  %v389_v16 = vld [vmem:[%s6397_s25 + $0xf0] sm:$0xff]  ;;  %v6580_v35 = vld [vmem:[%s7659_s5] ss:$0 sm:$0xff] }
  0x29   : > { %5120 = vmatprep.subr.bf16.mxu0 %v6079_v17  ;;  %976 = vst.msk [vmem:[#allocation2 + $0xc0] sm:$0xff] %vm950_vm0, %v6257_v8  ;;  %977 = vst.msk [vmem:[#allocation2 + $0xc8] sm:$0xff] %vm950_vm0, %v6257_v8  ;;  %v390_v17 = vld [vmem:[%s6397_s25 + $0xf8] sm:$0xff]  ;;  %v1095_v20 = vld [vmem:[#allocation2 + $0x1] sm:$0xff] }
  0x2a   : > { %979 = vst.msk [vmem:[#allocation2 + $0xd8] sm:$0xff] %vm950_vm0, %v6257_v8  ;;  %980 = vst.msk [vmem:[#allocation2 + $0xe0] sm:$0xff] %vm950_vm0, %v6257_v8  ;;  %v4810_v19 = vcombine.high %v389_v16, %v390_v17 }
  0x2b   : > { %982 = vst.msk [vmem:[#allocation2 + $0xf0] sm:$0xff] %vm950_vm0, %v6257_v8  ;;  %983 = vst.msk [vmem:[#allocation2 + $0xf8] sm:$0xff] %vm950_vm0, %v6257_v8 }
  0x2c   : > { %5121 = vmatpush3.bf16.msra.mxu0 %v6080_v18  ;;  %985 = vst.msk [vmem:[#allocation2 + $0x108] sm:$0xff] %vm950_vm0, %v6257_v8  ;;  %986 = vst.msk [vmem:[#allocation2 + $0x110] sm:$0xff] %vm950_vm0, %v6257_v8  ;;  %v4807_v18 = vcombine.low %v387_v11, %v388_v12 }
  0x2d   : > { %5398 = vmatprep.subr.bf16.mxu0 %v6113_v3  ;;  %988 = vst.msk [vmem:[#allocation2 + $0x120] sm:$0xff] %vm950_vm0, %v6257_v8  ;;  %989 = vst.msk [vmem:[#allocation2 + $0x128] sm:$0xff] %vm950_vm0, %v6257_v8 }
  0x2e   : > { %991 = vst.msk [vmem:[#allocation2 + $0x138] sm:$0xff] %vm950_vm0, %v6257_v8  ;;  %992 = vst.msk [vmem:[#allocation2 + $0x140] sm:$0xff] %vm950_vm0, %v6257_v8 }
  0x2f   : > { %712 = vmatmul.mubr.bf16.vlgmr.msra.gmra.mrb[0].mxu0 %v4779_v21  ;;  %994 = vst.msk [vmem:[#allocation2 + $0x150] sm:$0xff] %vm950_vm0, %v6257_v8  ;;  %995 = vst.msk [vmem:[#allocation2 + $0x158] sm:$0xff] %vm950_vm0, %v6257_v8 }
  0x30   : > { %719 = vmatprep.mubr.bf16.mxu0 %v4782_v22  ;;  %5399 = vmatpush3.bf16.msra.mxu0 %v6113_v3  ;;  %997 = vst.msk [vmem:[#allocation2 + $0x168] sm:$0xff] %vm950_vm0, %v6257_v8  ;;  %998 = vst.msk [vmem:[#allocation2 + $0x170] sm:$0xff] %vm950_vm0, %v6257_v8  ;;  %v4809_v22 = vcombine.low %v389_v16, %v390_v17 }
  0x31   : > { %1000 = vst.msk [vmem:[#allocation2 + $0x180] sm:$0xff] %vm950_vm0, %v6257_v8  ;;  %1001 = vst.msk [vmem:[#allocation2 + $0x188] sm:$0xff] %vm950_vm0, %v6257_v8  ;;  %5400 = vmatprep.subr.bf16.mxu0 %v6114_v6 }
  0x32   : > { %1003 = vst.msk [vmem:[#allocation2 + $0x198] sm:$0xff] %vm950_vm0, %v6257_v8  ;;  %1004 = vst.msk [vmem:[#allocation2 + $0x1a0] sm:$0xff] %vm950_vm0, %v6257_v8 }
  0x33   : > { %957 = vst.msk [vmem:[#allocation2 + $0x28] sm:$0x3] %vm953_vm1, %v6257_v8  ;;  %954 = vst.msk [vmem:[#allocation2 + $0x10] sm:$0x3] %vm953_vm1, %v6257_v8 }
  0x34   : > { %960 = vst.msk [vmem:[#allocation2 + $0x40] sm:$0x3] %vm953_vm1, %v6257_v8  ;;  %963 = vst.msk [vmem:[#allocation2 + $0x58] sm:$0x3] %vm953_vm1, %v6257_v8  ;;  %5401 = vmatpush3.bf16.msra.mxu0 %v6114_v6 }
  0x35   : > { %966 = vst.msk [vmem:[#allocation2 + $0x70] sm:$0x3] %vm953_vm1, %v6257_v8  ;;  %969 = vst.msk [vmem:[#allocation2 + $0x88] sm:$0x3] %vm953_vm1, %v6257_v8  ;;  %5402 = vmatprep.subr.bf16.mxu0 %v6115_v10 }
  0x36   : > { %972 = vst.msk [vmem:[#allocation2 + $0xa0] sm:$0x3] %vm953_vm1, %v6257_v8  ;;  %975 = vst.msk [vmem:[#allocation2 + $0xb8] sm:$0x3] %vm953_vm1, %v6257_v8 }
  0x37   : > { %720 = vmatmul.mubr.bf16.gmra.mrb[4].mxu0 %v4781_v25  ;;  %978 = vst.msk [vmem:[#allocation2 + $0xd0] sm:$0x3] %vm953_vm1, %v6257_v8  ;;  %981 = vst.msk [vmem:[#allocation2 + $0xe8] sm:$0x3] %vm953_vm1, %v6257_v8  ;;  %v6545_v25 = vld [vmem:[%s7656_s2 + $0x48] sm:$0xff]  }
  0x38   : > { %727 = vmatprep.mubr.bf16.mxu0 %v4784_v26  ;;  %984 = vst.msk [vmem:[#allocation2 + $0x100] sm:$0x3] %vm953_vm1, %v6257_v8  ;;  %987 = vst.msk [vmem:[#allocation2 + $0x118] sm:$0x3] %vm953_vm1, %v6257_v8  ;;  %5403 = vmatpush3.bf16.msra.mxu0 %v6115_v10  ;;  %v6552_v26 = vld [vmem:[%s7656_s2 + $0x50] sm:$0xff]  }
  0x39   : > { %990 = vst.msk [vmem:[#allocation2 + $0x130] sm:$0x3] %vm953_vm1, %v6257_v8  ;;  %993 = vst.msk [vmem:[#allocation2 + $0x148] sm:$0x3] %vm953_vm1, %v6257_v8  ;;  %5404 = vmatprep.subr.bf16.mxu0 %v6116_v13  ;;  %5759 = vmatprep.subr.bf16.mxu1 %v6545_v25 }
  0x3a   : > { %996 = vst.msk [vmem:[#allocation2 + $0x160] sm:$0x3] %vm953_vm1, %v6257_v8  ;;  %999 = vst.msk [vmem:[#allocation2 + $0x178] sm:$0x3] %vm953_vm1, %v6257_v8  ;;  %v1096_v21 = vld [vmem:[#allocation2 + $0x9] sm:$0xff]  ;;  %5763 = vmatpush3.bf16.msra.mxu1 %v6545_v25 }
  0x3b   : > { %1002 = vst.msk [vmem:[#allocation2 + $0x190] sm:$0x3] %vm953_vm1, %v6257_v8  ;;  %1005 = vst.msk [vmem:[#allocation2 + $0x1a8] sm:$0x3] %vm953_vm1, %v6257_v8  ;;  %v1127_v23 = vpack.c.bf16 %v1096_v21, %v1095_v20  ;;  %5760 = vmatprep.subr.bf16.mxu1 %v6552_v26  ;;  %v6127_v8 = vld [vmem:[%s7656_s2 + $0x10] sm:$0xff]  }
  0x3c   : > { %5405 = vmatpush3.bf16.msra.mxu0 %v6116_v13 }
  0x3e   : > { %5764 = vmatpush3.bf16.msra.mxu1 %v6552_v26 }
  0x3f   : > { %728 = vmatmul.mubr.bf16.gmra.mrb[8].mxu0 %v4783_v29  ;;  %5761 = vmatprep.subr.bf16.mxu1 %v6559_v27  ;;  %v6124_v29 = vld [vmem:[%s7656_s2] sm:$0xff]  }
  0x40   : > { %735 = vmatprep.mubr.bf16.mxu0 %v4786_v30  ;;  %5438 = vmatprep.subr.bf16.mxu0 %v6124_v29 }
  0x42   : > { %5765 = vmatpush3.bf16.msra.mxu1 %v6559_v27 }
  0x43   : > { %5518 = vmatprep.subr.bf16.mxu1 %v6566_v28 }
  0x47   : > { %736 = vmatmul.mubr.bf16.gmra.mrb[12].mxu0 %v4785_v33 }
  0x48   : > { %743 = vmatprep.mubr.bf16.mxu0 %v4788_v34 }
  0x4f   : > { %744 = vmatmul.mubr.bf16.gmra.mrb[16].mxu0 %v4787_v37 }
  0x50   : > { %751 = vmatprep.mubr.bf16.mxu0 %v4790_v38 }
  0x57   : > { %752 = vmatmul.mubr.bf16.gmra.mrb[20].mxu0 %v4789_v41 }
  0x58   : > { %759 = vmatprep.mubr.bf16.mxu0 %v4792_v42 }
  0x5f   : > { %760 = vmatmul.mubr.bf16.gmra.mrb[24].mxu0 %v4791_v45 }
  0x60   : > { %767 = vmatprep.mubr.bf16.mxu0 %v4794_v46 }
  0x67   : > { %768 = vmatmul.mubr.bf16.gmra.mrb[28].mxu0 %v4793_v49 }
  0x68   : > { %775 = vmatprep.mubr.bf16.mxu0 %v4796_v50 }
  0x6f   : > { %776 = vmatmul.mubr.bf16.gmra.mrb[32].mxu0 %v4795_v53 }
  0x70   : > { %783 = vmatprep.mubr.bf16.mxu0 %v4798_v54 }
  0x77   : > { %784 = vmatmul.mubr.bf16.gmra.mrb[36].mxu0 %v4797_v57 }
  0x78   : > { %791 = vmatprep.mubr.bf16.mxu0 %v4800_v58 }
  0x7f   : > { %792 = vmatmul.mubr.bf16.gmra.mrb[40].mxu0 %v4799_v61 }
  0x80   : > { %799 = vmatprep.mubr.bf16.mxu0 %v4802_v62 }
  0x87   : > { %800 = vmatmul.mubr.bf16.gmra.mrb[44].mxu0 %v4801_v1 }
  0x88   : > { %807 = vmatprep.mubr.bf16.mxu0 %v4804_v2  ;;  %v6125_v2 = vld [vmem:[%s7656_s2 + $0x8] sm:$0xff]  }
  0x8f   : > { %808 = vmatmul.mubr.bf16.gmra.mrb[48].mxu0 %v4803_v7 }
  0x90   : > { %815 = vmatprep.mubr.bf16.mxu0 %v4806_v9 }
  0x97   : > { %816 = vmatmul.mubr.bf16.gmra.mrb[52].mxu0 %v4805_v14 }
  0x98   : > { %823 = vmatprep.mubr.bf16.mxu0 %v4808_v15 }
  0x9f   : > { %824 = vmatmul.mubr.bf16.gmra.mrb[56].mxu0 %v4807_v18 }
  0xa0   : > { %831 = vmatprep.mubr.bf16.mxu0 %v4810_v19  ;;  %v6128_v19 = vld [vmem:[%s7656_s2 + $0x18] sm:$0xff]  }
  0xa7   : > { %832 = vmatmul.mubr.bf16.gmra.mrb[60].mxu0 %v4809_v22 }
  0xa8   : > { %5406 = vmatprep.mubr.msk.bf16.mxu0 %vm950_vm0, %v1127_v23 }
 0x102   : > { %v5122_v30 = vpop.f32.mrb[0].mxu0 }
 0x103   : > { %v5123_v31 = vpop.f32.mrb[1].mxu0 }
 0x104   : > { %v5124_v33 = vadd.f32 %v5123_v31, %v5122_v30  ;;  %v5125_v34 = vpop.f32.mrb[2].mxu0 }
 0x105   : > { %v5126_v36 = vpop.f32.mrb[3].mxu0 }
 0x106   : > { %v847_v37 = vmul.f32 %v5124_v33, %v6575_v32  ;;  %v5127_v38 = vadd.f32 %v5126_v36, %v5125_v34 }
 0x108   : > { %v886_v39 = vadd.f32 %v6580_v35, %v847_v37  ;;  %v848_v40 = vmul.f32 %v5127_v38, %v6575_v32 }
 0x10a   : > { %v918_v41 = vmax.f32 %v886_v39, 0.0  ;;  %v887_v42 = vadd.f32 %v6580_v35, %v848_v40  ;;  %v5128_v43 = vpop.f32.mrb[4].mxu0 }
 0x10b   : > { %v5129_v44 = vpop.f32.mrb[5].mxu0 }
 0x10c   : > { %1007 = vst.msk [vmem:[#allocation2 + $0x19] sm:$0xff] %vm950_vm0, %v918_v41  ;;  %v919_v45 = vmax.f32 %v887_v42, 0.0  ;;  %v5130_v46 = vadd.f32 %v5129_v44, %v5128_v43  ;;  %v5131_v47 = vpop.f32.mrb[6].mxu0 }
 0x10d   : > { %v5132_v48 = vpop.f32.mrb[7].mxu0 }
 0x10e   : > { %1008 = vst.msk [vmem:[#allocation2 + $0x21] sm:$0xff] %vm950_vm0, %v919_v45  ;;  %v849_v49 = vmul.f32 %v5130_v46, %v6575_v32  ;;  %v5133_v50 = vadd.f32 %v5132_v48, %v5131_v47 }
 0x110   : > { %v888_v51 = vadd.f32 %v6580_v35, %v849_v49  ;;  %v850_v52 = vmul.f32 %v5133_v50, %v6575_v32 }
 0x112   : > { %v920_v53 = vmax.f32 %v888_v51, 0.0  ;;  %v889_v54 = vadd.f32 %v6580_v35, %v850_v52  ;;  %v5134_v55 = vpop.f32.mrb[8].mxu0 }
 0x113   : > { %v5135_v56 = vpop.f32.mrb[9].mxu0  ;;  %v1097_v61 = vld [vmem:[#allocation2 + $0x19] sm:$0xff] }
 0x114   : > { %1009 = vst.msk [vmem:[#allocation2 + $0x31] sm:$0xff] %vm950_vm0, %v920_v53  ;;  %v921_v57 = vmax.f32 %v889_v54, 0.0  ;;  %v5136_v58 = vadd.f32 %v5135_v56, %v5134_v55  ;;  %v5137_v59 = vpop.f32.mrb[10].mxu0 }
 0x115   : > { %v5138_v60 = vpop.f32.mrb[11].mxu0  ;;  %v1098_v62 = vld [vmem:[#allocation2 + $0x21] sm:$0xff] }
 0x116   : > { %1010 = vst.msk [vmem:[#allocation2 + $0x39] sm:$0xff] %vm950_vm0, %v921_v57  ;;  %v851_v63 = vmul.f32 %v5136_v58, %v6575_v32  ;;  %v5139_v0 = vadd.f32 %v5138_v60, %v5137_v59  ;;  %v6595_v1 = vpack.c.bf16 %v1098_v62, %v1097_v61 }
 0x118   : > { %v890_v3 = vadd.f32 %v6580_v35, %v851_v63  ;;  %v852_v4 = vmul.f32 %v5139_v0, %v6575_v32  ;;  %5407 = vmatmul.mubr.msk.bf16.vlgmr.msra.gmra.mrb[64].mxu0 %vm950_vm0, %v6595_v1 }
 0x119   : > { %5439 = vmatpush3.bf16.msra.mxu0 %v6124_v29 }
 0x11a   : > { %v922_v5 = vmax.f32 %v890_v3, 0.0  ;;  %v891_v6 = vadd.f32 %v6580_v35, %v852_v4  ;;  %v5140_v7 = vpop.f32.mrb[12].mxu0  ;;  %5440 = vmatprep.subr.bf16.mxu0 %v6125_v2 }
 0x11b   : > { %v5141_v9 = vpop.f32.mrb[13].mxu0  ;;  %v1099_v14 = vld [vmem:[#allocation2 + $0x31] sm:$0xff] }
 0x11c   : > { %1011 = vst.msk [vmem:[#allocation2 + $0x49] sm:$0xff] %vm950_vm0, %v922_v5  ;;  %v923_v10 = vmax.f32 %v891_v6, 0.0  ;;  %v5142_v11 = vadd.f32 %v5141_v9, %v5140_v7  ;;  %v5143_v12 = vpop.f32.mrb[14].mxu0 }
 0x11d   : > { %v5144_v13 = vpop.f32.mrb[15].mxu0  ;;  %v1100_v15 = vld [vmem:[#allocation2 + $0x39] sm:$0xff]  ;;  %5441 = vmatpush3.bf16.msra.mxu0 %v6125_v2 }
 0x11e   : > { %1012 = vst.msk [vmem:[#allocation2 + $0x51] sm:$0xff] %vm950_vm0, %v923_v10  ;;  %v853_v16 = vmul.f32 %v5142_v11, %v6575_v32  ;;  %v5145_v17 = vadd.f32 %v5144_v13, %v5143_v12  ;;  %v6611_v18 = vpack.c.bf16 %v1100_v15, %v1099_v14  ;;  %5442 = vmatprep.subr.bf16.mxu0 %v6127_v8 }
 0x120   : > { %v892_v20 = vadd.f32 %v6580_v35, %v853_v16  ;;  %v854_v21 = vmul.f32 %v5145_v17, %v6575_v32  ;;  %5410 = vmatprep.mubr.msk.bf16.mxu0 %vm950_vm0, %v6611_v18 }
 0x121   : > { %5443 = vmatpush3.bf16.msra.mxu0 %v6127_v8 }
 0x122   : > { %v924_v22 = vmax.f32 %v892_v20, 0.0  ;;  %v893_v23 = vadd.f32 %v6580_v35, %v854_v21  ;;  %v5146_v29 = vpop.f32.mrb[16].mxu0  ;;  %5444 = vmatprep.subr.bf16.mxu0 %v6128_v19 }
 0x123   : > { %v5147_v30 = vpop.f32.mrb[17].mxu0  ;;  %v1101_v37 = vld [vmem:[#allocation2 + $0x49] sm:$0xff] }
 0x124   : > { %1013 = vst.msk [vmem:[#allocation2 + $0x61] sm:$0xff] %vm950_vm0, %v924_v22  ;;  %v925_v31 = vmax.f32 %v893_v23, 0.0  ;;  %v5148_v33 = vadd.f32 %v5147_v30, %v5146_v29  ;;  %v5149_v34 = vpop.f32.mrb[18].mxu0 }
 0x125   : > { %v5150_v36 = vpop.f32.mrb[19].mxu0  ;;  %v1102_v38 = vld [vmem:[#allocation2 + $0x51] sm:$0xff]  ;;  %5445 = vmatpush3.bf16.msra.mxu0 %v6128_v19 }
 0x126   : > { %1014 = vst.msk [vmem:[#allocation2 + $0x69] sm:$0xff] %vm950_vm0, %v925_v31  ;;  %v855_v39 = vmul.f32 %v5148_v33, %v6575_v32  ;;  %v5151_v40 = vadd.f32 %v5150_v36, %v5149_v34  ;;  %v6624_v41 = vpack.c.bf16 %v1102_v38, %v1101_v37  ;;  %5478 = vmatprep.subr.bf16.mxu0 %v6538_v24 }
 0x128   : > { %v894_v42 = vadd.f32 %v6580_v35, %v855_v39  ;;  %v856_v43 = vmul.f32 %v5151_v40, %v6575_v32  ;;  %5411 = vmatmul.mubr.msk.bf16.gmra.mrb[68].mxu0 %vm950_vm0, %v6624_v41 }
 0x12a   : > { %v926_v44 = vmax.f32 %v894_v42, 0.0  ;;  %v895_v45 = vadd.f32 %v6580_v35, %v856_v43  ;;  %v5152_v46 = vpop.f32.mrb[20].mxu0 }
 0x12b   : > { %v5153_v47 = vpop.f32.mrb[21].mxu0  ;;  %v1103_v52 = vld [vmem:[#allocation2 + $0x61] sm:$0xff] }
 0x12c   : > { %1015 = vst.msk [vmem:[#allocation2 + $0x79] sm:$0xff] %vm950_vm0, %v926_v44  ;;  %v927_v48 = vmax.f32 %v895_v45, 0.0  ;;  %v5154_v49 = vadd.f32 %v5153_v47, %v5152_v46  ;;  %v5155_v50 = vpop.f32.mrb[22].mxu0 }
 0x12d   : > { %v5156_v51 = vpop.f32.mrb[23].mxu0  ;;  %v1104_v53 = vld [vmem:[#allocation2 + $0x69] sm:$0xff] }
 0x12e   : > { %1016 = vst.msk [vmem:[#allocation2 + $0x81] sm:$0xff] %vm950_vm0, %v927_v48  ;;  %v857_v54 = vmul.f32 %v5154_v49, %v6575_v32  ;;  %v5157_v55 = vadd.f32 %v5156_v51, %v5155_v50  ;;  %v6635_v56 = vpack.c.bf16 %v1104_v53, %v1103_v52 }
 0x130   : > { %v896_v57 = vadd.f32 %v6580_v35, %v857_v54  ;;  %v858_v58 = vmul.f32 %v5157_v55, %v6575_v32  ;;  %5414 = vmatprep.mubr.msk.bf16.mxu0 %vm950_vm0, %v6635_v56  ;;  %v6122_v54 = vld [vmem:[%s7656_s2 + $0x68] sm:$0xff]  }
 0x132   : > { %v928_v59 = vmax.f32 %v896_v57, 0.0  ;;  %v897_v60 = vadd.f32 %v6580_v35, %v858_v58  ;;  %v5158_v61 = vpop.f32.mrb[24].mxu0 }
 0x133   : > { %v5159_v62 = vpop.f32.mrb[25].mxu0  ;;  %v1105_v4 = vld [vmem:[#allocation2 + $0x79] sm:$0xff] }
 0x134   : > { %1017 = vst.msk [vmem:[#allocation2 + $0x91] sm:$0xff] %vm950_vm0, %v928_v59  ;;  %v929_v63 = vmax.f32 %v897_v60, 0.0  ;;  %v5160_v0 = vadd.f32 %v5159_v62, %v5158_v61  ;;  %v5161_v2 = vpop.f32.mrb[26].mxu0  ;;  %v6123_v61 = vld [vmem:[%s7656_s2 + $0x70] sm:$0xff]  }
 0x135   : > { %v5162_v3 = vpop.f32.mrb[27].mxu0  ;;  %v1106_v5 = vld [vmem:[#allocation2 + $0x81] sm:$0xff] }
 0x136   : > { %1018 = vst.msk [vmem:[#allocation2 + $0x99] sm:$0xff] %vm950_vm0, %v929_v63  ;;  %v859_v6 = vmul.f32 %v5160_v0, %v6575_v32  ;;  %v5163_v7 = vadd.f32 %v5162_v3, %v5161_v2  ;;  %v6645_v8 = vpack.c.bf16 %v1106_v5, %v1105_v4 }
 0x138   : > { %v898_v9 = vadd.f32 %v6580_v35, %v859_v6  ;;  %v860_v10 = vmul.f32 %v5163_v7, %v6575_v32  ;;  %5415 = vmatmul.mubr.msk.bf16.gmra.mrb[72].mxu0 %vm950_vm0, %v6645_v8 }
 0x13a   : > { %v930_v11 = vmax.f32 %v898_v9, 0.0  ;;  %v899_v12 = vadd.f32 %v6580_v35, %v860_v10  ;;  %v5164_v13 = vpop.f32.mrb[28].mxu0 }
 0x13b   : > { %v5165_v14 = vpop.f32.mrb[29].mxu0  ;;  %v1107_v19 = vld [vmem:[#allocation2 + $0x91] sm:$0xff] }
 0x13c   : > { %1019 = vst.msk [vmem:[#allocation2 + $0xa9] sm:$0xff] %vm950_vm0, %v930_v11  ;;  %v931_v15 = vmax.f32 %v899_v12, 0.0  ;;  %v5166_v16 = vadd.f32 %v5165_v14, %v5164_v13  ;;  %v5167_v17 = vpop.f32.mrb[30].mxu0  ;;  %v6126_v12 = vld [vmem:[%s7656_s2 + $0x78] sm:$0xff]  }
 0x13d   : > { %v5168_v20 = vpop.f32.mrb[31].mxu0  ;;  %v1108_v21 = vld [vmem:[#allocation2 + $0x99] sm:$0xff] }
 0x13e   : > { %v1630_v22 = vld [vmem:[#allocation2 + $0x92] sm:$0xff]  ;;  %v1631_v23 = vld [vmem:[#allocation2 + $0x9a] sm:$0xff]  ;;  %1020 = vst.msk [vmem:[#allocation2 + $0xb1] sm:$0xff] %vm950_vm0, %v931_v15  ;;  %v861_v29 = vmul.f32 %v5166_v16, %v6575_v32  ;;  %v5169_v30 = vadd.f32 %v5168_v20, %v5167_v17  ;;  %v6655_v31 = vpack.c.bf16 %v1108_v21, %v1107_v19 }
 0x13f   : > { %v1656_v33 = vpack.c.bf16 %v1631_v23, %v1630_v22  ;;  %v6704_v19 = vld [vmem:[%s7656_s2 + $0x80] sm:$0xff]  }
 0x140   : > { %v900_v34 = vadd.f32 %v6580_v35, %v861_v29  ;;  %v862_v36 = vmul.f32 %v5169_v30, %v6575_v32  ;;  %5418 = vmatprep.mubr.msk.bf16.mxu0 %vm950_vm0, %v6655_v31 }
 0x141   : > { %5498 = vmatprep.mubr.msk.bf16.mxu1 %vm950_vm0, %v1656_v33 }
 0x142   : > { %v932_v37 = vmax.f32 %v900_v34, 0.0  ;;  %v901_v38 = vadd.f32 %v6580_v35, %v862_v36  ;;  %v5170_v39 = vpop.f32.mrb[32].mxu0 }
 0x143   : > { %v5171_v40 = vpop.f32.mrb[33].mxu0  ;;  %v1109_v45 = vld [vmem:[#allocation2 + $0xa9] sm:$0xff] }
 0x144   : > { %1021 = vst.msk [vmem:[#allocation2 + $0xc1] sm:$0xff] %vm950_vm0, %v932_v37  ;;  %v933_v42 = vmax.f32 %v901_v38, 0.0  ;;  %v5172_v43 = vadd.f32 %v5171_v40, %v5170_v39  ;;  %v5173_v44 = vpop.f32.mrb[34].mxu0 }
 0x145   : > { %v5174_v46 = vpop.f32.mrb[35].mxu0  ;;  %v1110_v47 = vld [vmem:[#allocation2 + $0xb1] sm:$0xff] }
 0x146   : > { %v1632_v48 = vld [vmem:[#allocation2 + $0xaa] sm:$0xff]  ;;  %v1633_v49 = vld [vmem:[#allocation2 + $0xb2] sm:$0xff]  ;;  %1022 = vst.msk [vmem:[#allocation2 + $0xc9] sm:$0xff] %vm950_vm0, %v933_v42  ;;  %v863_v50 = vmul.f32 %v5172_v43, %v6575_v32  ;;  %v5175_v51 = vadd.f32 %v5174_v46, %v5173_v44  ;;  %v6666_v52 = vpack.c.bf16 %v1110_v47, %v1109_v45 }
 0x147   : > { %v6668_v53 = vpack.c.bf16 %v1633_v49, %v1632_v48 }
 0x148   : > { %v902_v55 = vadd.f32 %v6580_v35, %v863_v50  ;;  %v864_v57 = vmul.f32 %v5175_v51, %v6575_v32  ;;  %5419 = vmatmul.mubr.msk.bf16.gmra.mrb[76].mxu0 %vm950_vm0, %v6666_v52 }
 0x149   : > { %5499 = vmatmul.mubr.msk.bf16.vlgmr.msra.gmra.mrb[0].mxu1 %vm950_vm0, %v6668_v53 }
 0x14a   : > { %5519 = vmatpush3.bf16.msra.mxu1 %v6566_v28  ;;  %v934_v58 = vmax.f32 %v902_v55, 0.0  ;;  %v903_v59 = vadd.f32 %v6580_v35, %v864_v57  ;;  %v5176_v60 = vpop.f32.mrb[36].mxu0 }
 0x14b   : > { %5520 = vmatprep.subr.bf16.mxu1 %v6122_v54  ;;  %v5177_v62 = vpop.f32.mrb[37].mxu0  ;;  %v1111_v3 = vld [vmem:[#allocation2 + $0xc1] sm:$0xff] }
 0x14c   : > { %1023 = vst.msk [vmem:[#allocation2 + $0xd9] sm:$0xff] %vm950_vm0, %v934_v58  ;;  %v935_v63 = vmax.f32 %v903_v59, 0.0  ;;  %v5178_v0 = vadd.f32 %v5177_v62, %v5176_v60  ;;  %v5179_v2 = vpop.f32.mrb[38].mxu0 }
 0x14d   : > { %v5180_v4 = vpop.f32.mrb[39].mxu0  ;;  %v1112_v5 = vld [vmem:[#allocation2 + $0xc9] sm:$0xff] }
 0x14e   : > { %v1634_v6 = vld [vmem:[#allocation2 + $0xc2] sm:$0xff]  ;;  %v1635_v28 = vld [vmem:[#allocation2 + $0xca] sm:$0xff]  ;;  %5521 = vmatpush3.bf16.msra.mxu1 %v6122_v54  ;;  %1024 = vst.msk [vmem:[#allocation2 + $0xe1] sm:$0xff] %vm950_vm0, %v935_v63  ;;  %v865_v7 = vmul.f32 %v5178_v0, %v6575_v32  ;;  %v5181_v9 = vadd.f32 %v5180_v4, %v5179_v2  ;;  %v6687_v10 = vpack.c.bf16 %v1112_v5, %v1111_v3 }
 0x14f   : > { %v6689_v11 = vpack.c.bf16 %v1635_v28, %v1634_v6  ;;  %5522 = vmatprep.subr.bf16.mxu1 %v6123_v61 }
 0x150   : > { %v904_v13 = vadd.f32 %v6580_v35, %v865_v7  ;;  %v866_v14 = vmul.f32 %v5181_v9, %v6575_v32  ;;  %5422 = vmatprep.mubr.msk.bf16.mxu0 %vm950_vm0, %v6687_v10 }
 0x151   : > { %5502 = vmatprep.mubr.msk.bf16.mxu1 %vm950_vm0, %v6689_v11 }
 0x152   : > { %5523 = vmatpush3.bf16.msra.mxu1 %v6123_v61  ;;  %v936_v15 = vmax.f32 %v904_v13, 0.0  ;;  %v905_v16 = vadd.f32 %v6580_v35, %v866_v14  ;;  %v5182_v17 = vpop.f32.mrb[40].mxu0 }
 0x153   : > { %5524 = vmatprep.subr.bf16.mxu1 %v6126_v12  ;;  %v5183_v20 = vpop.f32.mrb[41].mxu0  ;;  %v1113_v29 = vld [vmem:[#allocation2 + $0xd9] sm:$0xff] }
 0x154   : > { %1025 = vst.msk [vmem:[#allocation2 + $0xf1] sm:$0xff] %vm950_vm0, %v936_v15  ;;  %v937_v21 = vmax.f32 %v905_v16, 0.0  ;;  %v5184_v22 = vadd.f32 %v5183_v20, %v5182_v17  ;;  %v5185_v23 = vpop.f32.mrb[42].mxu0 }
 0x155   : > { %v5186_v30 = vpop.f32.mrb[43].mxu0  ;;  %v1114_v33 = vld [vmem:[#allocation2 + $0xe1] sm:$0xff] }
 0x156   : > { %v1636_v34 = vld [vmem:[#allocation2 + $0xda] sm:$0xff]  ;;  %v1637_v36 = vld [vmem:[#allocation2 + $0xe2] sm:$0xff]  ;;  %5525 = vmatpush3.bf16.msra.mxu1 %v6126_v12  ;;  %1026 = vst.msk [vmem:[#allocation2 + $0xf9] sm:$0xff] %vm950_vm0, %v937_v21  ;;  %v867_v37 = vmul.f32 %v5184_v22, %v6575_v32  ;;  %v5187_v38 = vadd.f32 %v5186_v30, %v5185_v23  ;;  %v6709_v39 = vpack.c.bf16 %v1114_v33, %v1113_v29 }
 0x157   : > { %v6711_v40 = vpack.c.bf16 %v1637_v36, %v1636_v34  ;;  %5558 = vmatprep.subr.bf16.mxu1 %v6704_v19 }
 0x158   : > { %v906_v42 = vadd.f32 %v6580_v35, %v867_v37  ;;  %v868_v43 = vmul.f32 %v5187_v38, %v6575_v32  ;;  %5423 = vmatmul.mubr.msk.bf16.gmra.mrb[80].mxu0 %vm950_vm0, %v6709_v39 }
 0x159   : > { %5503 = vmatmul.mubr.msk.bf16.gmra.mrb[4].mxu1 %vm950_vm0, %v6711_v40 }
 0x15a   : > { %v938_v44 = vmax.f32 %v906_v42, 0.0  ;;  %v907_v45 = vadd.f32 %v6580_v35, %v868_v43  ;;  %v5188_v46 = vpop.f32.mrb[44].mxu0 }
 0x15b   : > { %v5189_v47 = vpop.f32.mrb[45].mxu0  ;;  %v1115_v51 = vld [vmem:[#allocation2 + $0xf1] sm:$0xff] }
 0x15c   : > { %1027 = vst.msk [vmem:[#allocation2 + $0x109] sm:$0xff] %vm950_vm0, %v938_v44  ;;  %v939_v48 = vmax.f32 %v907_v45, 0.0  ;;  %v5190_v49 = vadd.f32 %v5189_v47, %v5188_v46  ;;  %v5191_v50 = vpop.f32.mrb[46].mxu0 }
 0x15d   : > { %v5192_v54 = vpop.f32.mrb[47].mxu0  ;;  %v1116_v55 = vld [vmem:[#allocation2 + $0xf9] sm:$0xff] }
 0x15e   : > { %v1638_v57 = vld [vmem:[#allocation2 + $0xf2] sm:$0xff]  ;;  %v1639_v58 = vld [vmem:[#allocation2 + $0xfa] sm:$0xff]  ;;  %1028 = vst.msk [vmem:[#allocation2 + $0x111] sm:$0xff] %vm950_vm0, %v939_v48  ;;  %v869_v59 = vmul.f32 %v5190_v49, %v6575_v32  ;;  %v5193_v60 = vadd.f32 %v5192_v54, %v5191_v50  ;;  %v6724_v61 = vpack.c.bf16 %v1116_v55, %v1115_v51 }
 0x15f   : > { %v6726_v62 = vpack.c.bf16 %v1639_v58, %v1638_v57 }
 0x160   : > { %v908_v63 = vadd.f32 %v6580_v35, %v869_v59  ;;  %v870_v0 = vmul.f32 %v5193_v60, %v6575_v32  ;;  %5426 = vmatprep.mubr.msk.bf16.mxu0 %vm950_vm0, %v6724_v61 }
 0x161   : > { %5506 = vmatprep.mubr.msk.bf16.mxu1 %vm950_vm0, %v6726_v62 }
 0x162   : > { %v940_v2 = vmax.f32 %v908_v63, 0.0  ;;  %v909_v3 = vadd.f32 %v6580_v35, %v870_v0  ;;  %v5194_v4 = vpop.f32.mrb[48].mxu0 }
 0x163   : > { %v5195_v5 = vpop.f32.mrb[49].mxu0  ;;  %v1117_v9 = vld [vmem:[#allocation2 + $0x109] sm:$0xff] }
 0x164   : > { %1029 = vst.msk [vmem:[#allocation2 + $0x121] sm:$0xff] %vm950_vm0, %v940_v2  ;;  %v941_v6 = vmax.f32 %v909_v3, 0.0  ;;  %v5196_v28 = vadd.f32 %v5195_v5, %v5194_v4  ;;  %v5197_v7 = vpop.f32.mrb[50].mxu0 }
 0x165   : > { %v5198_v12 = vpop.f32.mrb[51].mxu0  ;;  %v1118_v13 = vld [vmem:[#allocation2 + $0x111] sm:$0xff] }
 0x166   : > { %v1640_v14 = vld [vmem:[#allocation2 + $0x10a] sm:$0xff]  ;;  %v1641_v15 = vld [vmem:[#allocation2 + $0x112] sm:$0xff]  ;;  %1030 = vst.msk [vmem:[#allocation2 + $0x129] sm:$0xff] %vm950_vm0, %v941_v6  ;;  %v871_v16 = vmul.f32 %v5196_v28, %v6575_v32  ;;  %v5199_v17 = vadd.f32 %v5198_v12, %v5197_v7  ;;  %v6738_v20 = vpack.c.bf16 %v1118_v13, %v1117_v9 }
 0x167   : > { %v6740_v21 = vpack.c.bf16 %v1641_v15, %v1640_v14 }
 0x168   : > { %v910_v22 = vadd.f32 %v6580_v35, %v871_v16  ;;  %v872_v23 = vmul.f32 %v5199_v17, %v6575_v32  ;;  %5427 = vmatmul.mubr.msk.bf16.gmra.mrb[84].mxu0 %vm950_vm0, %v6738_v20 }
 0x169   : > { %5507 = vmatmul.mubr.msk.bf16.gmra.mrb[8].mxu1 %vm950_vm0, %v6740_v21 }
 0x16a   : > { %v942_v29 = vmax.f32 %v910_v22, 0.0  ;;  %v911_v30 = vadd.f32 %v6580_v35, %v872_v23  ;;  %v5200_v33 = vpop.f32.mrb[52].mxu0 }
 0x16b   : > { %v5201_v34 = vpop.f32.mrb[53].mxu0  ;;  %v1119_v42 = vld [vmem:[#allocation2 + $0x121] sm:$0xff] }
 0x16c   : > { %1031 = vst.msk [vmem:[#allocation2 + $0x139] sm:$0xff] %vm950_vm0, %v942_v29  ;;  %v943_v36 = vmax.f32 %v911_v30, 0.0  ;;  %v5202_v37 = vadd.f32 %v5201_v34, %v5200_v33  ;;  %v5203_v38 = vpop.f32.mrb[54].mxu0 }
 0x16d   : > { %v5204_v43 = vpop.f32.mrb[55].mxu0  ;;  %v1120_v44 = vld [vmem:[#allocation2 + $0x129] sm:$0xff] }
 0x16e   : > { %v1642_v45 = vld [vmem:[#allocation2 + $0x122] sm:$0xff]  ;;  %v1643_v46 = vld [vmem:[#allocation2 + $0x12a] sm:$0xff]  ;;  %1032 = vst.msk [vmem:[#allocation2 + $0x141] sm:$0xff] %vm950_vm0, %v943_v36  ;;  %v873_v47 = vmul.f32 %v5202_v37, %v6575_v32  ;;  %v5205_v48 = vadd.f32 %v5204_v43, %v5203_v38  ;;  %v6752_v49 = vpack.c.bf16 %v1120_v44, %v1119_v42 }
 0x16f   : > { %v6754_v50 = vpack.c.bf16 %v1643_v46, %v1642_v45 }
 0x170   : > { %v912_v51 = vadd.f32 %v6580_v35, %v873_v47  ;;  %v874_v54 = vmul.f32 %v5205_v48, %v6575_v32  ;;  %5430 = vmatprep.mubr.msk.bf16.mxu0 %vm950_vm0, %v6752_v49  ;;  %v1039_v48 = vld [vmem:[#allocation2] sm:$0xff] }
 0x171   : > { %5510 = vmatprep.mubr.msk.bf16.mxu1 %vm950_vm0, %v6754_v50 }
 0x172   : > { %v944_v55 = vmax.f32 %v912_v51, 0.0  ;;  %v913_v57 = vadd.f32 %v6580_v35, %v874_v54  ;;  %v5206_v58 = vpop.f32.mrb[56].mxu0  ;;  %v1040_v51 = vld [vmem:[#allocation2 + $0x8] sm:$0xff] }
 0x173   : > { %v5207_v59 = vpop.f32.mrb[57].mxu0  ;;  %v1121_v2 = vld [vmem:[#allocation2 + $0x139] sm:$0xff] }
 0x174   : > { %1033 = vst.msk [vmem:[#allocation2 + $0x151] sm:$0xff] %vm950_vm0, %v944_v55  ;;  %v945_v60 = vmax.f32 %v913_v57, 0.0  ;;  %v5208_v63 = vadd.f32 %v5207_v59, %v5206_v58  ;;  %v5209_v0 = vpop.f32.mrb[58].mxu0  ;;  %v1941_v58 = vld [vmem:[#allocation2 + $0x20] sm:$0xff] }
 0x175   : > { %v5210_v3 = vpop.f32.mrb[59].mxu0  ;;  %v1122_v4 = vld [vmem:[#allocation2 + $0x141] sm:$0xff] }
 0x176   : > { %v1644_v5 = vld [vmem:[#allocation2 + $0x13a] sm:$0xff]  ;;  %v1645_v6 = vld [vmem:[#allocation2 + $0x142] sm:$0xff]  ;;  %1034 = vst.msk [vmem:[#allocation2 + $0x159] sm:$0xff] %vm950_vm0, %v945_v60  ;;  %v875_v28 = vmul.f32 %v5208_v63, %v6575_v32  ;;  %v5211_v7 = vadd.f32 %v5210_v3, %v5209_v0  ;;  %v6766_v9 = vpack.c.bf16 %v1122_v4, %v1121_v2  ;;  %v1071_v2 = vpack.c.bf16 %v1040_v51, %v1039_v48 }
 0x177   : > { %v6768_v12 = vpack.c.bf16 %v1645_v6, %v1644_v5  ;;  %v1940_v5 = vld [vmem:[#allocation2 + $0x18] sm:$0xff]  ;;  %v1942_v6 = vld [vmem:[#allocation2 + $0x30] sm:$0xff] }
 0x178   : > { %v914_v13 = vadd.f32 %v6580_v35, %v875_v28  ;;  %v876_v14 = vmul.f32 %v5211_v7, %v6575_v32  ;;  %5431 = vmatmul.mubr.msk.bf16.gmra.mrb[88].mxu0 %vm950_vm0, %v6766_v9  ;;  %v1945_v28 = vld [vmem:[#allocation2 + $0x50] sm:$0xff]  ;;  %v1959_v51 = vld [vmem:[#allocation2 + $0xf8] sm:$0xff] }
 0x179   : > { %5511 = vmatmul.mubr.msk.bf16.gmra.mrb[12].mxu1 %vm950_vm0, %v6768_v12 }
 0x17a   : > { %v946_v15 = vmax.f32 %v914_v13, 0.0  ;;  %v915_v16 = vadd.f32 %v6580_v35, %v876_v14  ;;  %v5212_v17 = vpop.f32.mrb[60].mxu0  ;;  %v6130_v13 = vld [vmem:[%s7656_s2 + $0x88] sm:$0xff]  }
 0x17b   : > { %v5213_v22 = vpop.f32.mrb[61].mxu0  ;;  %v1123_v29 = vld [vmem:[#allocation2 + $0x151] sm:$0xff]  ;;  %v1944_v14 = vld [vmem:[#allocation2 + $0x48] sm:$0xff] }
 0x17c   : > { %1035 = vst.msk [vmem:[#allocation2 + $0x169] sm:$0xff] %vm950_vm0, %v946_v15  ;;  %v947_v23 = vmax.f32 %v915_v16, 0.0  ;;  %v5214_v30 = vadd.f32 %v5213_v22, %v5212_v17  ;;  %v5215_v33 = vpop.f32.mrb[62].mxu0  ;;  %v6811_v15 = vpack.c.bf16 %v1945_v28, %v1944_v14  ;;  %v6131_v16 = vld [vmem:[%s7656_s2 + $0x90] sm:$0xff]   ;;  %v1947_v17 = vld [vmem:[#allocation2 + $0x68] sm:$0xff]  ;;  %v1949_v22 = vld [vmem:[#allocation2 + $0x80] sm:$0xff] }
 0x17d   : > { %v1124_v34 = vld [vmem:[#allocation2 + $0x159] sm:$0xff]  ;;  %v5216_v38 = vpop.f32.mrb[63].mxu0  ;;  %v1966_v28 = vld [vmem:[#allocation2 + $0x150] sm:$0xff] }
 0x17e   : > { %v1646_v36 = vld [vmem:[#allocation2 + $0x152] sm:$0xff]  ;;  %v1647_v37 = vld [vmem:[#allocation2 + $0x15a] sm:$0xff]  ;;  %1036 = vst.msk [vmem:[#allocation2 + $0x171] sm:$0xff] %vm950_vm0, %v947_v23  ;;  %v6779_v42 = vpack.c.bf16 %v1124_v34, %v1123_v29  ;;  %v877_v44 = vmul.f32 %v5214_v30, %v6575_v32  ;;  %v5217_v45 = vadd.f32 %v5216_v38, %v5215_v33  ;;  %v1952_v38 = vld [vmem:[#allocation2 + $0xa8] sm:$0xff] }
 0x17f   : > { %v6781_v43 = vpack.c.bf16 %v1647_v37, %v1646_v36  ;;  %v1946_v23 = vld [vmem:[#allocation2 + $0x60] sm:$0xff]  ;;  %v1948_v29 = vld [vmem:[#allocation2 + $0x78] sm:$0xff]  ;;  %v1953_v34 = vld [vmem:[#allocation2 + $0xb0] sm:$0xff] }
 0x180   : > { %5434 = vmatprep.mubr.msk.bf16.mxu0 %vm950_vm0, %v6779_v42  ;;  %v916_v46 = vadd.f32 %v6580_v35, %v877_v44  ;;  %v878_v47 = vmul.f32 %v5217_v45, %v6575_v32  ;;  %v1972_v32 = vpack.c.bf16 %v1941_v58, %v1940_v5  ;;  %v6825_v30 = vpack.c.bf16 %v1949_v22, %v1948_v29  ;;  %v6132_v33 = vld [vmem:[%s7656_s2 + $0x98] sm:$0xff]   ;;  %v1950_v36 = vld [vmem:[#allocation2 + $0x90] sm:$0xff]  ;;  %v1957_v45 = vld [vmem:[#allocation2 + $0xe0] sm:$0xff] }
 0x181   : > { %5514 = vmatprep.mubr.msk.bf16.mxu1 %vm950_vm0, %v6781_v43  ;;  %v6849_v44 = vpack.c.bf16 %v1953_v34, %v1952_v38  ;;  %v1960_v58 = vld [vmem:[#allocation2 + $0x108] sm:$0xff]  ;;  %v1964_v5 = vld [vmem:[#allocation2 + $0x138] sm:$0xff] }
 0x182   : > { %v948_v54 = vmax.f32 %v916_v46, 0.0  ;;  %v917_v55 = vadd.f32 %v6580_v35, %v878_v47  ;;  %v1943_v35 = vld [vmem:[#allocation2 + $0x38] sm:$0xff]  ;;  %v1954_v46 = vld [vmem:[#allocation2 + $0xc0] sm:$0xff]  ;;  %v1619_v22 = vld [vmem:[#allocation2 + $0xa] sm:$0xff] }
 0x183   : > { %v1125_v57 = vld [vmem:[#allocation2 + $0x169] sm:$0xff]  ;;  %v6803_v7 = vpack.c.bf16 %v1943_v35, %v1942_v6  ;;  %v1967_v35 = vld [vmem:[#allocation2 + $0x158] sm:$0xff] }
 0x184   : > { %1037 = vst.msk [vmem:[#allocation2 + $0x181] sm:$0xff] %vm950_vm0, %v948_v54  ;;  %v949_v59 = vmax.f32 %v917_v55, 0.0  ;;  %v1961_v54 = vld [vmem:[#allocation2 + $0x110] sm:$0xff]  ;;  %v1968_v14 = vld [vmem:[#allocation2 + $0x168] sm:$0xff]  ;;  %v1620_v34 = vld [vmem:[#allocation2 + $0x1a] sm:$0xff] }
 0x185   : > { %v1126_v60 = vld [vmem:[#allocation2 + $0x171] sm:$0xff] }
 0x186   : > { %v1648_v63 = vld [vmem:[#allocation2 + $0x16a] sm:$0xff]  ;;  %v1649_v0 = vld [vmem:[#allocation2 + $0x172] sm:$0xff]  ;;  %v6792_v3 = vpack.c.bf16 %v1126_v60, %v1125_v57  ;;  %1038 = vst.msk [vmem:[#allocation2 + $0x189] sm:$0xff] %vm950_vm0, %v949_v59  ;;  %v6875_v59 = vpack.c.bf16 %v1961_v54, %v1960_v58 }
 0x187   : > { %v6794_v4 = vpack.c.bf16 %v1649_v0, %v1648_v63  ;;  %v1958_v55 = vld [vmem:[#allocation2 + $0xf0] sm:$0xff]  ;;  %v1963_v60 = vld [vmem:[#allocation2 + $0x128] sm:$0xff]  ;;  %v1965_v63 = vld [vmem:[#allocation2 + $0x140] sm:$0xff] }
 0x188   : > { %5435 = vmatmul.mubr.msk.bf16.gmra.mrb[92].mxu0 %vm950_vm0, %v6792_v3  ;;  %v6873_v57 = vpack.c.bf16 %v1959_v51, %v1958_v55  ;;  %v1962_v0 = vld [vmem:[#allocation2 + $0x120] sm:$0xff]  ;;  %v1969_v6 = vld [vmem:[#allocation2 + $0x170] sm:$0xff] }
 0x189   : > { %5515 = vmatmul.mubr.msk.bf16.gmra.mrb[16].mxu1 %vm950_vm0, %v6794_v4  ;;  %5446 = vmatprep.mubr.msk.bf16.mxu0 %vm950_vm0, %v1071_v2  ;;  %v6885_v2 = vpack.c.bf16 %v1963_v60, %v1962_v0  ;;  %v1622_v38 = vld [vmem:[#allocation2 + $0x32] sm:$0xff]  ;;  %v1624_v51 = vld [vmem:[#allocation2 + $0x4a] sm:$0xff]  ;;  %v1626_v55 = vld [vmem:[#allocation2 + $0x62] sm:$0xff] }
 0x18a   : > { %5526 = vmatprep.mubr.msk.bf16.mxu1 %vm950_vm0, %v1972_v32  ;;  %v1625_v54 = vld [vmem:[#allocation2 + $0x52] sm:$0xff]  ;;  %v1627_v58 = vld [vmem:[#allocation2 + $0x6a] sm:$0xff]  ;;  %v6137_v0 = vld [vmem:[%s7656_s2 + $0xc0] sm:$0xff]  }
 0x18b   : > { %v6934_v60 = vpack.c.bf16 %v1625_v54, %v1624_v51  ;;  %v3235_v51 = vld [vmem:[#allocation2 + $0x79] sm:$0xff] }
 0x18d   : > { %v1971_v29 = vld [vmem:[#allocation2 + $0x188] sm:$0xff] }
 0x190   : > { %5447 = vmatmul.mubr.msk.bf16.vlgmr.msra.gmra.mrb[64].mxu0 %vm950_vm0, %v1972_v32  ;;  %v6887_v32 = vpack.c.bf16 %v1965_v63, %v1964_v5  ;;  %v1629_v63 = vld [vmem:[#allocation2 + $0x82] sm:$0xff] }
 0x191   : > { %5527 = vmatmul.mubr.msk.bf16.vlgmr.msra.gmra.mrb[20].mxu1 %vm950_vm0, %v6803_v7  ;;  %5450 = vmatprep.mubr.msk.bf16.mxu0 %vm950_vm0, %v6803_v7 }
 0x192   : > { %5559 = vmatpush3.bf16.msra.mxu1 %v6704_v19  ;;  %5530 = vmatprep.mubr.msk.bf16.mxu1 %vm950_vm0, %v6811_v15  ;;  %v6823_v19 = vpack.c.bf16 %v1947_v17, %v1946_v23  ;;  %v1618_v17 = vld [vmem:[#allocation2 + $0x2] sm:$0xff] }
 0x193   : > { %5560 = vmatprep.subr.bf16.mxu1 %v6130_v13  ;;  %5479 = vmatpush3.bf16.msra.mxu0 %v6538_v24  ;;  %v1951_v24 = vld [vmem:[#allocation2 + $0x98] sm:$0xff]  ;;  %v1970_v23 = vld [vmem:[#allocation2 + $0x180] sm:$0xff] }
 0x194   : > { %5480 = vmatprep.subr.bf16.mxu0 %v6545_v25  ;;  %v6847_v37 = vpack.c.bf16 %v1951_v24, %v1950_v36  ;;  %v6909_v24 = vpack.c.bf16 %v1971_v29, %v1970_v23  ;;  %v1621_v36 = vld [vmem:[#allocation2 + $0x22] sm:$0xff] }
 0x196   : > { %5561 = vmatpush3.bf16.msra.mxu1 %v6130_v13  ;;  %v6897_v13 = vpack.c.bf16 %v1967_v35, %v1966_v28  ;;  %v6154_v35 = vld [vmem:[%s7657_s3 + $0x14] ss:$8 sps:$4 sm:$0xff]  }
 0x197   : > { %5562 = vmatprep.subr.bf16.mxu1 %v6131_v16  ;;  %5481 = vmatpush3.bf16.msra.mxu0 %v6545_v25  ;;  %v6844_v25 = vld [vmem:[%s7656_s2 + $0xa0] sm:$0xff]   ;;  %v3232_v28 = vld [vmem:[#allocation2 + $0x51] sm:$0xff] }
 0x198   : > { %5451 = vmatmul.mubr.msk.bf16.gmra.mrb[68].mxu0 %vm950_vm0, %v6811_v15  ;;  %5482 = vmatprep.subr.bf16.mxu0 %v6552_v26 }
 0x199   : > { %5531 = vmatmul.mubr.msk.bf16.gmra.mrb[24].mxu1 %vm950_vm0, %v6823_v19  ;;  %5454 = vmatprep.mubr.msk.bf16.mxu0 %vm950_vm0, %v6823_v19 }
 0x19a   : > { %5534 = vmatprep.mubr.msk.bf16.mxu1 %vm950_vm0, %v6825_v30  ;;  %5563 = vmatpush3.bf16.msra.mxu1 %v6131_v16  ;;  %v6899_v16 = vpack.c.bf16 %v1969_v6, %v1968_v14 }
 0x19b   : > { %5564 = vmatprep.subr.bf16.mxu1 %v6132_v33  ;;  %5483 = vmatpush3.bf16.msra.mxu0 %v6552_v26  ;;  %v1955_v26 = vld [vmem:[#allocation2 + $0xc8] sm:$0xff] }
 0x19c   : > { %5484 = vmatprep.subr.bf16.mxu0 %v6559_v27  ;;  %v6861_v47 = vpack.c.bf16 %v1955_v26, %v1954_v46  ;;  %v1623_v26 = vld [vmem:[#allocation2 + $0x3a] sm:$0xff]  ;;  %v6134_v46 = vld [vmem:[%s7656_s2 + $0xa8] sm:$0xff]  }
 0x19e   : > { %5565 = vmatpush3.bf16.msra.mxu1 %v6132_v33  ;;  %v1650_v33 = vpack.c.bf16 %v1619_v22, %v1618_v17  ;;  %v3231_v22 = vld [vmem:[#allocation2 + $0x49] sm:$0xff] }
 0x19f   : > { %5485 = vmatpush3.bf16.msra.mxu0 %v6559_v27  ;;  %5598 = vmatprep.subr.bf16.mxu1 %v6844_v25  ;;  %v1956_v27 = vld [vmem:[#allocation2 + $0xd8] sm:$0xff]  ;;  %v3262_v29 = vpack.c.bf16 %v3232_v28, %v3231_v22  ;;  %v3247_v28 = vld [vmem:[#allocation2 + $0x109] sm:$0xff]  ;;  %v3249_v22 = vld [vmem:[#allocation2 + $0x121] sm:$0xff] }
 0x1a0   : > { %5455 = vmatmul.mubr.msk.bf16.gmra.mrb[72].mxu0 %vm950_vm0, %v6825_v30  ;;  %v6863_v48 = vpack.c.bf16 %v1957_v45, %v1956_v27  ;;  %v1651_v45 = vpack.c.bf16 %v1621_v36, %v1620_v34  ;;  %v6921_v27 = vpack.c.bf16 %v1623_v26, %v1622_v38  ;;  %v6147_v36 = vld [vmem:[%s7656_s2 + $0x110] sm:$0xff]   ;;  %v3236_v26 = vld [vmem:[#allocation2 + $0x81] sm:$0xff] }
 0x1a1   : > { %5535 = vmatmul.mubr.msk.bf16.gmra.mrb[28].mxu1 %vm950_vm0, %v6847_v37  ;;  %5458 = vmatprep.mubr.msk.bf16.mxu0 %vm950_vm0, %v6847_v37 }
 0x1a2   : > { %5538 = vmatprep.mubr.msk.bf16.mxu1 %vm950_vm0, %v6849_v44 }
 0x1a8   : > { %5459 = vmatmul.mubr.msk.bf16.gmra.mrb[76].mxu0 %vm950_vm0, %v6849_v44 }
 0x1a9   : > { %5539 = vmatmul.mubr.msk.bf16.gmra.mrb[0].mxu1 %vm950_vm0, %v6861_v47  ;;  %5462 = vmatprep.mubr.msk.bf16.mxu0 %vm950_vm0, %v6861_v47 }
 0x1aa   : > { %5542 = vmatprep.mubr.msk.bf16.mxu1 %vm950_vm0, %v6863_v48 }
 0x1b0   : > { %5463 = vmatmul.mubr.msk.bf16.gmra.mrb[80].mxu0 %vm950_vm0, %v6863_v48 }
 0x1b1   : > { %5543 = vmatmul.mubr.msk.bf16.gmra.mrb[4].mxu1 %vm950_vm0, %v6873_v57  ;;  %5466 = vmatprep.mubr.msk.bf16.mxu0 %vm950_vm0, %v6873_v57 }
 0x1b2   : > { %5546 = vmatprep.mubr.msk.bf16.mxu1 %vm950_vm0, %v6875_v59 }
 0x1b8   : > { %5467 = vmatmul.mubr.msk.bf16.gmra.mrb[84].mxu0 %vm950_vm0, %v6875_v59 }
 0x1b9   : > { %5547 = vmatmul.mubr.msk.bf16.gmra.mrb[8].mxu1 %vm950_vm0, %v6885_v2  ;;  %5470 = vmatprep.mubr.msk.bf16.mxu0 %vm950_vm0, %v6885_v2 }
 0x1ba   : > { %5550 = vmatprep.mubr.msk.bf16.mxu1 %vm950_vm0, %v6887_v32 }
 0x1c0   : > { %5471 = vmatmul.mubr.msk.bf16.gmra.mrb[88].mxu0 %vm950_vm0, %v6887_v32 }
 0x1c1   : > { %5551 = vmatmul.mubr.msk.bf16.gmra.mrb[12].mxu1 %vm950_vm0, %v6897_v13  ;;  %5474 = vmatprep.mubr.msk.bf16.mxu0 %vm950_vm0, %v6897_v13 }
 0x1c2   : > { %5554 = vmatprep.mubr.msk.bf16.mxu1 %vm950_vm0, %v6899_v16 }
 0x1c8   : > { %5475 = vmatmul.mubr.msk.bf16.gmra.mrb[92].mxu0 %vm950_vm0, %v6899_v16 }
 0x1c9   : > { %5555 = vmatmul.mubr.msk.bf16.gmra.mrb[16].mxu1 %vm950_vm0, %v6909_v24  ;;  %5486 = vmatprep.mubr.msk.bf16.mxu0 %vm950_vm0, %v1650_v33  ;;  %v3233_v33 = vld [vmem:[#allocation2 + $0x61] sm:$0xff] }
 0x1ca   : > { %5566 = vmatprep.mubr.msk.bf16.mxu1 %vm950_vm0, %v6595_v1  ;;  %v6135_v1 = vld [vmem:[%s7656_s2 + $0xb0] sm:$0xff]  }
 0x1d0   : > { %5487 = vmatmul.mubr.msk.bf16.vlgmr.msra.gmra.mrb[64].mxu0 %vm950_vm0, %v1651_v45 }
 0x1d1   : > { %5567 = vmatmul.mubr.msk.bf16.vlgmr.msra.gmra.mrb[20].mxu1 %vm950_vm0, %v6611_v18  ;;  %5490 = vmatprep.mubr.msk.bf16.mxu0 %vm950_vm0, %v6921_v27  ;;  %v6936_v18 = vpack.c.bf16 %v1627_v58, %v1626_v55  ;;  %v3264_v55 = vpack.c.bf16 %v3236_v26, %v3235_v51  ;;  %v3237_v58 = vld [vmem:[#allocation2 + $0x91] sm:$0xff] }
 0x1d2   : > { %5599 = vmatpush3.bf16.msra.mxu1 %v6844_v25  ;;  %5570 = vmatprep.mubr.msk.bf16.mxu1 %vm950_vm0, %v6624_v41  ;;  %v6136_v25 = vld [vmem:[%s7656_s2 + $0xb8] sm:$0xff]  }
 0x1d3   : > { %5600 = vmatprep.subr.bf16.mxu1 %v6134_v46  ;;  %v1628_v41 = vld [vmem:[#allocation2 + $0x7a] sm:$0xff] }
 0x1d4   : > { %v6952_v5 = vpack.c.bf16 %v1629_v63, %v1628_v41 }
 0x1d6   : > { %5601 = vmatpush3.bf16.msra.mxu1 %v6134_v46  ;;  %v3238_v46 = vld [vmem:[#allocation2 + $0x99] sm:$0xff] }
 0x1d7   : > { %5602 = vmatprep.subr.bf16.mxu1 %v6135_v1  ;;  %v3265_v41 = vpack.c.bf16 %v3238_v46, %v3237_v58  ;;  %v3251_v46 = vld [vmem:[#allocation2 + $0x139] sm:$0xff]  ;;  %v3253_v58 = vld [vmem:[#allocation2 + $0x151] sm:$0xff] }
 0x1d8   : > { %5491 = vmatmul.mubr.msk.bf16.gmra.mrb[68].mxu0 %vm950_vm0, %v6934_v60 }
 0x1d9   : > { %5571 = vmatmul.mubr.msk.bf16.gmra.mrb[24].mxu1 %vm950_vm0, %v6635_v56  ;;  %5494 = vmatprep.mubr.msk.bf16.mxu0 %vm950_vm0, %v6936_v18  ;;  %v2292_v56 = vld [vmem:[#allocation2 + $0x181] sm:$0xff] }
 0x1da   : > { %5574 = vmatprep.mubr.msk.bf16.mxu1 %vm950_vm0, %v6645_v8  ;;  %5603 = vmatpush3.bf16.msra.mxu1 %v6135_v1  ;;  %v2293_v8 = vld [vmem:[#allocation2 + $0x189] sm:$0xff] }
 0x1db   : > { %5604 = vmatprep.subr.bf16.mxu1 %v6136_v25 }
 0x1de   : > { %5605 = vmatpush3.bf16.msra.mxu1 %v6136_v25  ;;  %v6148_v25 = vld [vmem:[%s7656_s2 + $0x118] sm:$0xff]  }
 0x1df   : > { %5638 = vmatprep.subr.bf16.mxu1 %v6137_v0 }
 0x1e0   : > { %5495 = vmatmul.mubr.msk.bf16.gmra.mrb[72].mxu0 %vm950_vm0, %v6952_v5 }
 0x1e1   : > { %5575 = vmatmul.mubr.msk.bf16.gmra.mrb[28].mxu1 %vm950_vm0, %v6655_v31  ;;  %v6976_v31 = vpack.c.bf16 %v2293_v8, %v2292_v56  ;;  %v3242_v8 = vld [vmem:[#allocation2 + $0xc9] sm:$0xff] }
 0x1e2   : > { %5578 = vmatprep.mubr.msk.bf16.mxu1 %vm950_vm0, %v6666_v52  ;;  %v6138_v52 = vld [vmem:[%s7656_s2 + $0xc8] sm:$0xff]  }
 0x1e9   : > { %5579 = vmatmul.mubr.msk.bf16.gmra.mrb[0].mxu1 %vm950_vm0, %v6687_v10  ;;  %v6139_v10 = vld [vmem:[%s7656_s2 + $0xd0] sm:$0xff]  }
 0x1ea   : > { %5582 = vmatprep.mubr.msk.bf16.mxu1 %vm950_vm0, %v6709_v39  ;;  %v6140_v39 = vld [vmem:[%s7656_s2 + $0xd8] sm:$0xff]  }
 0x1f1   : > { %5583 = vmatmul.mubr.msk.bf16.gmra.mrb[4].mxu1 %vm950_vm0, %v6724_v61  ;;  %v6141_v61 = vld [vmem:[%s7656_s2 + $0xe0] sm:$0xff]  }
 0x1f2   : > { %5586 = vmatprep.mubr.msk.bf16.mxu1 %vm950_vm0, %v6738_v20  ;;  %v2594_v20 = vld [vmem:[#allocation2 + $0x92] sm:$0xff] }
 0x1f9   : > { %5587 = vmatmul.mubr.msk.bf16.gmra.mrb[8].mxu1 %vm950_vm0, %v6752_v49  ;;  %v2595_v49 = vld [vmem:[#allocation2 + $0x9a] sm:$0xff] }
 0x1fa   : > { %5590 = vmatprep.mubr.msk.bf16.mxu1 %vm950_vm0, %v6766_v9  ;;  %v7001_v9 = vpack.c.bf16 %v2595_v49, %v2594_v20  ;;  %v3241_v20 = vld [vmem:[#allocation2 + $0xc1] sm:$0xff] }
 0x1fb   : > { %v3267_v49 = vpack.c.bf16 %v3242_v8, %v3241_v20 }
 0x201   : > { %5591 = vmatmul.mubr.msk.bf16.gmra.mrb[12].mxu1 %vm950_vm0, %v6779_v42 }
 0x202   : > { %5594 = vmatprep.mubr.msk.bf16.mxu1 %vm950_vm0, %v6792_v3 }
 0x209   : > { %5595 = vmatmul.mubr.msk.bf16.gmra.mrb[16].mxu1 %vm950_vm0, %v6976_v31 }
 0x20a   : > { %5606 = vmatprep.mubr.msk.bf16.mxu1 %vm950_vm0, %v1651_v45 }
 0x211   : > { %5607 = vmatmul.mubr.msk.bf16.vlgmr.msra.gmra.mrb[20].mxu1 %vm950_vm0, %v6921_v27 }
 0x212   : > { %5639 = vmatpush3.bf16.msra.mxu1 %v6137_v0  ;;  %5610 = vmatprep.mubr.msk.bf16.mxu1 %vm950_vm0, %v6934_v60  ;;  %v3240_v0 = vld [vmem:[#allocation2 + $0xb1] sm:$0xff] }
 0x213   : > { %5640 = vmatprep.subr.bf16.mxu1 %v6138_v52 }
 0x216   : > { %5641 = vmatpush3.bf16.msra.mxu1 %v6138_v52 }
 0x217   : > { %5642 = vmatprep.subr.bf16.mxu1 %v6139_v10 }
 0x219   : > { %5611 = vmatmul.mubr.msk.bf16.gmra.mrb[24].mxu1 %vm950_vm0, %v6936_v18 }
 0x21a   : > { %5614 = vmatprep.mubr.msk.bf16.mxu1 %vm950_vm0, %v6952_v5  ;;  %5643 = vmatpush3.bf16.msra.mxu1 %v6139_v10  ;;  %v3239_v10 = vld [vmem:[#allocation2 + $0xa9] sm:$0xff] }
 0x21b   : > { %5644 = vmatprep.subr.bf16.mxu1 %v6140_v39 }
 0x21e   : > { %5645 = vmatpush3.bf16.msra.mxu1 %v6140_v39 }
 0x21f   : > { %5678 = vmatprep.subr.bf16.mxu1 %v6141_v61 }
 0x221   : > { %5615 = vmatmul.mubr.msk.bf16.gmra.mrb[28].mxu1 %vm950_vm0, %v7001_v9 }
 0x222   : > { %5618 = vmatprep.mubr.msk.bf16.mxu1 %vm950_vm0, %v6668_v53  ;;  %v2614_v53 = vld [vmem:[#allocation2 + $0x182] sm:$0xff] }
 0x229   : > { %5619 = vmatmul.mubr.msk.bf16.gmra.mrb[0].mxu1 %vm950_vm0, %v6689_v11  ;;  %v2615_v11 = vld [vmem:[#allocation2 + $0x18a] sm:$0xff] }
 0x22a   : > { %5622 = vmatprep.mubr.msk.bf16.mxu1 %vm950_vm0, %v6711_v40  ;;  %v7023_v40 = vpack.c.bf16 %v2615_v11, %v2614_v53  ;;  %v3244_v11 = vld [vmem:[#allocation2 + $0xe1] sm:$0xff] }
 0x231   : > { %5623 = vmatmul.mubr.msk.bf16.gmra.mrb[4].mxu1 %vm950_vm0, %v6726_v62  ;;  %v6142_v62 = vld [vmem:[%s7656_s2 + $0xe8] sm:$0xff]  }
 0x232   : > { %5626 = vmatprep.mubr.msk.bf16.mxu1 %vm950_vm0, %v6740_v21  ;;  %v6143_v21 = vld [vmem:[%s7656_s2 + $0xf0] sm:$0xff]  }
 0x239   : > { %5627 = vmatmul.mubr.msk.bf16.gmra.mrb[8].mxu1 %vm950_vm0, %v6754_v50  ;;  %v6144_v50 = vld [vmem:[%s7656_s2 + $0xf8] sm:$0xff]  }
 0x23a   : > { %5630 = vmatprep.mubr.msk.bf16.mxu1 %vm950_vm0, %v6768_v12  ;;  %v6145_v12 = vld [vmem:[%s7656_s2 + $0x100] sm:$0xff]  }
 0x241   : > { %5631 = vmatmul.mubr.msk.bf16.gmra.mrb[12].mxu1 %vm950_vm0, %v6781_v43 }
 0x242   : > { %5634 = vmatprep.mubr.msk.bf16.mxu1 %vm950_vm0, %v6794_v4 }
 0x249   : > { %5635 = vmatmul.mubr.msk.bf16.gmra.mrb[16].mxu1 %vm950_vm0, %v7023_v40 }
 0x24a   : > { %5646 = vmatprep.mubr.msk.bf16.mxu1 %vm950_vm0, %v6803_v7  ;;  %v2937_v7 = vld [vmem:[#allocation2 + $0x198] sm:$0xff] }
 0x251   : > { %5647 = vmatmul.mubr.msk.bf16.vlgmr.msra.gmra.mrb[20].mxu1 %vm950_vm0, %v6811_v15  ;;  %v2938_v15 = vld [vmem:[#allocation2 + $0x1a0] sm:$0xff] }
 0x252   : > { %5679 = vmatpush3.bf16.msra.mxu1 %v6141_v61  ;;  %5650 = vmatprep.mubr.msk.bf16.mxu1 %vm950_vm0, %v6823_v19  ;;  %v3266_v61 = vpack.c.bf16 %v3240_v0, %v3239_v10  ;;  %v3255_v0 = vld [vmem:[#allocation2 + $0x169] sm:$0xff]  ;;  %v3259_v10 = vld [vmem:[#allocation2 + $0x199] sm:$0xff] }
 0x253   : > { %5680 = vmatprep.subr.bf16.mxu1 %v6142_v62 }
 0x256   : > { %5681 = vmatpush3.bf16.msra.mxu1 %v6142_v62 }
 0x257   : > { %5682 = vmatprep.subr.bf16.mxu1 %v6143_v21 }
 0x259   : > { %5651 = vmatmul.mubr.msk.bf16.gmra.mrb[24].mxu1 %vm950_vm0, %v6825_v30 }
 0x25a   : > { %5654 = vmatprep.mubr.msk.bf16.mxu1 %vm950_vm0, %v6847_v37  ;;  %5683 = vmatpush3.bf16.msra.mxu1 %v6143_v21  ;;  %v2954_v37 = vpack.c.bf16 %v2938_v15, %v2937_v7  ;;  %v3246_v21 = vld [vmem:[#allocation2 + $0xf9] sm:$0xff] }
 0x25b   : > { %5684 = vmatprep.subr.bf16.mxu1 %v6144_v50 }
 0x25e   : > { %5685 = vmatpush3.bf16.msra.mxu1 %v6144_v50 }
 0x25f   : > { %5718 = vmatprep.subr.bf16.mxu1 %v6145_v12 }
 0x261   : > { %5655 = vmatmul.mubr.msk.bf16.gmra.mrb[28].mxu1 %vm950_vm0, %v6849_v44  ;;  %v3230_v44 = vld [vmem:[#allocation2 + $0x39] sm:$0xff] }
 0x262   : > { %5658 = vmatprep.mubr.msk.bf16.mxu1 %vm950_vm0, %v6861_v47 }
 0x269   : > { %5659 = vmatmul.mubr.msk.bf16.gmra.mrb[0].mxu1 %vm950_vm0, %v6863_v48 }
 0x26a   : > { %5662 = vmatprep.mubr.msk.bf16.mxu1 %vm950_vm0, %v6873_v57  ;;  %v3229_v57 = vld [vmem:[#allocation2 + $0x31] sm:$0xff] }
 0x271   : > { %5663 = vmatmul.mubr.msk.bf16.gmra.mrb[4].mxu1 %vm950_vm0, %v6875_v59  ;;  %v3261_v59 = vpack.c.bf16 %v3230_v44, %v3229_v57 }
 0x272   : > { %5666 = vmatprep.mubr.msk.bf16.mxu1 %vm950_vm0, %v6885_v2  ;;  %v6149_v2 = vld [vmem:[%s7657_s3] ss:$8 sps:$4 sm:$0xff]  }
 0x279   : > { %5667 = vmatmul.mubr.msk.bf16.gmra.mrb[8].mxu1 %vm950_vm0, %v6887_v32  ;;  %v6151_v32 = vld [vmem:[%s7657_s3 + $0x4] ss:$8 sps:$4 sm:$0xff]  }
 0x27a   : > { %5670 = vmatprep.mubr.msk.bf16.mxu1 %vm950_vm0, %v6897_v13  ;;  %4095 = vmatprep.subr.bf16.mxu0 %v6151_v32  ;;  %v6152_v13 = vld [vmem:[%s7657_s3 + $0x10] ss:$8 sps:$4 sm:$0xff]  }
 0x27b   : > { %v7065_v42 = vpop.f32.mrb[76].mxu0  ;;  %4096 = vmatpush1.bf16.msra.mxu0 %v6149_v2  ;;  %v3250_v32 = vld [vmem:[#allocation2 + $0x129] sm:$0xff] }
 0x27c   : > { %v7067_v43 = vpop.f32.mrb[77].mxu0  ;;  %4097 = vmatprep.subr.bf16.mxu0 %v6154_v35 }
 0x27d   : > { %v7069_v3 = vpop.f32.mrb[78].mxu0 }
 0x27e   : > { %v7071_v4 = vpop.f32.mrb[79].mxu0 }
 0x27f   : > { %4098 = vmatpush1.bf16.msra.mxu0 %v6152_v13 }
 0x281   : > { %5671 = vmatmul.mubr.msk.bf16.gmra.mrb[12].mxu1 %vm950_vm0, %v6899_v16  ;;  %v3234_v16 = vld [vmem:[#allocation2 + $0x69] sm:$0xff] }
 0x282   : > { %5674 = vmatprep.mubr.msk.bf16.mxu1 %vm950_vm0, %v6909_v24  ;;  %v6146_v24 = vld [vmem:[%s7656_s2 + $0x108] sm:$0xff]   ;;  %v3263_v34 = vpack.c.bf16 %v3234_v16, %v3233_v33 }
 0x283   : > { %v7077_v19 = vpop.f32.mrb[80].mxu0 }
 0x284   : > { %v7079_v30 = vpop.f32.mrb[81].mxu0 }
 0x285   : > { %v7081_v47 = vpop.f32.mrb[82].mxu0 }
 0x286   : > { %v7083_v48 = vpop.f32.mrb[83].mxu0 }
 0x289   : > { %5675 = vmatmul.mubr.msk.bf16.gmra.mrb[16].mxu1 %vm950_vm0, %v2954_v37  ;;  %v3245_v37 = vld [vmem:[#allocation2 + $0xf1] sm:$0xff] }
 0x28a   : > { %5686 = vmatprep.mubr.msk.bf16.mxu1 %vm950_vm0, %v3261_v59  ;;  %v3269_v44 = vpack.c.bf16 %v3246_v21, %v3245_v37  ;;  %v3248_v59 = vld [vmem:[#allocation2 + $0x111] sm:$0xff] }
 0x28b   : > { %v7096_v6 = vpop.f32.mrb[84].mxu0  ;;  %v3270_v16 = vpack.c.bf16 %v3248_v59, %v3247_v28  ;;  %v3564_v21 = vld [vmem:[#allocation2 + $0xca] sm:$0xff]  ;;  %v3567_v37 = vld [vmem:[#allocation2 + $0xf2] sm:$0xff] }
 0x28c   : > { %v7101_v14 = vpop.f32.mrb[85].mxu0  ;;  %v3572_v28 = vld [vmem:[#allocation2 + $0x12a] sm:$0xff] }
 0x28d   : > { %v7103_v17 = vpop.f32.mrb[86].mxu0 }
 0x28e   : > { %v7105_v23 = vpop.f32.mrb[87].mxu0 }
 0x291   : > { %5687 = vmatmul.mubr.msk.bf16.vlgmr.msra.gmra.mrb[20].mxu1 %vm950_vm0, %v3262_v29  ;;  %v3271_v29 = vpack.c.bf16 %v3250_v32, %v3249_v22  ;;  %v3571_v32 = vld [vmem:[#allocation2 + $0x122] sm:$0xff] }
 0x292   : > { %5719 = vmatpush3.bf16.msra.mxu1 %v6145_v12  ;;  %5690 = vmatprep.mubr.msk.bf16.mxu1 %vm950_vm0, %v3263_v34  ;;  %v3243_v12 = vld [vmem:[#allocation2 + $0xd9] sm:$0xff]  ;;  %v3593_v22 = vpack.c.bf16 %v3572_v28, %v3571_v32 }
 0x293   : > { %5720 = vmatprep.subr.bf16.mxu1 %v6146_v24  ;;  %v7115_v38 = vpop.f32.mrb[88].mxu0  ;;  %v3268_v15 = vpack.c.bf16 %v3244_v11, %v3243_v12  ;;  %v3563_v11 = vld [vmem:[#allocation2 + $0xc2] sm:$0xff] }
 0x294   : > { %v7117_v45 = vpop.f32.mrb[89].mxu0 }
 0x295   : > { %v7119_v1 = vpop.f32.mrb[90].mxu0 }
 0x296   : > { %5721 = vmatpush3.bf16.msra.mxu1 %v6146_v24  ;;  %v7121_v54 = vpop.f32.mrb[91].mxu0  ;;  %v3252_v24 = vld [vmem:[#allocation2 + $0x141] sm:$0xff] }
 0x297   : > { %5722 = vmatprep.subr.bf16.mxu1 %v6147_v36 }
 0x299   : > { %5691 = vmatmul.mubr.msk.bf16.gmra.mrb[24].mxu1 %vm950_vm0, %v3264_v55  ;;  %v3272_v55 = vpack.c.bf16 %v3252_v24, %v3251_v46  ;;  %v3574_v24 = vld [vmem:[#allocation2 + $0x142] sm:$0xff]  ;;  %v3576_v46 = vld [vmem:[#allocation2 + $0x15a] sm:$0xff] }
 0x29a   : > { %5694 = vmatprep.mubr.msk.bf16.mxu1 %vm950_vm0, %v3265_v41  ;;  %5723 = vmatpush3.bf16.msra.mxu1 %v6147_v36  ;;  %v3254_v36 = vld [vmem:[#allocation2 + $0x159] sm:$0xff]  ;;  %v3256_v41 = vld [vmem:[#allocation2 + $0x171] sm:$0xff] }
 0x29b   : > { %5724 = vmatprep.subr.bf16.mxu1 %v6148_v25  ;;  %v7128_v63 = vpop.f32.mrb[92].mxu0  ;;  %v3274_v8 = vpack.c.bf16 %v3256_v41, %v3255_v0  ;;  %v3578_v41 = vld [vmem:[#allocation2 + $0x172] sm:$0xff] }
 0x29c   : > { %v7130_v56 = vpop.f32.mrb[93].mxu0 }
 0x29d   : > { %v7132_v52 = vpop.f32.mrb[94].mxu0 }
 0x29e   : > { %5725 = vmatpush3.bf16.msra.mxu1 %v6148_v25  ;;  %v7134_v39 = vpop.f32.mrb[95].mxu0  ;;  %v3273_v25 = vpack.c.bf16 %v3254_v36, %v3253_v58  ;;  %v3575_v36 = vld [vmem:[#allocation2 + $0x152] sm:$0xff] }
 0x29f   : > { %v3595_v58 = vpack.c.bf16 %v3576_v46, %v3575_v36 }
 0x2a1   : > { %5695 = vmatmul.mubr.msk.bf16.gmra.mrb[28].mxu1 %vm950_vm0, %v3266_v61  ;;  %v3260_v61 = vld [vmem:[#allocation2 + $0x1a1] sm:$0xff] }
 0x2a2   : > { %5698 = vmatprep.mubr.msk.bf16.mxu1 %vm950_vm0, %v3267_v49  ;;  %v3276_v20 = vpack.c.bf16 %v3260_v61, %v3259_v10  ;;  %v3562_v49 = vld [vmem:[#allocation2 + $0xb2] sm:$0xff]  ;;  %v3582_v10 = vld [vmem:[#allocation2 + $0x1a2] sm:$0xff] }
 0x2a3   : > { %v7138_v53 = vpop.f32.mrb[64].mxu0 }
 0x2a4   : > { %v7140_v62 = vpop.f32.mrb[65].mxu0 }
 0x2a5   : > { %v7142_v50 = vpop.f32.mrb[66].mxu0 }
 0x2a6   : > { %v7144_v7 = vpop.f32.mrb[67].mxu0 }
 0x2a9   : > { %5699 = vmatmul.mubr.msk.bf16.gmra.mrb[0].mxu1 %vm950_vm0, %v3268_v15  ;;  %v3589_v15 = vpack.c.bf16 %v3564_v21, %v3563_v11  ;;  %v6258_v11 = vmov 0  }
 0x2aa   : > { %5702 = vmatprep.mubr.msk.bf16.mxu1 %vm950_vm0, %v3269_v44  ;;  %4127 = vmatprep.mubr.bf16.mxu0 %v6258_v11 }
 0x2ab   : > { %v7148_v57 = vpop.f32.mrb[68].mxu0 }
 0x2ac   : > { %v7150_v2 = vpop.f32.mrb[69].mxu0 }
 0x2ad   : > { %v7152_v35 = vpop.f32.mrb[70].mxu0 }
 0x2ae   : > { %v7154_v13 = vpop.f32.mrb[71].mxu0 }
 0x2b1   : > { %5703 = vmatmul.mubr.msk.bf16.gmra.mrb[4].mxu1 %vm950_vm0, %v3270_v16 }
 0x2b2   : > { %5706 = vmatprep.mubr.msk.bf16.mxu1 %vm950_vm0, %v3271_v29  ;;  %v3573_v29 = vld [vmem:[#allocation2 + $0x13a] sm:$0xff] }
 0x2b3   : > { %v7158_v33 = vpop.f32.mrb[72].mxu0 }
 0x2b4   : > { %v7160_v34 = vpop.f32.mrb[73].mxu0 }
 0x2b5   : > { %v7162_v26 = vpop.f32.mrb[74].mxu0 }
 0x2b6   : > { %v7164_v51 = vpop.f32.mrb[75].mxu0 }
 0x2b9   : > { %5707 = vmatmul.mubr.msk.bf16.gmra.mrb[8].mxu1 %vm950_vm0, %v3272_v55  ;;  %v3594_v55 = vpack.c.bf16 %v3574_v24, %v3573_v29 }
 0x2ba   : > { %5710 = vmatprep.mubr.msk.bf16.mxu1 %vm950_vm0, %v3273_v25  ;;  %v3577_v25 = vld [vmem:[#allocation2 + $0x16a] sm:$0xff] }
 0x2bb   : > { %v3596_v0 = vpack.c.bf16 %v3578_v41, %v3577_v25 }
 0x2c1   : > { %5711 = vmatmul.mubr.msk.bf16.gmra.mrb[12].mxu1 %vm950_vm0, %v3274_v8  ;;  %v3581_v8 = vld [vmem:[#allocation2 + $0x19a] sm:$0xff] }
 0x2c2   : > { %5714 = vmatprep.mubr.msk.bf16.mxu1 %vm950_vm0, %v6976_v31  ;;  %v3561_v31 = vld [vmem:[#allocation2 + $0xaa] sm:$0xff]  ;;  %v3598_v61 = vpack.c.bf16 %v3582_v10, %v3581_v8 }
 0x2c3   : > { %v3588_v12 = vpack.c.bf16 %v3562_v49, %v3561_v31  ;;  %v6155_v31 = vld [vmem:[%s7657_s3 + $0x20] ss:$8 sps:$4 sm:$0xff]   ;;  %v6160_v49 = vld [vmem:[%s7657_s3 + $0x34] ss:$8 sps:$4 sm:$0xff]  }
 0x2c9   : > { %5715 = vmatmul.mubr.msk.bf16.gmra.mrb[16].mxu1 %vm950_vm0, %v3276_v20  ;;  %v6157_v20 = vld [vmem:[%s7657_s3 + $0x24] ss:$8 sps:$4 sm:$0xff]  }
 0x2ca   : > { %5726 = vmatprep.mubr.msk.bf16.mxu1 %vm950_vm0, %v6921_v27  ;;  %v3565_v27 = vld [vmem:[#allocation2 + $0xda] sm:$0xff]  ;;  %4099 = vmatprep.subr.bf16.mxu0 %v6157_v20 }
 0x2cb   : > { %4100 = vmatpush1.bf16.msra.mxu0 %v6155_v31 }
 0x2cc   : > { %4101 = vmatprep.subr.bf16.mxu0 %v6160_v49 }
 0x2d1   : > { %5727 = vmatmul.mubr.msk.bf16.vlgmr.msra.gmra.mrb[20].mxu1 %vm950_vm0, %v6934_v60  ;;  %v3566_v60 = vld [vmem:[#allocation2 + $0xe2] sm:$0xff] }
 0x2d2   : > { %5730 = vmatprep.mubr.msk.bf16.mxu1 %vm950_vm0, %v6936_v18  ;;  %v3568_v18 = vld [vmem:[#allocation2 + $0xfa] sm:$0xff]  ;;  %v3590_v44 = vpack.c.bf16 %v3566_v60, %v3565_v27 }
 0x2d3   : > { %v3591_v59 = vpack.c.bf16 %v3568_v18, %v3567_v37  ;;  %v7216_v60 = vld [vmem:[%s7661_s7] ss:$0 sm:$0xff] }
 0x2d9   : > { %5731 = vmatmul.mubr.msk.bf16.gmra.mrb[24].mxu1 %vm950_vm0, %v6952_v5  ;;  %v3569_v5 = vld [vmem:[#allocation2 + $0x10a] sm:$0xff] }
 0x2da   : > { %5734 = vmatprep.mubr.msk.bf16.mxu1 %vm950_vm0, %v7001_v9  ;;  %v3570_v9 = vld [vmem:[#allocation2 + $0x112] sm:$0xff] }
 0x2db   : > { %v3592_v16 = vpack.c.bf16 %v3570_v9, %v3569_v5 }
 0x2e1   : > { %5735 = vmatmul.mubr.msk.bf16.gmra.mrb[28].mxu1 %vm950_vm0, %v3588_v12  ;;  %v7210_v12 = vld [vmem:[%s7660_s6] ss:$0 sm:$0xff] }
 0x2e2   : > { %5738 = vmatprep.mubr.msk.bf16.mxu1 %vm950_vm0, %v3589_v15 }
 0x2e9   : > { %5739 = vmatmul.mubr.msk.bf16.gmra.mrb[0].mxu1 %vm950_vm0, %v3590_v44 }
 0x2ea   : > { %5742 = vmatprep.mubr.msk.bf16.mxu1 %vm950_vm0, %v3591_v59 }
 0x2f1   : > { %5743 = vmatmul.mubr.msk.bf16.gmra.mrb[4].mxu1 %vm950_vm0, %v3592_v16 }
 0x2f2   : > { %5746 = vmatprep.mubr.msk.bf16.mxu1 %vm950_vm0, %v3593_v22 }
 0x2f9   : > { %5747 = vmatmul.mubr.msk.bf16.gmra.mrb[8].mxu1 %vm950_vm0, %v3594_v55 }
 0x2fa   : > { %5750 = vmatprep.mubr.msk.bf16.mxu1 %vm950_vm0, %v3595_v58 }
 0x301   : > { %5751 = vmatmul.mubr.msk.bf16.gmra.mrb[12].mxu1 %vm950_vm0, %v3596_v0 }
 0x302   : > { %5754 = vmatprep.mubr.msk.bf16.mxu1 %vm950_vm0, %v7023_v40  ;;  %v6158_v40 = vld [vmem:[%s7657_s3 + $0x30] ss:$8 sps:$4 sm:$0xff]  }
 0x303   : > { %4102 = vmatpush1.bf16.msra.mxu0 %v6158_v40 }
 0x309   : > { %5755 = vmatmul.mubr.msk.bf16.gmra.mrb[16].mxu1 %vm950_vm0, %v3598_v61 }
 0x3a4   : > { %v5728_v21 = vpop.f32.mrb[20].mxu1 }
 0x3a5   : > { %v5766_v15 = vadd.f32 %v5728_v21, %v7138_v53  ;;  %v3714_v27 = vpop.f32.mrb[21].mxu1 }
 0x3a6   : > { %v5767_v37 = vadd.f32 %v3714_v27, %v7140_v62  ;;  %v5729_v18 = vpop.f32.mrb[22].mxu1 }
 0x3a7   : > { %v3882_v44 = vmul.f32 %v5766_v15, %v7210_v12  ;;  %v5768_v59 = vadd.f32 %v5729_v18, %v7142_v50  ;;  %v3717_v5 = vpop.f32.mrb[23].mxu1 }
 0x3a8   : > { %v3880_v9 = vmul.f32 %v5767_v37, %v7210_v12  ;;  %v5769_v32 = vadd.f32 %v3717_v5, %v7144_v7 }
 0x3a9   : > { %v3921_v53 = vadd.f32 %v7216_v60, %v3882_v44  ;;  %v3883_v28 = vmul.f32 %v5768_v59, %v7210_v12 }
 0x3aa   : > { %v3919_v16 = vadd.f32 %v7216_v60, %v3880_v9  ;;  %v3881_v22 = vmul.f32 %v5769_v32, %v7210_v12 }
 0x3ab   : > { %v3922_v62 = vadd.f32 %v7216_v60, %v3883_v28  ;;  %v3953_v36 = vmax.f32 %v3921_v53, 0.0 }
 0x3ac   : > { %v3920_v29 = vadd.f32 %v7216_v60, %v3881_v22  ;;  %v5732_v24 = vpop.f32.mrb[24].mxu1  ;;  %v3951_v58 = vmax.f32 %v3919_v16, 0.0 }
 0x3ad   : > { %v3954_v50 = vmax.f32 %v3922_v62, 0.0  ;;  %v5770_v46 = vadd.f32 %v5732_v24, %v7148_v57  ;;  %v3730_v55 = vpop.f32.mrb[25].mxu1 }
 0x3ae   : > { %v3952_v7 = vmax.f32 %v3920_v29, 0.0  ;;  %v5771_v25 = vadd.f32 %v3730_v55, %v7150_v2  ;;  %v5733_v41 = vpop.f32.mrb[26].mxu1 }
 0x3af   : > { %v3984_v0 = vpack.c.bf16 %v3954_v50, %v3953_v36  ;;  %v3886_v8 = vmul.f32 %v5770_v46, %v7210_v12  ;;  %v5772_v10 = vadd.f32 %v5733_v41, %v7152_v35  ;;  %v3733_v61 = vpop.f32.mrb[27].mxu1 }
 0x3b0   : > { %v3983_v20 = vpack.c.bf16 %v3952_v7, %v3951_v58  ;;  %v3884_v31 = vmul.f32 %v5771_v25, %v7210_v12  ;;  %v5773_v49 = vadd.f32 %v3733_v61, %v7154_v13 }
 0x3b1   : > { %v3925_v40 = vadd.f32 %v7216_v60, %v3886_v8  ;;  %v3887_v57 = vmul.f32 %v5772_v10, %v7210_v12 }
 0x3b2   : > { %v3923_v21 = vadd.f32 %v7216_v60, %v3884_v31  ;;  %v3885_v2 = vmul.f32 %v5773_v49, %v7210_v12  ;;  %5083 = vmatmul.mubr.msk.bf16.vlgmr.msra.gmra.mrb[96].mxu0 %vm950_vm0, %v3983_v20 }
 0x3b3   : > { %v3926_v15 = vadd.f32 %v7216_v60, %v3887_v57  ;;  %4137 = vmatprep.mubr.bf16.mxu0 %v6258_v11  ;;  %v3957_v37 = vmax.f32 %v3925_v40, 0.0 }
 0x3b4   : > { %v3924_v35 = vadd.f32 %v7216_v60, %v3885_v2  ;;  %v5736_v27 = vpop.f32.mrb[28].mxu1  ;;  %v3955_v59 = vmax.f32 %v3923_v21, 0.0 }
 0x3b5   : > { %v3958_v18 = vmax.f32 %v3926_v15, 0.0  ;;  %v5774_v13 = vadd.f32 %v5736_v27, %v7158_v33  ;;  %v3746_v44 = vpop.f32.mrb[29].mxu1 }
 0x3b6   : > { %v3956_v5 = vmax.f32 %v3924_v35, 0.0  ;;  %v5775_v9 = vadd.f32 %v3746_v44, %v7160_v34  ;;  %v5737_v32 = vpop.f32.mrb[30].mxu1 }
 0x3b7   : > { %v3986_v53 = vpack.c.bf16 %v3958_v18, %v3957_v37  ;;  %v3890_v28 = vmul.f32 %v5774_v13, %v7210_v12  ;;  %v5776_v16 = vadd.f32 %v5737_v32, %v7162_v26  ;;  %v3749_v22 = vpop.f32.mrb[31].mxu1 }
 0x3b8   : > { %v3985_v62 = vpack.c.bf16 %v3956_v5, %v3955_v59  ;;  %v3888_v29 = vmul.f32 %v5775_v9, %v7210_v12  ;;  %v5777_v24 = vadd.f32 %v3749_v22, %v7164_v51 }
 0x3b9   : > { %v3929_v36 = vadd.f32 %v7216_v60, %v3890_v28  ;;  %v3891_v33 = vmul.f32 %v5776_v16, %v7210_v12 }
 0x3ba   : > { %v3927_v50 = vadd.f32 %v7216_v60, %v3888_v29  ;;  %v3889_v34 = vmul.f32 %v5777_v24, %v7210_v12  ;;  %5084 = vmatmul.mubr.msk.bf16.gmra.mrb[100].mxu0 %vm950_vm0, %v3984_v0 }
 0x3bb   : > { %v3930_v46 = vadd.f32 %v7216_v60, %v3891_v33  ;;  %4147 = vmatprep.mubr.bf16.mxu0 %v6258_v11  ;;  %v3961_v58 = vmax.f32 %v3929_v36, 0.0 }
 0x3bc   : > { %v3928_v26 = vadd.f32 %v7216_v60, %v3889_v34  ;;  %v5740_v55 = vpop.f32.mrb[0].mxu1  ;;  %v3959_v41 = vmax.f32 %v3927_v50, 0.0 }
 0x3bd   : > { %v3962_v7 = vmax.f32 %v3930_v46, 0.0  ;;  %v5778_v51 = vadd.f32 %v5740_v55, %v7065_v42  ;;  %v3762_v25 = vpop.f32.mrb[1].mxu1 }
 0x3be   : > { %v3960_v8 = vmax.f32 %v3928_v26, 0.0  ;;  %v5779_v10 = vadd.f32 %v3762_v25, %v7067_v43  ;;  %v5741_v61 = vpop.f32.mrb[2].mxu1 }
 0x3bf   : > { %v7259_v20 = vpack.c.bf16 %v3962_v7, %v3961_v58  ;;  %v3894_v0 = vmul.f32 %v5778_v51, %v7210_v12  ;;  %v5780_v31 = vadd.f32 %v5741_v61, %v7069_v3  ;;  %v3765_v49 = vpop.f32.mrb[3].mxu1 }
 0x3c0   : > { %v3987_v40 = vpack.c.bf16 %v3960_v8, %v3959_v41  ;;  %v3892_v57 = vmul.f32 %v5779_v10, %v7210_v12  ;;  %v5781_v21 = vadd.f32 %v3765_v49, %v7071_v4 }
 0x3c1   : > { %v3933_v42 = vadd.f32 %v7216_v60, %v3894_v0  ;;  %v3895_v2 = vmul.f32 %v5780_v31, %v7210_v12 }
 0x3c2   : > { %v3931_v15 = vadd.f32 %v7216_v60, %v3892_v57  ;;  %v3893_v43 = vmul.f32 %v5781_v21, %v7210_v12  ;;  %5085 = vmatmul.mubr.msk.bf16.gmra.mrb[104].mxu0 %vm950_vm0, %v3985_v62 }
 0x3c3   : > { %v3934_v35 = vadd.f32 %v7216_v60, %v3895_v2  ;;  %4157 = vmatprep.mubr.bf16.mxu0 %v6258_v11  ;;  %v3965_v37 = vmax.f32 %v3933_v42, 0.0 }
 0x3c4   : > { %v3932_v3 = vadd.f32 %v7216_v60, %v3893_v43  ;;  %v5744_v27 = vpop.f32.mrb[4].mxu1  ;;  %v3963_v44 = vmax.f32 %v3931_v15, 0.0 }
 0x3c5   : > { %v3966_v18 = vmax.f32 %v3934_v35, 0.0  ;;  %v5782_v4 = vadd.f32 %v5744_v27, %v7077_v19  ;;  %v3778_v13 = vpop.f32.mrb[5].mxu1 }
 0x3c6   : > { %v3964_v59 = vmax.f32 %v3932_v3, 0.0  ;;  %v5783_v5 = vadd.f32 %v3778_v13, %v7079_v30  ;;  %v5745_v9 = vpop.f32.mrb[6].mxu1 }
 0x3c7   : > { %v7275_v32 = vpack.c.bf16 %v3966_v18, %v3965_v37  ;;  %v3898_v28 = vmul.f32 %v5782_v4, %v7210_v12  ;;  %v5784_v16 = vadd.f32 %v5745_v9, %v7081_v47  ;;  %v3781_v22 = vpop.f32.mrb[7].mxu1 }
 0x3c8   : > { %v7279_v62 = vpack.c.bf16 %v3964_v59, %v3963_v44  ;;  %v3896_v29 = vmul.f32 %v5783_v5, %v7210_v12  ;;  %v5785_v24 = vadd.f32 %v3781_v22, %v7083_v48 }
 0x3c9   : > { %v3937_v19 = vadd.f32 %v7216_v60, %v3898_v28  ;;  %v3899_v36 = vmul.f32 %v5784_v16, %v7210_v12 }
 0x3ca   : > { %v3935_v30 = vadd.f32 %v7216_v60, %v3896_v29  ;;  %v3897_v33 = vmul.f32 %v5785_v24, %v7210_v12  ;;  %5086 = vmatmul.mubr.msk.bf16.gmra.mrb[108].mxu0 %vm950_vm0, %v3986_v53 }
 0x3cb   : > { %v3938_v50 = vadd.f32 %v7216_v60, %v3899_v36  ;;  %4167 = vmatprep.mubr.bf16.mxu0 %v6258_v11  ;;  %v3969_v46 = vmax.f32 %v3937_v19, 0.0 }
 0x3cc   : > { %v3936_v47 = vadd.f32 %v7216_v60, %v3897_v33  ;;  %v5748_v34 = vpop.f32.mrb[8].mxu1  ;;  %v3967_v58 = vmax.f32 %v3935_v30, 0.0 }
 0x3cd   : > { %v3970_v26 = vmax.f32 %v3938_v50, 0.0  ;;  %v5786_v48 = vadd.f32 %v5748_v34, %v7096_v6  ;;  %v3794_v55 = vpop.f32.mrb[9].mxu1 }
 0x3ce   : > { %v3968_v7 = vmax.f32 %v3936_v47, 0.0  ;;  %v5787_v51 = vadd.f32 %v3794_v55, %v7101_v14  ;;  %v5749_v25 = vpop.f32.mrb[10].mxu1 }
 0x3cf   : > { %v7293_v41 = vpack.c.bf16 %v3970_v26, %v3969_v46  ;;  %v3902_v53 = vmul.f32 %v5786_v48, %v7210_v12  ;;  %v5788_v8 = vadd.f32 %v5749_v25, %v7103_v17  ;;  %v3797_v10 = vpop.f32.mrb[11].mxu1 }
 0x3d0   : > { %v7297_v61 = vpack.c.bf16 %v3968_v7, %v3967_v58  ;;  %v3900_v0 = vmul.f32 %v5787_v51, %v7210_v12  ;;  %v5789_v31 = vadd.f32 %v3797_v10, %v7105_v23 }
 0x3d1   : > { %v3941_v6 = vadd.f32 %v7216_v60, %v3902_v53  ;;  %v3903_v49 = vmul.f32 %v5788_v8, %v7210_v12 }
 0x3d2   : > { %v3939_v14 = vadd.f32 %v7216_v60, %v3900_v0  ;;  %v3901_v57 = vmul.f32 %v5789_v31, %v7210_v12  ;;  %5087 = vmatmul.mubr.msk.bf16.gmra.mrb[112].mxu0 %vm950_vm0, %v3987_v40 }
 0x3d3   : > { %v3942_v21 = vadd.f32 %v7216_v60, %v3903_v49  ;;  %4177 = vmatprep.mubr.bf16.mxu0 %v6258_v11  ;;  %v3973_v2 = vmax.f32 %v3941_v6, 0.0 }
 0x3d4   : > { %v3940_v17 = vadd.f32 %v7216_v60, %v3901_v57  ;;  %v5752_v42 = vpop.f32.mrb[12].mxu1  ;;  %v3971_v35 = vmax.f32 %v3939_v14, 0.0 }
 0x3d5   : > { %v3974_v15 = vmax.f32 %v3942_v21, 0.0  ;;  %v5790_v23 = vadd.f32 %v5752_v42, %v7115_v38  ;;  %v3810_v43 = vpop.f32.mrb[13].mxu1  ;;  %v6161_v21 = vld [vmem:[%s6397_s25] sm:$0xff] }
 0x3d6   : > { %v3972_v3 = vmax.f32 %v3940_v17, 0.0  ;;  %v5791_v27 = vadd.f32 %v3810_v43, %v7117_v45  ;;  %v5753_v37 = vpop.f32.mrb[14].mxu1  ;;  %v4440_v17 = vunpack.c.l.bf16 %v6161_v21 }
 0x3d7   : > { %v3994_v18 = vpack.c.bf16 %v3974_v15, %v3973_v2  ;;  %v3906_v40 = vmul.f32 %v5790_v23, %v7210_v12  ;;  %v5792_v4 = vadd.f32 %v5753_v37, %v7119_v1  ;;  %v3813_v13 = vpop.f32.mrb[15].mxu1  ;;  %v4441_v15 = vunpack.c.h.bf16 %v6161_v21  ;;  %v6166_v21 = vld [vmem:[%s6397_s25 + $0x28] sm:$0xff] }
 0x3d8   : > { %v3993_v44 = vpack.c.bf16 %v3972_v3, %v3971_v35  ;;  %v3904_v59 = vmul.f32 %v5791_v27, %v7210_v12  ;;  %v5793_v5 = vadd.f32 %v3813_v13, %v7121_v54  ;;  %v6162_v3 = vld [vmem:[%s6397_s25 + $0x8] sm:$0xff] }
 0x3d9   : > { %v3945_v9 = vadd.f32 %v7216_v60, %v3906_v40  ;;  %v3907_v38 = vmul.f32 %v5792_v4, %v7210_v12  ;;  %v4442_v27 = vunpack.c.l.bf16 %v6162_v3  ;;  %v4443_v4 = vunpack.c.h.bf16 %v6162_v3 }
 0x3da   : > { %v3943_v28 = vadd.f32 %v7216_v60, %v3904_v59  ;;  %v3905_v45 = vmul.f32 %v5793_v5, %v7210_v12  ;;  %5088 = vmatmul.mubr.msk.bf16.gmra.mrb[116].mxu0 %vm950_vm0, %v7259_v20 }
 0x3db   : > { %v3946_v16 = vadd.f32 %v7216_v60, %v3907_v38  ;;  %4187 = vmatprep.mubr.bf16.mxu0 %v6258_v11  ;;  %v3977_v29 = vmax.f32 %v3945_v9, 0.0 }
 0x3dc   : > { %v3944_v1 = vadd.f32 %v7216_v60, %v3905_v45  ;;  %v5756_v22 = vpop.f32.mrb[16].mxu1  ;;  %v3975_v36 = vmax.f32 %v3943_v28, 0.0 }
 0x3dd   : > { %v3978_v54 = vmax.f32 %v3946_v16, 0.0  ;;  %v5794_v24 = vadd.f32 %v5756_v22, %v7128_v63  ;;  %v3826_v19 = vpop.f32.mrb[17].mxu1 }
 0x3de   : > { %v3976_v30 = vmax.f32 %v3944_v1, 0.0  ;;  %v5795_v33 = vadd.f32 %v3826_v19, %v7130_v56  ;;  %v5757_v50 = vpop.f32.mrb[18].mxu1 }
 0x3df   : > { %v3996_v47 = vpack.c.bf16 %v3978_v54, %v3977_v29  ;;  %v3910_v20 = vmul.f32 %v5794_v24, %v7210_v12  ;;  %v5796_v34 = vadd.f32 %v5757_v50, %v7132_v52  ;;  %v3829_v46 = vpop.f32.mrb[19].mxu1  ;;  %v6163_v29 = vld [vmem:[%s6397_s25 + $0x10] sm:$0xff] }
 0x3e0   : > { %v3995_v26 = vpack.c.bf16 %v3976_v30, %v3975_v36  ;;  %v3908_v48 = vmul.f32 %v5795_v33, %v7210_v12  ;;  %v5797_v55 = vadd.f32 %v3829_v46, %v7134_v39  ;;  %v4444_v54 = vunpack.c.l.bf16 %v6163_v29 }
 0x3e1   : > { %v3949_v58 = vadd.f32 %v7216_v60, %v3910_v20  ;;  %v3911_v63 = vmul.f32 %v5796_v34, %v7210_v12  ;;  %v4445_v30 = vunpack.c.h.bf16 %v6163_v29  ;;  %v6164_v20 = vld [vmem:[%s6397_s25 + $0x18] sm:$0xff] }
 0x3e2   : > { %v3947_v7 = vadd.f32 %v7216_v60, %v3908_v48  ;;  %v3909_v56 = vmul.f32 %v5797_v55, %v7210_v12  ;;  %5089 = vmatmul.mubr.msk.bf16.gmra.mrb[120].mxu0 %vm950_vm0, %v7279_v62  ;;  %v4290_v12 = vlaneseq  ;;  %v4288_v62 = vld [vmem:[%s7662_s8] sm:$0x3]  ;;  %v4446_v34 = vunpack.c.l.bf16 %v6164_v20 }
 0x3e3   : > { %v3950_v51 = vadd.f32 %v7216_v60, %v3911_v63  ;;  %4197 = vmatprep.mubr.bf16.mxu0 %v6258_v11  ;;  %v3981_v25 = vmax.f32 %v3949_v58, 0.0  ;;  %v4447_v55 = vunpack.c.h.bf16 %v6164_v20 }
 0x3e4   : > { %v3948_v52 = vadd.f32 %v7216_v60, %v3909_v56  ;;  %v3979_v39 = vmax.f32 %v3947_v7, 0.0  ;;  %v4291_v60 = vshrl.u32 %v4290_v12, 7 }
 0x3e5   : > { %v3982_v53 = vmax.f32 %v3950_v51, 0.0 }
 0x3e6   : > { %v3980_v8 = vmax.f32 %v3948_v52, 0.0 }
 0x3e7   : > { %v3998_v10 = vpack.c.bf16 %v3982_v53, %v3981_v25 }
 0x3e8   : > { %v3997_v0 = vpack.c.bf16 %v3980_v8, %v3979_v39 }
 0x3ea   : > { %5090 = vmatmul.mubr.msk.bf16.gmra.mrb[124].mxu0 %vm950_vm0, %v7275_v32  ;;  %v4292_v32 = vsub.s32 0, %v4291_v60 }
 0x3eb   : > { %4207 = vmatprep.mubr.bf16.mxu0 %v6258_v11 }
 0x3ec   : > { %v7365_v31 = vrot.slane %v4288_v62, %v4292_v32 }
 0x3f2   : > { %5091 = vmatmul.mubr.msk.bf16.gmra.mrb[128].mxu0 %vm950_vm0, %v7297_v61  ;;  %v4364_v61 = vld [vmem:[%s7663_s9] sm:$0x3] }
 0x3f3   : > { %4217 = vmatprep.mubr.bf16.mxu0 %v6258_v11 }
 0x3fa   : > { %5092 = vmatmul.mubr.msk.bf16.gmra.mrb[132].mxu0 %vm950_vm0, %v7293_v41  ;;  %v4296_v41 = vsub.s32 1, %v4291_v60 }
 0x3fb   : > { %4227 = vmatprep.mubr.bf16.mxu0 %v6258_v11 }
 0x3fc   : > { %v7367_v6 = vrot.slane %v4288_v62, %v4296_v41  ;;  %v7372_v14 = vrot.slane %v4364_v61, %v4296_v41 }
 0x402   : > { %5093 = vmatmul.mubr.msk.bf16.gmra.mrb[136].mxu0 %vm950_vm0, %v3993_v44 }
 0x403   : > { %4237 = vmatprep.mubr.bf16.mxu0 %v6258_v11 }
 0x40a   : > { %5094 = vmatmul.mubr.msk.bf16.gmra.mrb[140].mxu0 %vm950_vm0, %v3994_v18 }
 0x40b   : > { %4247 = vmatprep.mubr.bf16.mxu0 %v6258_v11 }
 0x412   : > { %5095 = vmatmul.mubr.msk.bf16.gmra.mrb[144].mxu0 %vm950_vm0, %v3995_v26 }
 0x413   : > { %4257 = vmatprep.mubr.bf16.mxu0 %v6258_v11 }
 0x41a   : > { %5096 = vmatmul.mubr.msk.bf16.gmra.mrb[148].mxu0 %vm950_vm0, %v3996_v47 }
 0x41b   : > { %4267 = vmatprep.mubr.bf16.mxu0 %v6258_v11 }
 0x422   : > { %5097 = vmatmul.mubr.msk.bf16.gmra.mrb[152].mxu0 %vm950_vm0, %v3997_v0  ;;  %v6165_v0 = vld [vmem:[%s6397_s25 + $0x20] sm:$0xff] }
 0x423   : > { %4277 = vmatprep.mubr.bf16.mxu0 %v6258_v11  ;;  %v7369_v11 = vrot.slane %v4364_v61, %v4292_v32  ;;  %v4448_v12 = vunpack.c.l.bf16 %v6165_v0  ;;  %v4449_v41 = vunpack.c.h.bf16 %v6165_v0 }
 0x42a   : > { %5098 = vmatmul.mubr.msk.bf16.gmra.mrb[156].mxu0 %vm950_vm0, %v3998_v10 }
 0x485   : > { %v4129_v49 = vpop.f32.mrb[96].mxu0 }
 0x486   : > { %v4300_v57 = vmul.f32 %v7365_v31, %v4129_v49  ;;  %v4131_v42 = vpop.f32.mrb[97].mxu0 }
 0x487   : > { %v4301_v2 = vmul.f32 %v7367_v6, %v4131_v42  ;;  %v4133_v23 = vpop.f32.mrb[98].mxu0 }
 0x488   : > { %v4376_v43 = vadd.f32 %v7369_v11, %v4300_v57  ;;  %v4302_v35 = vmul.f32 %v7365_v31, %v4133_v23  ;;  %v4135_v37 = vpop.f32.mrb[99].mxu0  ;;  %v4451_v23 = vunpack.c.h.bf16 %v6166_v21 }
 0x489   : > { %v4377_v18 = vadd.f32 %v7372_v14, %v4301_v2  ;;  %v4303_v40 = vmul.f32 %v7367_v6, %v4135_v37 }
 0x48a   : > { %v4504_v13 = vadd.f32 %v4440_v17, %v4376_v43  ;;  %v4378_v44 = vadd.f32 %v7369_v11, %v4302_v35  ;;  %v4450_v17 = vunpack.c.l.bf16 %v6166_v21 }
 0x48b   : > { %v4505_v59 = vadd.f32 %v4441_v15, %v4377_v18  ;;  %v4379_v5 = vadd.f32 %v7372_v14, %v4303_v40 }
 0x48c   : > { %v4568_v9 = vmax.f32 %v4504_v13, 0.0  ;;  %v4506_v38 = vadd.f32 %v4442_v27, %v4378_v44 }
 0x48d   : > { %v4569_v28 = vmax.f32 %v4505_v59, 0.0  ;;  %v4507_v45 = vadd.f32 %v4443_v4, %v4379_v5  ;;  %v4139_v16 = vpop.f32.mrb[100].mxu0  ;;  %v6167_v5 = vld [vmem:[%s6397_s25 + $0x30] sm:$0xff] }
 0x48e   : > { %4632 = vst [vmem:[%s7386_s30] sm:$0xff] %v4568_v9  ;;  %v4570_v1 = vmax.f32 %v4506_v38, 0.0  ;;  %v4304_v22 = vmul.f32 %v7365_v31, %v4139_v16  ;;  %v4141_v24 = vpop.f32.mrb[101].mxu0  ;;  %v4452_v9 = vunpack.c.l.bf16 %v6167_v5  ;;  %v4453_v16 = vunpack.c.h.bf16 %v6167_v5 }
 0x48f   : > { %4633 = vst [vmem:[%s7386_s30 + $0x8] sm:$0xff] %v4569_v28  ;;  %v4571_v19 = vmax.f32 %v4507_v45, 0.0  ;;  %v4305_v36 = vmul.f32 %v7367_v6, %v4141_v24  ;;  %v4143_v33 = vpop.f32.mrb[102].mxu0 }
 0x490   : > { %4634 = vst [vmem:[%s7386_s30 + $0x10] sm:$0xff] %v4570_v1  ;;  %v4380_v50 = vadd.f32 %v7369_v11, %v4304_v22  ;;  %v4306_v47 = vmul.f32 %v7365_v31, %v4143_v33  ;;  %v4145_v46 = vpop.f32.mrb[103].mxu0 }
 0x491   : > { %4635 = vst [vmem:[%s7386_s30 + $0x18] sm:$0xff] %v4571_v19  ;;  %v4381_v26 = vadd.f32 %v7372_v14, %v4305_v36  ;;  %v4307_v48 = vmul.f32 %v7367_v6, %v4145_v46 }
 0x492   : > { %v4508_v58 = vadd.f32 %v4444_v54, %v4380_v50  ;;  %v4382_v63 = vadd.f32 %v7369_v11, %v4306_v47  ;;  %v6168_v54 = vld [vmem:[%s6397_s25 + $0x38] sm:$0xff] }
 0x493   : > { %v4509_v7 = vadd.f32 %v4445_v30, %v4381_v26  ;;  %v4383_v56 = vadd.f32 %v7372_v14, %v4307_v48  ;;  %v4454_v24 = vunpack.c.l.bf16 %v6168_v54  ;;  %v4455_v33 = vunpack.c.h.bf16 %v6168_v54 }
 0x494   : > { %v4572_v51 = vmax.f32 %v4508_v58, 0.0  ;;  %v4510_v52 = vadd.f32 %v4446_v34, %v4382_v63 }
 0x495   : > { %v4573_v25 = vmax.f32 %v4509_v7, 0.0  ;;  %v4511_v53 = vadd.f32 %v4447_v55, %v4383_v56  ;;  %v4149_v39 = vpop.f32.mrb[104].mxu0  ;;  %v6169_v56 = vld [vmem:[%s6397_s25 + $0x40] sm:$0xff] }
 0x496   : > { %4636 = vst [vmem:[%s7386_s30 + $0x20] sm:$0xff] %v4572_v51  ;;  %v4574_v8 = vmax.f32 %v4510_v52, 0.0  ;;  %v4308_v10 = vmul.f32 %v7365_v31, %v4149_v39  ;;  %v4151_v60 = vpop.f32.mrb[105].mxu0  ;;  %v4456_v51 = vunpack.c.l.bf16 %v6169_v56  ;;  %v4457_v39 = vunpack.c.h.bf16 %v6169_v56 }
 0x497   : > { %4637 = vst [vmem:[%s7386_s30 + $0x28] sm:$0xff] %v4573_v25  ;;  %v4575_v32 = vmax.f32 %v4511_v53, 0.0  ;;  %v4309_v62 = vmul.f32 %v7367_v6, %v4151_v60  ;;  %v4153_v61 = vpop.f32.mrb[106].mxu0 }
 0x498   : > { %4638 = vst [vmem:[%s7386_s30 + $0x30] sm:$0xff] %v4574_v8  ;;  %v4384_v49 = vadd.f32 %v7369_v11, %v4308_v10  ;;  %v4310_v57 = vmul.f32 %v7365_v31, %v4153_v61  ;;  %v4155_v42 = vpop.f32.mrb[107].mxu0 }
 0x499   : > { %4639 = vst [vmem:[%s7386_s30 + $0x38] sm:$0xff] %v4575_v32  ;;  %v4385_v2 = vadd.f32 %v7372_v14, %v4309_v62  ;;  %v4311_v15 = vmul.f32 %v7367_v6, %v4155_v42 }
 0x49a   : > { %v4512_v43 = vadd.f32 %v4448_v12, %v4384_v49  ;;  %v4386_v35 = vadd.f32 %v7369_v11, %v4310_v57  ;;  %v6170_v12 = vld [vmem:[%s6397_s25 + $0x48] sm:$0xff] }
 0x49b   : > { %v4513_v3 = vadd.f32 %v4449_v41, %v4385_v2  ;;  %v4387_v27 = vadd.f32 %v7372_v14, %v4311_v15  ;;  %v4458_v60 = vunpack.c.l.bf16 %v6170_v12  ;;  %v4459_v61 = vunpack.c.h.bf16 %v6170_v12 }
 0x49c   : > { %v4576_v37 = vmax.f32 %v4512_v43, 0.0  ;;  %v4514_v18 = vadd.f32 %v4450_v17, %v4386_v35 }
 0x49d   : > { %v4577_v40 = vmax.f32 %v4513_v3, 0.0  ;;  %v4515_v4 = vadd.f32 %v4451_v23, %v4387_v27  ;;  %v4159_v13 = vpop.f32.mrb[108].mxu0  ;;  %v6171_v27 = vld [vmem:[%s6397_s25 + $0x50] sm:$0xff] }
 0x49e   : > { %4640 = vst [vmem:[%s7386_s30 + $0x40] sm:$0xff] %v4576_v37  ;;  %v4578_v44 = vmax.f32 %v4514_v18, 0.0  ;;  %v4312_v59 = vmul.f32 %v7365_v31, %v4159_v13  ;;  %v4161_v38 = vpop.f32.mrb[109].mxu0  ;;  %v4460_v37 = vunpack.c.l.bf16 %v6171_v27  ;;  %v4461_v13 = vunpack.c.h.bf16 %v6171_v27 }
 0x49f   : > { %4641 = vst [vmem:[%s7386_s30 + $0x48] sm:$0xff] %v4577_v40  ;;  %v4579_v28 = vmax.f32 %v4515_v4, 0.0  ;;  %v4313_v45 = vmul.f32 %v7367_v6, %v4161_v38  ;;  %v4163_v1 = vpop.f32.mrb[110].mxu0 }
 0x4a0   : > { %4642 = vst [vmem:[%s7386_s30 + $0x50] sm:$0xff] %v4578_v44  ;;  %v4388_v22 = vadd.f32 %v7369_v11, %v4312_v59  ;;  %v4314_v29 = vmul.f32 %v7365_v31, %v4163_v1  ;;  %v4165_v19 = vpop.f32.mrb[111].mxu0 }
 0x4a1   : > { %4643 = vst [vmem:[%s7386_s30 + $0x58] sm:$0xff] %v4579_v28  ;;  %v4389_v36 = vadd.f32 %v7372_v14, %v4313_v45  ;;  %v4315_v30 = vmul.f32 %v7367_v6, %v4165_v19 }
 0x4a2   : > { %v4516_v50 = vadd.f32 %v4452_v9, %v4388_v22  ;;  %v4390_v47 = vadd.f32 %v7369_v11, %v4314_v29  ;;  %v6172_v9 = vld [vmem:[%s6397_s25 + $0x58] sm:$0xff] }
 0x4a3   : > { %v4517_v20 = vadd.f32 %v4453_v16, %v4389_v36  ;;  %v4391_v34 = vadd.f32 %v7372_v14, %v4315_v30  ;;  %v4462_v38 = vunpack.c.l.bf16 %v6172_v9  ;;  %v4463_v1 = vunpack.c.h.bf16 %v6172_v9 }
 0x4a4   : > { %v4580_v46 = vmax.f32 %v4516_v50, 0.0  ;;  %v4518_v26 = vadd.f32 %v4454_v24, %v4390_v47 }
 0x4a5   : > { %v4581_v48 = vmax.f32 %v4517_v20, 0.0  ;;  %v4519_v55 = vadd.f32 %v4455_v33, %v4391_v34  ;;  %v4169_v58 = vpop.f32.mrb[112].mxu0  ;;  %v6173_v34 = vld [vmem:[%s6397_s25 + $0x60] sm:$0xff] }
 0x4a6   : > { %4644 = vst [vmem:[%s7386_s30 + $0x60] sm:$0xff] %v4580_v46  ;;  %v4582_v63 = vmax.f32 %v4518_v26, 0.0  ;;  %v4316_v7 = vmul.f32 %v7365_v31, %v4169_v58  ;;  %v4171_v52 = vpop.f32.mrb[113].mxu0  ;;  %v4464_v46 = vunpack.c.l.bf16 %v6173_v34  ;;  %v4465_v58 = vunpack.c.h.bf16 %v6173_v34 }
 0x4a7   : > { %4645 = vst [vmem:[%s7386_s30 + $0x68] sm:$0xff] %v4581_v48  ;;  %v4583_v25 = vmax.f32 %v4519_v55, 0.0  ;;  %v4317_v53 = vmul.f32 %v7367_v6, %v4171_v52  ;;  %v4173_v8 = vpop.f32.mrb[114].mxu0 }
 0x4a8   : > { %4646 = vst [vmem:[%s7386_s30 + $0x70] sm:$0xff] %v4582_v63  ;;  %v4392_v10 = vadd.f32 %v7369_v11, %v4316_v7  ;;  %v4318_v0 = vmul.f32 %v7365_v31, %v4173_v8  ;;  %v4175_v32 = vpop.f32.mrb[115].mxu0 }
 0x4a9   : > { %4647 = vst [vmem:[%s7386_s30 + $0x78] sm:$0xff] %v4583_v25  ;;  %v4393_v62 = vadd.f32 %v7372_v14, %v4317_v53  ;;  %v4319_v41 = vmul.f32 %v7367_v6, %v4175_v32 }
 0x4aa   : > { %v4520_v49 = vadd.f32 %v4456_v51, %v4392_v10  ;;  %v4394_v57 = vadd.f32 %v7369_v11, %v4318_v0  ;;  %v6174_v51 = vld [vmem:[%s6397_s25 + $0x68] sm:$0xff] }
 0x4ab   : > { %v4521_v21 = vadd.f32 %v4457_v39, %v4393_v62  ;;  %v4395_v17 = vadd.f32 %v7372_v14, %v4319_v41  ;;  %v4466_v52 = vunpack.c.l.bf16 %v6174_v51  ;;  %v4467_v8 = vunpack.c.h.bf16 %v6174_v51 }
 0x4ac   : > { %v4584_v42 = vmax.f32 %v4520_v49, 0.0  ;;  %v4522_v2 = vadd.f32 %v4458_v60, %v4394_v57 }
 0x4ad   : > { %v4585_v15 = vmax.f32 %v4521_v21, 0.0  ;;  %v4523_v23 = vadd.f32 %v4459_v61, %v4395_v17  ;;  %v4179_v43 = vpop.f32.mrb[116].mxu0  ;;  %v6175_v17 = vld [vmem:[%s6397_s25 + $0x70] sm:$0xff] }
 0x4ae   : > { %4648 = vst [vmem:[%s7386_s30 + $0x80] sm:$0xff] %v4584_v42  ;;  %v4586_v35 = vmax.f32 %v4522_v2, 0.0  ;;  %v4320_v3 = vmul.f32 %v7365_v31, %v4179_v43  ;;  %v4181_v18 = vpop.f32.mrb[117].mxu0  ;;  %v4468_v42 = vunpack.c.l.bf16 %v6175_v17  ;;  %v4469_v43 = vunpack.c.h.bf16 %v6175_v17 }
 0x4af   : > { %4649 = vst [vmem:[%s7386_s30 + $0x88] sm:$0xff] %v4585_v15  ;;  %v4587_v40 = vmax.f32 %v4523_v23, 0.0  ;;  %v4321_v4 = vmul.f32 %v7367_v6, %v4181_v18  ;;  %v4183_v44 = vpop.f32.mrb[118].mxu0 }
 0x4b0   : > { %4650 = vst [vmem:[%s7386_s30 + $0x90] sm:$0xff] %v4586_v35  ;;  %v4396_v59 = vadd.f32 %v7369_v11, %v4320_v3  ;;  %v4322_v5 = vmul.f32 %v7365_v31, %v4183_v44  ;;  %v4185_v28 = vpop.f32.mrb[119].mxu0 }
 0x4b1   : > { %4651 = vst [vmem:[%s7386_s30 + $0x98] sm:$0xff] %v4587_v40  ;;  %v4397_v45 = vadd.f32 %v7372_v14, %v4321_v4  ;;  %v4323_v16 = vmul.f32 %v7367_v6, %v4185_v28 }
 0x4b2   : > { %v4524_v22 = vadd.f32 %v4460_v37, %v4396_v59  ;;  %v4398_v29 = vadd.f32 %v7369_v11, %v4322_v5  ;;  %v6176_v37 = vld [vmem:[%s6397_s25 + $0x78] sm:$0xff] }
 0x4b3   : > { %v4525_v54 = vadd.f32 %v4461_v13, %v4397_v45  ;;  %v4399_v24 = vadd.f32 %v7372_v14, %v4323_v16  ;;  %v4470_v18 = vunpack.c.l.bf16 %v6176_v37  ;;  %v4471_v44 = vunpack.c.h.bf16 %v6176_v37 }
 0x4b4   : > { %v4588_v19 = vmax.f32 %v4524_v22, 0.0  ;;  %v4526_v36 = vadd.f32 %v4462_v38, %v4398_v29 }
 0x4b5   : > { %v4589_v30 = vmax.f32 %v4525_v54, 0.0  ;;  %v4527_v33 = vadd.f32 %v4463_v1, %v4399_v24  ;;  %v4189_v50 = vpop.f32.mrb[120].mxu0  ;;  %v6177_v24 = vld [vmem:[%s6397_s25 + $0x80] sm:$0xff] }
 0x4b6   : > { %4652 = vst [vmem:[%s7386_s30 + $0xa0] sm:$0xff] %v4588_v19  ;;  %v4590_v47 = vmax.f32 %v4526_v36, 0.0  ;;  %v4324_v20 = vmul.f32 %v7365_v31, %v4189_v50  ;;  %v4191_v26 = vpop.f32.mrb[121].mxu0  ;;  %v4472_v19 = vunpack.c.l.bf16 %v6177_v24  ;;  %v4473_v50 = vunpack.c.h.bf16 %v6177_v24 }
 0x4b7   : > { %4653 = vst [vmem:[%s7386_s30 + $0xa8] sm:$0xff] %v4589_v30  ;;  %v4591_v48 = vmax.f32 %v4527_v33, 0.0  ;;  %v4325_v55 = vmul.f32 %v7367_v6, %v4191_v26  ;;  %v4193_v63 = vpop.f32.mrb[122].mxu0 }
 0x4b8   : > { %4654 = vst [vmem:[%s7386_s30 + $0xb0] sm:$0xff] %v4590_v47  ;;  %v4400_v7 = vadd.f32 %v7369_v11, %v4324_v20  ;;  %v4326_v56 = vmul.f32 %v7365_v31, %v4193_v63  ;;  %v4195_v25 = vpop.f32.mrb[123].mxu0 }
 0x4b9   : > { %4655 = vst [vmem:[%s7386_s30 + $0xb8] sm:$0xff] %v4591_v48  ;;  %v4401_v53 = vadd.f32 %v7372_v14, %v4325_v55  ;;  %v4327_v39 = vmul.f32 %v7367_v6, %v4195_v25 }
 0x4ba   : > { %v4528_v10 = vadd.f32 %v4464_v46, %v4400_v7  ;;  %v4402_v0 = vadd.f32 %v7369_v11, %v4326_v56  ;;  %v6178_v46 = vld [vmem:[%s6397_s25 + $0x88] sm:$0xff] }
 0x4bb   : > { %v4529_v12 = vadd.f32 %v4465_v58, %v4401_v53  ;;  %v4403_v60 = vadd.f32 %v7372_v14, %v4327_v39  ;;  %v4474_v26 = vunpack.c.l.bf16 %v6178_v46  ;;  %v4475_v63 = vunpack.c.h.bf16 %v6178_v46 }
 0x4bc   : > { %v4592_v32 = vmax.f32 %v4528_v10, 0.0  ;;  %v4530_v62 = vadd.f32 %v4466_v52, %v4402_v0 }
 0x4bd   : > { %v4593_v41 = vmax.f32 %v4529_v12, 0.0  ;;  %v4531_v61 = vadd.f32 %v4467_v8, %v4403_v60  ;;  %v4199_v49 = vpop.f32.mrb[124].mxu0  ;;  %v6179_v60 = vld [vmem:[%s6397_s25 + $0x90] sm:$0xff] }
 0x4be   : > { %4656 = vst [vmem:[%s7386_s30 + $0xc0] sm:$0xff] %v4592_v32  ;;  %v4594_v57 = vmax.f32 %v4530_v62, 0.0  ;;  %v4328_v21 = vmul.f32 %v7365_v31, %v4199_v49  ;;  %v4201_v2 = vpop.f32.mrb[125].mxu0  ;;  %v4476_v32 = vunpack.c.l.bf16 %v6179_v60  ;;  %v4477_v49 = vunpack.c.h.bf16 %v6179_v60 }
 0x4bf   : > { %4657 = vst [vmem:[%s7386_s30 + $0xc8] sm:$0xff] %v4593_v41  ;;  %v4595_v15 = vmax.f32 %v4531_v61, 0.0  ;;  %v4329_v23 = vmul.f32 %v7367_v6, %v4201_v2  ;;  %v4203_v35 = vpop.f32.mrb[126].mxu0 }
 0x4c0   : > { %4658 = vst [vmem:[%s7386_s30 + $0xd0] sm:$0xff] %v4594_v57  ;;  %v4404_v3 = vadd.f32 %v7369_v11, %v4328_v21  ;;  %v4330_v27 = vmul.f32 %v7365_v31, %v4203_v35  ;;  %v4205_v40 = vpop.f32.mrb[127].mxu0 }
 0x4c1   : > { %4659 = vst [vmem:[%s7386_s30 + $0xd8] sm:$0xff] %v4595_v15  ;;  %v4405_v4 = vadd.f32 %v7372_v14, %v4329_v23  ;;  %v4331_v13 = vmul.f32 %v7367_v6, %v4205_v40 }
 0x4c2   : > { %v4532_v59 = vadd.f32 %v4468_v42, %v4404_v3  ;;  %v4406_v5 = vadd.f32 %v7369_v11, %v4330_v27  ;;  %v6180_v42 = vld [vmem:[%s6397_s25 + $0x98] sm:$0xff] }
 0x4c3   : > { %v4533_v9 = vadd.f32 %v4469_v43, %v4405_v4  ;;  %v4407_v38 = vadd.f32 %v7372_v14, %v4331_v13  ;;  %v4478_v2 = vunpack.c.l.bf16 %v6180_v42  ;;  %v4479_v35 = vunpack.c.h.bf16 %v6180_v42 }
 0x4c4   : > { %v4596_v28 = vmax.f32 %v4532_v59, 0.0  ;;  %v4534_v45 = vadd.f32 %v4470_v18, %v4406_v5 }
 0x4c5   : > { %v4597_v16 = vmax.f32 %v4533_v9, 0.0  ;;  %v4535_v1 = vadd.f32 %v4471_v44, %v4407_v38  ;;  %v4209_v22 = vpop.f32.mrb[128].mxu0  ;;  %v6181_v38 = vld [vmem:[%s6397_s25 + $0xa0] sm:$0xff] }
 0x4c6   : > { %4660 = vst [vmem:[%s7386_s30 + $0xe0] sm:$0xff] %v4596_v28  ;;  %v4598_v29 = vmax.f32 %v4534_v45, 0.0  ;;  %v4332_v54 = vmul.f32 %v7365_v31, %v4209_v22  ;;  %v4211_v36 = vpop.f32.mrb[129].mxu0  ;;  %v4480_v28 = vunpack.c.l.bf16 %v6181_v38  ;;  %v4481_v22 = vunpack.c.h.bf16 %v6181_v38 }
 0x4c7   : > { %4661 = vst [vmem:[%s7386_s30 + $0xe8] sm:$0xff] %v4597_v16  ;;  %v4599_v30 = vmax.f32 %v4535_v1, 0.0  ;;  %v4333_v33 = vmul.f32 %v7367_v6, %v4211_v36  ;;  %v4213_v47 = vpop.f32.mrb[130].mxu0 }
 0x4c8   : > { %4662 = vst [vmem:[%s7386_s30 + $0xf0] sm:$0xff] %v4598_v29  ;;  %v4408_v20 = vadd.f32 %v7369_v11, %v4332_v54  ;;  %v4334_v34 = vmul.f32 %v7365_v31, %v4213_v47  ;;  %v4215_v48 = vpop.f32.mrb[131].mxu0 }
 0x4c9   : > { %4663 = vst [vmem:[%s7386_s30 + $0xf8] sm:$0xff] %v4599_v30  ;;  %v4409_v55 = vadd.f32 %v7372_v14, %v4333_v33  ;;  %v4335_v58 = vmul.f32 %v7367_v6, %v4215_v48 }
 0x4ca   : > { %v4536_v7 = vadd.f32 %v4472_v19, %v4408_v20  ;;  %v4410_v56 = vadd.f32 %v7369_v11, %v4334_v34  ;;  %v6182_v19 = vld [vmem:[%s6397_s25 + $0xa8] sm:$0xff] }
 0x4cb   : > { %v4537_v51 = vadd.f32 %v4473_v50, %v4409_v55  ;;  %v4411_v52 = vadd.f32 %v7372_v14, %v4335_v58  ;;  %v4482_v36 = vunpack.c.l.bf16 %v6182_v19  ;;  %v4483_v47 = vunpack.c.h.bf16 %v6182_v19 }
 0x4cc   : > { %v4600_v25 = vmax.f32 %v4536_v7, 0.0  ;;  %v4538_v53 = vadd.f32 %v4474_v26, %v4410_v56 }
 0x4cd   : > { %v4601_v39 = vmax.f32 %v4537_v51, 0.0  ;;  %v4539_v8 = vadd.f32 %v4475_v63, %v4411_v52  ;;  %v4219_v10 = vpop.f32.mrb[132].mxu0  ;;  %v6183_v52 = vld [vmem:[%s6397_s25 + $0xb0] sm:$0xff] }
 0x4ce   : > { %4664 = vst [vmem:[%s7386_s30 + $0x100] sm:$0xff] %v4600_v25  ;;  %v4602_v0 = vmax.f32 %v4538_v53, 0.0  ;;  %v4336_v12 = vmul.f32 %v7365_v31, %v4219_v10  ;;  %v4221_v62 = vpop.f32.mrb[133].mxu0  ;;  %v4484_v25 = vunpack.c.l.bf16 %v6183_v52  ;;  %v4485_v10 = vunpack.c.h.bf16 %v6183_v52 }
 0x4cf   : > { %4665 = vst [vmem:[%s7386_s30 + $0x108] sm:$0xff] %v4601_v39  ;;  %v4603_v41 = vmax.f32 %v4539_v8, 0.0  ;;  %v4337_v61 = vmul.f32 %v7367_v6, %v4221_v62  ;;  %v4223_v57 = vpop.f32.mrb[134].mxu0 }
 0x4d0   : > { %4666 = vst [vmem:[%s7386_s30 + $0x110] sm:$0xff] %v4602_v0  ;;  %v4412_v21 = vadd.f32 %v7369_v11, %v4336_v12  ;;  %v4338_v17 = vmul.f32 %v7365_v31, %v4223_v57  ;;  %v4225_v15 = vpop.f32.mrb[135].mxu0 }
 0x4d1   : > { %4667 = vst [vmem:[%s7386_s30 + $0x118] sm:$0xff] %v4603_v41  ;;  %v4413_v23 = vadd.f32 %v7372_v14, %v4337_v61  ;;  %v4339_v43 = vmul.f32 %v7367_v6, %v4225_v15 }
 0x4d2   : > { %v4540_v3 = vadd.f32 %v4476_v32, %v4412_v21  ;;  %v4414_v27 = vadd.f32 %v7369_v11, %v4338_v17  ;;  %v6184_v32 = vld [vmem:[%s6397_s25 + $0xb8] sm:$0xff] }
 0x4d3   : > { %v4541_v37 = vadd.f32 %v4477_v49, %v4413_v23  ;;  %v4415_v18 = vadd.f32 %v7372_v14, %v4339_v43  ;;  %v4486_v62 = vunpack.c.l.bf16 %v6184_v32  ;;  %v4487_v57 = vunpack.c.h.bf16 %v6184_v32 }
 0x4d4   : > { %v4604_v40 = vmax.f32 %v4540_v3, 0.0  ;;  %v4542_v4 = vadd.f32 %v4478_v2, %v4414_v27 }
 0x4d5   : > { %v4605_v13 = vmax.f32 %v4541_v37, 0.0  ;;  %v4543_v44 = vadd.f32 %v4479_v35, %v4415_v18  ;;  %v4229_v59 = vpop.f32.mrb[136].mxu0  ;;  %v6185_v18 = vld [vmem:[%s6397_s25 + $0xc0] sm:$0xff] }
 0x4d6   : > { %4668 = vst [vmem:[%s7386_s30 + $0x120] sm:$0xff] %v4604_v40  ;;  %v4606_v5 = vmax.f32 %v4542_v4, 0.0  ;;  %v4340_v9 = vmul.f32 %v7365_v31, %v4229_v59  ;;  %v4231_v45 = vpop.f32.mrb[137].mxu0  ;;  %v4488_v40 = vunpack.c.l.bf16 %v6185_v18  ;;  %v4489_v59 = vunpack.c.h.bf16 %v6185_v18 }
 0x4d7   : > { %4669 = vst [vmem:[%s7386_s30 + $0x128] sm:$0xff] %v4605_v13  ;;  %v4607_v16 = vmax.f32 %v4543_v44, 0.0  ;;  %v4341_v1 = vmul.f32 %v7367_v6, %v4231_v45  ;;  %v4233_v29 = vpop.f32.mrb[138].mxu0 }
 0x4d8   : > { %4670 = vst [vmem:[%s7386_s30 + $0x130] sm:$0xff] %v4606_v5  ;;  %v4416_v54 = vadd.f32 %v7369_v11, %v4340_v9  ;;  %v4342_v24 = vmul.f32 %v7365_v31, %v4233_v29  ;;  %v4235_v30 = vpop.f32.mrb[139].mxu0 }
 0x4d9   : > { %4671 = vst [vmem:[%s7386_s30 + $0x138] sm:$0xff] %v4607_v16  ;;  %v4417_v33 = vadd.f32 %v7372_v14, %v4341_v1  ;;  %v4343_v50 = vmul.f32 %v7367_v6, %v4235_v30 }
 0x4da   : > { %v4544_v20 = vadd.f32 %v4480_v28, %v4416_v54  ;;  %v4418_v34 = vadd.f32 %v7369_v11, %v4342_v24  ;;  %v6186_v28 = vld [vmem:[%s6397_s25 + $0xc8] sm:$0xff] }
 0x4db   : > { %v4545_v46 = vadd.f32 %v4481_v22, %v4417_v33  ;;  %v4419_v26 = vadd.f32 %v7372_v14, %v4343_v50  ;;  %v4490_v45 = vunpack.c.l.bf16 %v6186_v28  ;;  %v4491_v29 = vunpack.c.h.bf16 %v6186_v28 }
 0x4dc   : > { %v4608_v48 = vmax.f32 %v4544_v20, 0.0  ;;  %v4546_v55 = vadd.f32 %v4482_v36, %v4418_v34 }
 0x4dd   : > { %v4609_v58 = vmax.f32 %v4545_v46, 0.0  ;;  %v4547_v63 = vadd.f32 %v4483_v47, %v4419_v26  ;;  %v4239_v7 = vpop.f32.mrb[140].mxu0  ;;  %v6187_v26 = vld [vmem:[%s6397_s25 + $0xd0] sm:$0xff] }
 0x4de   : > { %4672 = vst [vmem:[%s7386_s30 + $0x140] sm:$0xff] %v4608_v48  ;;  %v4610_v56 = vmax.f32 %v4546_v55, 0.0  ;;  %v4344_v51 = vmul.f32 %v7365_v31, %v4239_v7  ;;  %v4241_v53 = vpop.f32.mrb[141].mxu0  ;;  %v4492_v48 = vunpack.c.l.bf16 %v6187_v26  ;;  %v4493_v7 = vunpack.c.h.bf16 %v6187_v26 }
 0x4df   : > { %4673 = vst [vmem:[%s7386_s30 + $0x148] sm:$0xff] %v4609_v58  ;;  %v4611_v39 = vmax.f32 %v4547_v63, 0.0  ;;  %v4345_v8 = vmul.f32 %v7367_v6, %v4241_v53  ;;  %v4243_v0 = vpop.f32.mrb[142].mxu0 }
 0x4e0   : > { %4674 = vst [vmem:[%s7386_s30 + $0x150] sm:$0xff] %v4610_v56  ;;  %v4420_v12 = vadd.f32 %v7369_v11, %v4344_v51  ;;  %v4346_v60 = vmul.f32 %v7365_v31, %v4243_v0  ;;  %v4245_v41 = vpop.f32.mrb[143].mxu0 }
 0x4e1   : > { %4675 = vst [vmem:[%s7386_s30 + $0x158] sm:$0xff] %v4611_v39  ;;  %v4421_v61 = vadd.f32 %v7372_v14, %v4345_v8  ;;  %v4347_v49 = vmul.f32 %v7367_v6, %v4245_v41 }
 0x4e2   : > { %v4548_v21 = vadd.f32 %v4484_v25, %v4420_v12  ;;  %v4422_v17 = vadd.f32 %v7369_v11, %v4346_v60  ;;  %v6188_v25 = vld [vmem:[%s6397_s25 + $0xd8] sm:$0xff] }
 0x4e3   : > { %v4549_v42 = vadd.f32 %v4485_v10, %v4421_v61  ;;  %v4423_v2 = vadd.f32 %v7372_v14, %v4347_v49  ;;  %v4494_v53 = vunpack.c.l.bf16 %v6188_v25  ;;  %v4495_v0 = vunpack.c.h.bf16 %v6188_v25 }
 0x4e4   : > { %v4612_v15 = vmax.f32 %v4548_v21, 0.0  ;;  %v4550_v23 = vadd.f32 %v4486_v62, %v4422_v17 }
 0x4e5   : > { %v4613_v43 = vmax.f32 %v4549_v42, 0.0  ;;  %v4551_v35 = vadd.f32 %v4487_v57, %v4423_v2  ;;  %v4249_v3 = vpop.f32.mrb[144].mxu0  ;;  %v6189_v2 = vld [vmem:[%s6397_s25 + $0xe0] sm:$0xff] }
 0x4e6   : > { %4676 = vst [vmem:[%s7386_s30 + $0x160] sm:$0xff] %v4612_v15  ;;  %v4614_v27 = vmax.f32 %v4550_v23, 0.0  ;;  %v4348_v37 = vmul.f32 %v7365_v31, %v4249_v3  ;;  %v4251_v4 = vpop.f32.mrb[145].mxu0  ;;  %v4496_v15 = vunpack.c.l.bf16 %v6189_v2  ;;  %v4497_v3 = vunpack.c.h.bf16 %v6189_v2 }
 0x4e7   : > { %4677 = vst [vmem:[%s7386_s30 + $0x168] sm:$0xff] %v4613_v43  ;;  %v4615_v13 = vmax.f32 %v4551_v35, 0.0  ;;  %v4349_v44 = vmul.f32 %v7367_v6, %v4251_v4  ;;  %v4253_v5 = vpop.f32.mrb[146].mxu0 }
 0x4e8   : > { %4678 = vst [vmem:[%s7386_s30 + $0x170] sm:$0xff] %v4614_v27  ;;  %v4424_v9 = vadd.f32 %v7369_v11, %v4348_v37  ;;  %v4350_v38 = vmul.f32 %v7365_v31, %v4253_v5  ;;  %v4255_v16 = vpop.f32.mrb[147].mxu0 }
 0x4e9   : > { %4679 = vst [vmem:[%s7386_s30 + $0x178] sm:$0xff] %v4615_v13  ;;  %v4425_v1 = vadd.f32 %v7372_v14, %v4349_v44  ;;  %v4351_v22 = vmul.f32 %v7367_v6, %v4255_v16 }
 0x4ea   : > { %v4552_v54 = vadd.f32 %v4488_v40, %v4424_v9  ;;  %v4426_v24 = vadd.f32 %v7369_v11, %v4350_v38  ;;  %v6190_v40 = vld [vmem:[%s6397_s25 + $0xe8] sm:$0xff] }
 0x4eb   : > { %v4553_v19 = vadd.f32 %v4489_v59, %v4425_v1  ;;  %v4427_v36 = vadd.f32 %v7372_v14, %v4351_v22  ;;  %v4498_v4 = vunpack.c.l.bf16 %v6190_v40  ;;  %v4499_v5 = vunpack.c.h.bf16 %v6190_v40 }
 0x4ec   : > { %v4616_v30 = vmax.f32 %v4552_v54, 0.0  ;;  %v4554_v33 = vadd.f32 %v4490_v45, %v4426_v24 }
 0x4ed   : > { %v4617_v50 = vmax.f32 %v4553_v19, 0.0  ;;  %v4555_v47 = vadd.f32 %v4491_v29, %v4427_v36  ;;  %v4259_v20 = vpop.f32.mrb[148].mxu0  ;;  %v6191_v36 = vld [vmem:[%s6397_s25 + $0xf0] sm:$0xff] }
 0x4ee   : > { %4680 = vst [vmem:[%s7386_s30 + $0x180] sm:$0xff] %v4616_v30  ;;  %v4618_v34 = vmax.f32 %v4554_v33, 0.0  ;;  %v4352_v46 = vmul.f32 %v7365_v31, %v4259_v20  ;;  %v4261_v55 = vpop.f32.mrb[149].mxu0  ;;  %v4500_v30 = vunpack.c.l.bf16 %v6191_v36  ;;  %v4501_v20 = vunpack.c.h.bf16 %v6191_v36 }
 0x4ef   : > { %4681 = vst [vmem:[%s7386_s30 + $0x188] sm:$0xff] %v4617_v50  ;;  %v4619_v58 = vmax.f32 %v4555_v47, 0.0  ;;  %v4353_v63 = vmul.f32 %v7367_v6, %v4261_v55  ;;  %v4263_v56 = vpop.f32.mrb[150].mxu0 }
 0x4f0   : > { %4682 = vst [vmem:[%s7386_s30 + $0x190] sm:$0xff] %v4618_v34  ;;  %v4428_v51 = vadd.f32 %v7369_v11, %v4352_v46  ;;  %v4354_v52 = vmul.f32 %v7365_v31, %v4263_v56  ;;  %v4265_v39 = vpop.f32.mrb[151].mxu0 }
 0x4f1   : > { %4683 = vst [vmem:[%s7386_s30 + $0x198] sm:$0xff] %v4619_v58  ;;  %v4429_v8 = vadd.f32 %v7372_v14, %v4353_v63  ;;  %v4355_v10 = vmul.f32 %v7367_v6, %v4265_v39 }
 0x4f2   : > { %v4556_v12 = vadd.f32 %v4492_v48, %v4428_v51  ;;  %v4430_v60 = vadd.f32 %v7369_v11, %v4354_v52  ;;  %v6192_v48 = vld [vmem:[%s6397_s25 + $0xf8] sm:$0xff]  ;;  %s5105_s25 = sshll.u32 %s6338_s17, 13  ;;  %s7613_s17 = scalar_lea.sflag [#allocation4], %s350_s22 }
 0x4f3   : > { %v4557_v32 = vadd.f32 %v4493_v7, %v4429_v8  ;;  %v4431_v62 = vadd.f32 %v7372_v14, %v4355_v10  ;;  %v4502_v55 = vunpack.c.l.bf16 %v6192_v48  ;;  %v4503_v56 = vunpack.c.h.bf16 %v6192_v48  ;;  %s7604_s20 = scalar_lea.hbm %s7664_s10, %s5105_s25 }
 0x4f4   : > { %v4620_v41 = vmax.f32 %v4556_v12, 0.0  ;;  %v4558_v61 = vadd.f32 %v4494_v53, %v4430_v60 }
 0x4f5   : > { %v4621_v49 = vmax.f32 %v4557_v32, 0.0  ;;  %v4559_v57 = vadd.f32 %v4495_v0, %v4431_v62  ;;  %v4269_v21 = vpop.f32.mrb[152].mxu0 }
 0x4f6   : > { %4684 = vst [vmem:[%s7386_s30 + $0x1a0] sm:$0xff] %v4620_v41  ;;  %v4622_v17 = vmax.f32 %v4558_v61, 0.0  ;;  %v4356_v42 = vmul.f32 %v7365_v31, %v4269_v21  ;;  %v4271_v23 = vpop.f32.mrb[153].mxu0 }
 0x4f7   : > { %4685 = vst [vmem:[%s7386_s30 + $0x1a8] sm:$0xff] %v4621_v49  ;;  %v4623_v43 = vmax.f32 %v4559_v57, 0.0  ;;  %v4357_v35 = vmul.f32 %v7367_v6, %v4271_v23  ;;  %v4273_v27 = vpop.f32.mrb[154].mxu0 }
 0x4f8   : > { %4686 = vst [vmem:[%s7386_s30 + $0x1b0] sm:$0xff] %v4622_v17  ;;  %v4432_v37 = vadd.f32 %v7369_v11, %v4356_v42  ;;  %v4358_v18 = vmul.f32 %v7365_v31, %v4273_v27  ;;  %v4275_v13 = vpop.f32.mrb[155].mxu0 }
 0x4f9   : > { %4687 = vst [vmem:[%s7386_s30 + $0x1b8] sm:$0xff] %v4623_v43  ;;  %v4433_v44 = vadd.f32 %v7372_v14, %v4357_v35  ;;  %v4359_v59 = vmul.f32 %v7367_v6, %v4275_v13 }
 0x4fa   : > { %v4560_v9 = vadd.f32 %v4496_v15, %v4432_v37  ;;  %v4434_v38 = vadd.f32 %v7369_v11, %v4358_v18 }
 0x4fb   : > { %v4561_v28 = vadd.f32 %v4497_v3, %v4433_v44  ;;  %v4435_v45 = vadd.f32 %v7372_v14, %v4359_v59 }
 0x4fc   : > { %v4624_v16 = vmax.f32 %v4560_v9, 0.0  ;;  %v4562_v1 = vadd.f32 %v4498_v4, %v4434_v38 }
 0x4fd   : > { %v4625_v22 = vmax.f32 %v4561_v28, 0.0  ;;  %v4563_v29 = vadd.f32 %v4499_v5, %v4435_v45  ;;  %v4279_v54 = vpop.f32.mrb[156].mxu0 }
 0x4fe   : > { %4688 = vst [vmem:[%s7386_s30 + $0x1c0] sm:$0xff] %v4624_v16  ;;  %v4626_v24 = vmax.f32 %v4562_v1, 0.0  ;;  %v4360_v19 = vmul.f32 %v7365_v31, %v4279_v54  ;;  %v4281_v33 = vpop.f32.mrb[157].mxu0 }
 0x4ff   : > { %4689 = vst [vmem:[%s7386_s30 + $0x1c8] sm:$0xff] %v4625_v22  ;;  %v4627_v50 = vmax.f32 %v4563_v29, 0.0  ;;  %v4361_v47 = vmul.f32 %v7367_v6, %v4281_v33  ;;  %v4283_v34 = vpop.f32.mrb[158].mxu0 }
 0x500   : > { %4690 = vst [vmem:[%s7386_s30 + $0x1d0] sm:$0xff] %v4626_v24  ;;  %v4436_v46 = vadd.f32 %v7369_v11, %v4360_v19  ;;  %v4362_v26 = vmul.f32 %v7365_v31, %v4283_v34  ;;  %v4285_v58 = vpop.f32.mrb[159].mxu0 }
 0x501   : > { %4691 = vst [vmem:[%s7386_s30 + $0x1d8] sm:$0xff] %v4627_v50  ;;  %v4437_v63 = vadd.f32 %v7372_v14, %v4361_v47  ;;  %v4363_v7 = vmul.f32 %v7367_v6, %v4285_v58 }
 0x502   : > { %v4564_v51 = vadd.f32 %v4500_v30, %v4436_v46  ;;  %v4438_v52 = vadd.f32 %v7369_v11, %v4362_v26 }
 0x503   : > { %v4565_v25 = vadd.f32 %v4501_v20, %v4437_v63  ;;  %v4439_v31 = vadd.f32 %v7372_v14, %v4363_v7 }
 0x504   : > { %v4628_v53 = vmax.f32 %v4564_v51, 0.0  ;;  %v4566_v39 = vadd.f32 %v4502_v55, %v4438_v52 }
 0x505   : > { %v4629_v8 = vmax.f32 %v4565_v25, 0.0  ;;  %v4567_v10 = vadd.f32 %v4503_v56, %v4439_v31 }
 0x506   : > { %4692 = vst [vmem:[%s7386_s30 + $0x1e0] sm:$0xff] %v4628_v53  ;;  %v4630_v6 = vmax.f32 %v4566_v39, 0.0 }
 0x507   : > { %4693 = vst [vmem:[%s7386_s30 + $0x1e8] sm:$0xff] %v4629_v8  ;;  %v4631_v11 = vmax.f32 %v4567_v10, 0.0 }
 0x508   : > { %4694 = vst [vmem:[%s7386_s30 + $0x1f0] sm:$0xff] %v4630_v6 }
 0x509   : > { %4695 = vst [vmem:[%s7386_s30 + $0x1f8] sm:$0xff] %v4631_v11 }
 0x50a   : > { %6206 = shalt.err (!%p6203_p3)
}
 0x50b   : > { %s6207_s22 = scalar_lea.hbm %s7604_s20, 8192  ;;  %s6211_s25 = scalar_lea.hbm %s7664_s10, 16384 }
 0x50c   : > { %p6208_p4 = scmp.ne.s32.totalorder %s7604_s20, %s6207_s22  ;;  %p6212_p9 = scmp.lt.u32.totalorder %s7604_s20, %s7664_s10 }
 0x50d   : > { %p6213_p10 = scmp.lt.u32.totalorder %s6211_s25, %s6207_s22  ;;  %p6215_p12 = scmp.lt.u32.totalorder %s6207_s22, %s7604_s20 }
 0x50e   : > { %p6209_p7 = pnand %p6208_p4, %p6355_p5 }
 0x50f   : > { %p6214_p11 = por %p6213_p10, %p6212_p9 }
 0x510   : > { %p6210_p8 = pneg %p6209_p7 }
 0x511   : > { %p6216_p13 = por %p6215_p12, %p6214_p11 }
 0x513   : > { %p6217_p0 = pnand %p6216_p13, %p6210_p8 }
 0x515   : > { %6220 = shalt.err (!%p6217_p0)
}
 0x516   : > { %s6260_s26 = smov 256   ;;  %s6261_s21 = smov 16  }
 0x517   : > { %6022 = dma.vmem_to_hbm [thread:$0]  (%p6355_p5), %s7606_s11, 8192, %s7604_s20, %s7613_s17, %s6260_s26, %s6260_s26, %s6261_s21  }
 0x518 PF: > { %p6028_p1 = scmp.ge.s32.totalorder %s6255_s16, 2  ;;  %s4725_s27 = sand.u32 1, %s6243_s13  }
 0x519   : > { %s4726_s28 = scalar_lea.sflag [#allocation4], %s4725_s27 }
 0x51a   : > { %p6025_p2 = pnand %p6028_p1, %p6359_p6 }
 0x51c   : > { %6238 = dma.done.wait (!%p6025_p2), %s4726_s28, 8192  }
 0x51d   : > { %6240 = vsyncadd (!%p6025_p2), %s4726_s28, 4294959104  ;;  %s7668_s22 = sld [smem:[#allocation6_spill]]  ;;  %p20_p3 = scmp.ge.s32.totalorder %s6342_s19, 4  }
 0x51e   : > { %s7669_s13 = smov %s6247_s14  ;;  %s7670_s14 = smov %s6251_s15 }
 0x51f   : > { %s7672_s16 = smov %s6342_s19  ;;  %22 = sbr.rel (!%p20_p3) target bundleno = 3 (0x3), region = 105 }
 0x523   : > { %s7671_s15 = smov %s7668_s22 }
 0x526   :  { %4731 = vsyncpa [#allocation4], 1 }
 0x527   :  { %4733 = vsyncpa [#allocation4 + $0x1], 1 }

</bundles_post_ra>
